<compile_context>
chip_gen: v7x
topology: tpu7x:2x2x1
jax: 0.10.0
libtpu: 0.0.40
codegen_flags: <defaults>
</compile_context>

<pallas_src>
import functools

import jax
import jax.numpy as jnp
from jax.experimental import pallas as pl
from jax.experimental.pallas import tpu as pltpu


# ---------------------------------------------------------------------------
# Fully fused Pallas kernel: 5 branch convs -> VMEM concat buffer -> fusion
# conv, all per image.  Each conv is 9 accumulated MXU dots over lane-shifted
# taps (padding=1 handled by a zero halo + left/right edge-column masks).
# ---------------------------------------------------------------------------
def _unet_up2_fused_kernel(x_ref, wbr_ref, wf_ref, shift_ref, o_ref, hbuf_ref,
                           *, H, W, pad):
    # x_ref:     (1, NB, Cin_pad, TOT) bf16  five branch inputs, flat spatial
    #                                        axis with `pad` zero lanes/side.
    # wbr_ref:   (NB, 9, Cout, Cin_pad) bf16 per-branch per-tap weights
    #                                        (BN scale already folded in).
    # wf_ref:    (9, Cout, NB*Cout)    bf16  fusion-conv per-tap weights.
    # shift_ref: (NB+1, Cout, 1)       f32   per-conv bias/BN shift.
    # o_ref:     (1, Cout, P)          f32   lane-dense output (P = H*W).
    # hbuf_ref:  (NB*Cout, TOT)        f32   scratch: pre-haloed channel concat.
    P = H * W
    nb = x_ref.shape[1]
    cout = o_ref.shape[1]

    def make_masks(c):
        col = jax.lax.broadcasted_iota(jnp.int32, (c, P), 1) % W
        return col == 0, col == W - 1

    def conv3x3(xv, get_w, shift, left, right):
        # xv: (C, TOT) bf16; get_w(t) -> (Cout, C) bf16; shift: (Cout, 1) f32.
        acc = jnp.zeros((cout, P), jnp.float32)
        for dy in range(3):
            for dx in range(3):
                # Source for output pixel p is flat index pad + p + (dy-1)*W + (dx-1).
                start = pad + (dy - 1) * W + (dx - 1)          # static, >= 0
                piece = xv[:, start:start + P]                 # (C, P) bf16
                if dx == 0:
                    piece = jnp.where(left, 0.0, piece)        # col x-1 invalid
                elif dx == 2:
                    piece = jnp.where(right, 0.0, piece)       # col x+1 invalid
                # Row over/underflow lands in the zero halo -> already zero.
                acc = acc + jnp.dot(get_w(dy * 3 + dx), piece,
                                    preferred_element_type=jnp.float32)
        return jnp.maximum(acc + shift, 0.0)                   # (Cout, P) f32

    left_b, right_b = make_masks(x_ref.shape[2])               # branch masks
    left_f, right_f = make_masks(nb * cout)                    # fusion masks

    # --- Stage 1: five branch convs write directly into the pre-haloed
    # channel-concat VMEM buffer (no HBM round trip, no XLA concat/pad). ---
    hbuf_ref[...] = jnp.zeros_like(hbuf_ref)                   # keep halo zero
    for g in range(nb):
        xv = x_ref[0, g]                                       # (Cin_pad, TOT)
        h = conv3x3(xv, lambda t, g=g: wbr_ref[g, t], shift_ref[g],
                    left_b, right_b)                           # (Cout, P) f32
        # pad = 128 and g*Cout is a multiple of 8 -> aligned, unmasked stores.
        hbuf_ref[g * cout:(g + 1) * cout, pad:pad + P] = h

    # --- Stage 2: fusion conv over the concatenated activations (bf16 MXU). --
    hv = hbuf_ref[...].astype(jnp.bfloat16)                    # (NB*Cout, TOT)
    out = conv3x3(hv, lambda t: wf_ref[t], shift_ref[nb], left_f, right_f)
    o_ref[0] = out.astype(o_ref.dtype)


def unet_up2_pallas(x_all, w_br, w_f, shift_all, *, H, W):
    """Fused unetUp2 core: 5 branch convs + fusion conv in one pallas_call.

    x_all:     (N, 5, Cin_pad, P + 2*pad) bf16 (zero halo, zero-padded chans)
    w_br:      (5, 9, Cout, Cin_pad)      bf16 (BN scale folded in)
    w_f:       (9, Cout, 5*Cout)          bf16 (BN scale folded in)
    shift_all: (6, Cout, 1)               f32  (5 branch shifts + fusion shift)
    Returns (N, Cout, H*W) f32.
    """
    N, NB, cin_pad, TOT = x_all.shape
    cout = w_f.shape[1]
    P = H * W
    pad = (TOT - P) // 2
    assert pad >= W + 1 and TOT == P + 2 * pad
    assert P % 128 == 0 and pad % 128 == 0      # lane-dense stores (see TODO)
    assert w_br.shape == (NB, 9, cout, cin_pad)
    assert w_f.shape == (9, cout, NB * cout)
    assert shift_all.shape == (NB + 1, cout, 1)

    kernel = functools.partial(_unet_up2_fused_kernel, H=H, W=W, pad=pad)
    return pl.pallas_call(
        kernel,
        out_shape=jax.ShapeDtypeStruct((N, cout, P), jnp.float32),
        grid=(N,),
        in_specs=[
            pl.BlockSpec((1, NB, cin_pad, TOT), lambda n: (n, 0, 0, 0)),
            pl.BlockSpec((NB, 9, cout, cin_pad), lambda n: (0, 0, 0, 0)),
            pl.BlockSpec((9, cout, NB * cout), lambda n: (0, 0, 0)),
            pl.BlockSpec((NB + 1, cout, 1), lambda n: (0, 0, 0)),
        ],
        out_specs=pl.BlockSpec((1, cout, P), lambda n: (n, 0, 0)),
        scratch_shapes=[pltpu.VMEM((NB * cout, TOT), jnp.float32)],
        compiler_params=pltpu.CompilerParams(
            dimension_semantics=("parallel",)),
    )(x_all, w_br, w_f, shift_all)


# ---------------------------------------------------------------------------
# One-time parameter packing (hoisted out of the per-call forward):
# per-tap weight matrices with BN scale folded in, bf16 operands, f32 shifts.
# ---------------------------------------------------------------------------
def pack_params(params, bn):
    eps = 1e-5
    bn_scale = params["bn_gamma"] / jnp.sqrt(params["bn_var"] + eps)

    def fold(w, b):
        if bn:
            return (w * bn_scale,
                    params["bn_beta"] + (b - params["bn_mean"]) * bn_scale)
        return w, b

    def taps(w, cin_pad=None):
        # (3, 3, Cin, Cout) -> (9, Cout, Cin[_pad]); tap t = dy*3 + dx.
        _, _, cin, co = w.shape
        wt = jnp.transpose(w, (0, 1, 3, 2)).reshape(9, co, cin)
        if cin_pad is not None and cin_pad > cin:
            wt = jnp.pad(wt, ((0, 0), (0, 0), (0, cin_pad - cin)))
        return wt.astype(jnp.bfloat16)

    # NOTE: the PyTorch bn-branch applies self.conv4 (not conv5) to
    # h5_upsample; this intentionally replicates that quirk of the module.
    branch_convs = [params["conv1"], params["conv2"], params["conv3"],
                    params["conv4"], params["conv4"] if bn else params["conv5"]]
    cin_pad = -(-max(w.shape[2] for w, _ in branch_convs) // 8) * 8

    w_br, shifts = [], []
    for w, b in branch_convs:
        wf_, sf_ = fold(w, b)
        w_br.append(taps(wf_, cin_pad))
        shifts.append(sf_)
    wfu, sfu = fold(*params["conv"])
    shifts.append(sfu)

    cout = params["conv"][0].shape[3]
    return {
        "w_br": jnp.stack(w_br, 0),                                  # (5,9,Co,Ci)
        "w_f": taps(wfu),                                            # (9,Co,5*Co)
        "shift": jnp.stack(shifts, 0).reshape(6, cout, 1).astype(jnp.float32),
    }


# ---------------------------------------------------------------------------
# Glue ops (plain JAX): MaxPool2d(2,2,ceil_mode=True), bilinear upsample
# (align_corners=False, matching nn.Upsample defaults), layout plumbing.
# ---------------------------------------------------------------------------
def maxpool2x2_ceil(x):
    N, H, W, C = x.shape
    Hp, Wp = -(-H // 2) * 2, -(-W // 2) * 2
    x = jnp.pad(x, ((0, 0), (0, Hp - H), (0, Wp - W), (0, 0)),
                constant_values=-jnp.inf)
    return x.reshape(N, Hp // 2, 2, Wp // 2, 2, C).max(axis=(2, 4))


def upsample_bilinear(x, scale):
    N, H, W, C = x.shape
    out_h, out_w = H * scale, W * scale

    def axis_weights(out_len, in_len):
        coord = (jnp.arange(out_len, dtype=jnp.float32) + 0.5) / scale - 0.5
        coord = jnp.clip(coord, 0.0, in_len - 1)
        i0 = jnp.floor(coord).astype(jnp.int32)
        i1 = jnp.minimum(i0 + 1, in_len - 1)
        return i0, i1, coord - i0.astype(jnp.float32)

    h0, h1, fh = axis_weights(out_h, H)
    w0, w1, fw = axis_weights(out_w, W)
    xr0, xr1 = x[:, h0, :, :], x[:, h1, :, :]
    xr = xr0 * (1.0 - fh)[None, :, None, None] + xr1 * fh[None, :, None, None]
    xc0, xc1 = xr[:, :, w0, :], xr[:, :, w1, :]
    return xc0 * (1.0 - fw)[None, None, :, None] + xc1 * fw[None, None, :, None]


def unet_up2_forward(packed, i1, i2, i3, i4, i5):
    """Forward pass of unetUp2 (NHWC in / NHWC out) using the fused kernel."""
    H, W = i2.shape[1], i2.shape[2]
    P = H * W
    pad = -(-(W + 1) // 128) * 128      # lane-aligned halo (>= W+1 zeros/side)
    cin_pad = packed["w_br"].shape[3]
    cout = packed["w_f"].shape[1]

    branches = [maxpool2x2_ceil(i1), i2, upsample_bilinear(i3, 2),
                upsample_bilinear(i4, 4), upsample_bilinear(i5, 8)]
    xs = []
    for x in branches:
        N, _, _, C = x.shape
        x_cf = jnp.transpose(x, (0, 3, 1, 2)).reshape(N, C, P)
        x_cf = jnp.pad(x_cf, ((0, 0), (0, cin_pad - C), (pad, pad)))
        xs.append(x_cf.astype(jnp.bfloat16))
    x_all = jnp.stack(xs, axis=1)                        # (N, 5, Cin_pad, TOT)

    out_cf = unet_up2_pallas(x_all, packed["w_br"], packed["w_f"],
                             packed["shift"], H=H, W=W)  # (N, Cout, P)
    N = x_all.shape[0]
    return out_cf.reshape(N, cout, H, W).transpose(0, 2, 3, 1)


# ---------------------------------------------------------------------------
# Parameters (deterministic) and pure-JAX f32 reference for validation.
# ---------------------------------------------------------------------------
def init_params(key, filters, out_size):
    def conv_init(k, cin, cout):
        kw, kb = jax.random.split(k)
        w = 0.1 * jax.random.normal(kw, (3, 3, cin, cout), jnp.float32)
        b = 0.05 * jax.random.normal(kb, (cout,), jnp.float32)
        return w, b

    keys = jax.random.split(key, 7)
    p = {}
    p["conv1"] = conv_init(keys[0], filters[0], out_size)
    p["conv2"] = conv_init(keys[1], filters[1], out_size)
    p["conv3"] = conv_init(keys[2], out_size, out_size)
    p["conv4"] = conv_init(keys[3], out_size, out_size)
    p["conv5"] = conv_init(keys[4], filters[4], out_size)
    p["conv"] = conv_init(keys[5], filters[0] * 5, out_size)
    # BatchNorm2d(out_size) — eval-mode (running stats), deterministic.
    p["bn_gamma"] = 1.0 + 0.1 * jnp.arange(out_size, dtype=jnp.float32) / out_size
    p["bn_beta"] = 0.02 * jnp.arange(out_size, dtype=jnp.float32)
    p["bn_mean"] = 0.01 * jnp.arange(out_size, dtype=jnp.float32)
    p["bn_var"] = 1.0 + 0.05 * jnp.arange(out_size, dtype=jnp.float32)
    return p


def _folded_affine(params, bn):
    eps = 1e-5
    bn_scale = params["bn_gamma"] / jnp.sqrt(params["bn_var"] + eps)

    def fold(bias):
        if bn:
            return bn_scale, params["bn_beta"] + (bias - params["bn_mean"]) * bn_scale
        return jnp.ones_like(bias), bias
    return fold


def _branch_inputs(params, i1, i2, i3, i4, i5, bn):
    w1, b1 = params["conv1"]; w2, b2 = params["conv2"]
    w3, b3 = params["conv3"]; w4, b4 = params["conv4"]
    w5, b5 = params["conv5"]
    x1 = maxpool2x2_ceil(i1)
    x3 = upsample_bilinear(i3, 2)
    x4 = upsample_bilinear(i4, 4)
    x5 = upsample_bilinear(i5, 8)
    w5u, b5u = (w4, b4) if bn else (w5, b5)
    return [(x1, w1, b1), (i2, w2, b2), (x3, w3, b3), (x4, w4, b4), (x5, w5u, b5u)]


def _conv3x3_ref(x, w, scale, shift):
    y = jax.lax.conv_general_dilated(
        x, w, window_strides=(1, 1), padding=((1, 1), (1, 1)),
        dimension_numbers=("NHWC", "HWIO", "NHWC"),
        precision=jax.lax.Precision.HIGHEST)
    return jnp.maximum(y * scale + shift, 0.0)


def unet_up2_reference(params, i1, i2, i3, i4, i5, bn):
    fold = _folded_affine(params, bn)
    branches = _branch_inputs(params, i1, i2, i3, i4, i5, bn)
    hs = [_conv3x3_ref(x, w, *fold(b)) for x, w, b in branches]
    wf, bf = params["conv"]
    return _conv3x3_ref(jnp.concatenate(hs, axis=-1), wf, *fold(bf))


# ---------------------------------------------------------------------------
if __name__ == "__main__":
    # Small, consistent shapes. The reference module's final conv requires
    # filters[0] == out_size (5*out_size concat channels == filters[0]*5).
    N = 2
    out_size = 8
    filters = [8, 6, 8, 8, 8]
    H = W = 16  # output spatial size (resolution of inputs2)

    key = jax.random.PRNGKey(0)
    kp, k1, k2, k3, k4, k5 = jax.random.split(key, 6)
    params = init_params(kp, filters, out_size)

    inputs1 = jax.random.normal(k1, (N, 2 * H, 2 * W, filters[0]), jnp.float32)
    inputs2 = jax.random.normal(k2, (N, H, W, filters[1]), jnp.float32)
    inputs3 = jax.random.normal(k3, (N, H // 2, W // 2, out_size), jnp.float32)
    inputs4 = jax.random.normal(k4, (N, H // 4, W // 4, out_size), jnp.float32)
    inputs5 = jax.random.normal(k5, (N, H // 8, W // 8, filters[4]), jnp.float32)

    # One-time weight packing (BN fold + im2col tap layout), hoisted out of the
    # per-call forward; same jitted forward serves both bn modes.
    packed_bn = pack_params(params, bn=True)
    packed_nobn = pack_params(params, bn=False)
    fwd = jax.jit(unet_up2_forward)

    out_bn = fwd(packed_bn, inputs1, inputs2, inputs3, inputs4, inputs5)
    out_nobn = fwd(packed_nobn, inputs1, inputs2, inputs3, inputs4, inputs5)
    jax.block_until_ready((out_bn, out_nobn))

    ref_bn = unet_up2_reference(params, inputs1, inputs2, inputs3, inputs4,
                                inputs5, bn=True)
    ref_nobn = unet_up2_reference(params, inputs1, inputs2, inputs3, inputs4,
                                  inputs5, bn=False)

    assert out_bn.shape == (N, H, W, out_size)
    assert out_nobn.shape == (N, H, W, out_size)
    # Tolerance sized for bf16 MXU operands (K=360 bf16 accumulation in the
    # fusion conv) against the f32 HIGHEST-precision reference.
    assert bool(jnp.allclose(out_bn, ref_bn, atol=4e-2, rtol=4e-2))
    assert bool(jnp.allclose(out_nobn, ref_nobn, atol=4e-2, rtol=4e-2))
    print("KERNEL_OK")
</pallas_src>

<mosaic_0001>
module attributes {stable_mosaic.version = 11 : i64} {
  func.func @_unet_up2_fused_kernel(%arg0: i32, %arg1: memref<1x5x8x512xbf16, #tpu.memory_space<vmem>>, %arg2: memref<5x9x8x8xbf16, #tpu.memory_space<vmem>>, %arg3: memref<9x8x40xbf16, #tpu.memory_space<vmem>>, %arg4: memref<6x8x1xf32, #tpu.memory_space<vmem>>, %arg5: memref<1x8x256xf32, #tpu.memory_space<vmem>>, %arg6: memref<40x512xf32, #tpu.memory_space<vmem>>) attributes {dimension_semantics = [#tpu.dimension_semantics<parallel>], iteration_bounds = array<i64: 2>, scalar_prefetch = 0 : i64, scratch_operands = 1 : i64, tpu.core_type = #tpu.core_type<tc>, window_params = [{transform_indices = @transform_0, window_bounds = array<i64: 1, 5, 8, 512>}, {pipeline_mode = #tpu.pipeline_mode<synchronous>, transform_indices = @transform_1, window_bounds = array<i64: 5, 9, 8, 8>}, {pipeline_mode = #tpu.pipeline_mode<synchronous>, transform_indices = @transform_2, window_bounds = array<i64: 9, 8, 40>}, {pipeline_mode = #tpu.pipeline_mode<synchronous>, transform_indices = @transform_3, window_bounds = array<i64: 6, 8, 1>}, {transform_indices = @transform_4, window_bounds = array<i64: 1, 8, 256>}]} {
    %0 = tpu.iota {dimensions = array<i32: 1>} : vector<8x256xi32>
    %c16_i32 = arith.constant 16 : i32
    %c0_i32 = arith.constant 0 : i32
    %1 = arith.cmpi eq, %c16_i32, %c0_i32 : i32
    %c1_i32 = arith.constant 1 : i32
    %2 = arith.select %1, %c1_i32, %c16_i32 : i32
    %3 = vector.broadcast %2 : i32 to vector<8x256xi32>
    %4 = arith.remsi %0, %3 : vector<8x256xi32>
    %c0_i32_0 = arith.constant 0 : i32
    %5 = vector.broadcast %c0_i32_0 : i32 to vector<8x256xi32>
    %6 = arith.cmpi ne, %4, %5 : vector<8x256xi32>
    %c0_i32_1 = arith.constant 0 : i32
    %7 = vector.broadcast %c0_i32_1 : i32 to vector<8x256xi32>
    %8 = arith.cmpi slt, %4, %7 : vector<8x256xi32>
    %c0_i32_2 = arith.constant 0 : i32
    %9 = arith.cmpi slt, %2, %c0_i32_2 : i32
    %10 = vector.broadcast %9 : i1 to vector<8x256xi1>
    %11 = vector.broadcast %10 : vector<8x256xi1> to vector<8x256xi1>
    %12 = arith.xori %8, %11 : vector<8x256xi1>
    %13 = arith.andi %12, %6 : vector<8x256xi1>
    %14 = vector.broadcast %2 : i32 to vector<8x256xi32>
    %15 = arith.addi %4, %14 : vector<8x256xi32>
    %16 = arith.select %13, %15, %4 : vector<8x256xi1>, vector<8x256xi32>
    %c0_i32_3 = arith.constant 0 : i32
    %17 = vector.broadcast %c0_i32_3 : i32 to vector<8x256xi32>
    %18 = arith.cmpi eq, %16, %17 : vector<8x256xi32>
    %c15_i32 = arith.constant 15 : i32
    %19 = vector.broadcast %c15_i32 : i32 to vector<8x256xi32>
    %20 = arith.cmpi eq, %16, %19 : vector<8x256xi32>
    %21 = tpu.iota {dimensions = array<i32: 1>} : vector<40x256xi32>
    %c16_i32_4 = arith.constant 16 : i32
    %c0_i32_5 = arith.constant 0 : i32
    %22 = arith.cmpi eq, %c16_i32_4, %c0_i32_5 : i32
    %c1_i32_6 = arith.constant 1 : i32
    %23 = arith.select %22, %c1_i32_6, %c16_i32_4 : i32
    %24 = vector.broadcast %23 : i32 to vector<40x256xi32>
    %25 = arith.remsi %21, %24 : vector<40x256xi32>
    %c0_i32_7 = arith.constant 0 : i32
    %26 = vector.broadcast %c0_i32_7 : i32 to vector<40x256xi32>
    %27 = arith.cmpi ne, %25, %26 : vector<40x256xi32>
    %c0_i32_8 = arith.constant 0 : i32
    %28 = vector.broadcast %c0_i32_8 : i32 to vector<40x256xi32>
    %29 = arith.cmpi slt, %25, %28 : vector<40x256xi32>
    %c0_i32_9 = arith.constant 0 : i32
    %30 = arith.cmpi slt, %23, %c0_i32_9 : i32
    %31 = vector.broadcast %30 : i1 to vector<40x256xi1>
    %32 = vector.broadcast %31 : vector<40x256xi1> to vector<40x256xi1>
    %33 = arith.xori %29, %32 : vector<40x256xi1>
    %34 = arith.andi %33, %27 : vector<40x256xi1>
    %35 = vector.broadcast %23 : i32 to vector<40x256xi32>
    %36 = arith.addi %25, %35 : vector<40x256xi32>
    %37 = arith.select %34, %36, %25 : vector<40x256xi1>, vector<40x256xi32>
    %c0_i32_10 = arith.constant 0 : i32
    %38 = vector.broadcast %c0_i32_10 : i32 to vector<40x256xi32>
    %39 = arith.cmpi eq, %37, %38 : vector<40x256xi32>
    %c15_i32_11 = arith.constant 15 : i32
    %40 = vector.broadcast %c15_i32_11 : i32 to vector<40x256xi32>
    %41 = arith.cmpi eq, %37, %40 : vector<40x256xi32>
    %cst = arith.constant 0.000000e+00 : f32
    %42 = vector.broadcast %cst : f32 to vector<40x512xf32>
    %c0 = arith.constant 0 : index
    %c0_12 = arith.constant 0 : index
    %43 = vector.load %arg6[%c0, %c0_12] : memref<40x512xf32, #tpu.memory_space<vmem>>, vector<40x512xf32>
    tpu.vector_store %arg6[%c0, %c0_12], %42 {strides = array<i32>} : memref<40x512xf32, #tpu.memory_space<vmem>>, vector<40x512xf32>,
    %c0_13 = arith.constant 0 : index
    %c0_14 = arith.constant 0 : index
    %c0_15 = arith.constant 0 : index
    %c0_16 = arith.constant 0 : index
    %44 = vector.load %arg1[%c0_13, %c0_14, %c0_15, %c0_16] : memref<1x5x8x512xbf16, #tpu.memory_space<vmem>>, vector<1x1x8x512xbf16>
    %45 = vector.shape_cast %44 : vector<1x1x8x512xbf16> to vector<8x512xbf16>
    %c0_17 = arith.constant 0 : index
    %c0_18 = arith.constant 0 : index
    %c0_19 = arith.constant 0 : index
    %46 = vector.load %arg4[%c0_17, %c0_18, %c0_19] : memref<6x8x1xf32, #tpu.memory_space<vmem>>, vector<1x8x1xf32>
    %47 = vector.shape_cast %46 : vector<1x8x1xf32> to vector<8x1xf32>
    %cst_20 = arith.constant 0.000000e+00 : f32
    %48 = vector.broadcast %cst_20 : f32 to vector<8x256xf32>
    %49 = vector.extract_strided_slice %45 {offsets = [0, 111], sizes = [8, 256], strides = [1, 1]} : vector<8x512xbf16> to vector<8x256xbf16>
    %cst_21 = arith.constant 0.000000e+00 : f32
    %50 = arith.truncf %cst_21 : f32 to bf16
    %51 = vector.broadcast %50 : bf16 to vector<8x256xbf16>
    %52 = arith.select %18, %51, %49 : vector<8x256xi1>, vector<8x256xbf16>
    %c0_22 = arith.constant 0 : index
    %c0_23 = arith.constant 0 : index
    %c0_24 = arith.constant 0 : index
    %c0_25 = arith.constant 0 : index
    %53 = vector.load %arg2[%c0_22, %c0_23, %c0_24, %c0_25] : memref<5x9x8x8xbf16, #tpu.memory_space<vmem>>, vector<1x1x8x8xbf16>
    %54 = vector.shape_cast %53 : vector<1x1x8x8xbf16> to vector<8x8xbf16>
    %cst_26 = arith.constant dense<0.000000e+00> : vector<8x256xf32>
    %55 = tpu.matmul %54, %52, %cst_26 {dimension_numbers = #tpu.dot_dimension_numbers<[1], [0], [0], [1], [0, 0, 1, 1], [], []>} : vector<8x8xbf16>, vector<8x256xbf16>, vector<8x256xf32> -> vector<8x256xf32>
    %56 = arith.addf %48, %55 : vector<8x256xf32>
    %57 = vector.extract_strided_slice %45 {offsets = [0, 112], sizes = [8, 256], strides = [1, 1]} : vector<8x512xbf16> to vector<8x256xbf16>
    %c0_27 = arith.constant 0 : index
    %c1 = arith.constant 1 : index
    %c0_28 = arith.constant 0 : index
    %c0_29 = arith.constant 0 : index
    %58 = vector.load %arg2[%c0_27, %c1, %c0_28, %c0_29] : memref<5x9x8x8xbf16, #tpu.memory_space<vmem>>, vector<1x1x8x8xbf16>
    %59 = vector.shape_cast %58 : vector<1x1x8x8xbf16> to vector<8x8xbf16>
    %cst_30 = arith.constant dense<0.000000e+00> : vector<8x256xf32>
    %60 = tpu.matmul %59, %57, %cst_30 {dimension_numbers = #tpu.dot_dimension_numbers<[1], [0], [0], [1], [0, 0, 1, 1], [], []>} : vector<8x8xbf16>, vector<8x256xbf16>, vector<8x256xf32> -> vector<8x256xf32>
    %61 = arith.addf %56, %60 : vector<8x256xf32>
    %62 = vector.extract_strided_slice %45 {offsets = [0, 113], sizes = [8, 256], strides = [1, 1]} : vector<8x512xbf16> to vector<8x256xbf16>
    %cst_31 = arith.constant 0.000000e+00 : f32
    %63 = arith.truncf %cst_31 : f32 to bf16
    %64 = vector.broadcast %63 : bf16 to vector<8x256xbf16>
    %65 = arith.select %20, %64, %62 : vector<8x256xi1>, vector<8x256xbf16>
    %c0_32 = arith.constant 0 : index
    %c2 = arith.constant 2 : index
    %c0_33 = arith.constant 0 : index
    %c0_34 = arith.constant 0 : index
    %66 = vector.load %arg2[%c0_32, %c2, %c0_33, %c0_34] : memref<5x9x8x8xbf16, #tpu.memory_space<vmem>>, vector<1x1x8x8xbf16>
    %67 = vector.shape_cast %66 : vector<1x1x8x8xbf16> to vector<8x8xbf16>
    %cst_35 = arith.constant dense<0.000000e+00> : vector<8x256xf32>
    %68 = tpu.matmul %67, %65, %cst_35 {dimension_numbers = #tpu.dot_dimension_numbers<[1], [0], [0], [1], [0, 0, 1, 1], [], []>} : vector<8x8xbf16>, vector<8x256xbf16>, vector<8x256xf32> -> vector<8x256xf32>
    %69 = arith.addf %61, %68 : vector<8x256xf32>
    %70 = vector.extract_strided_slice %45 {offsets = [0, 127], sizes = [8, 256], strides = [1, 1]} : vector<8x512xbf16> to vector<8x256xbf16>
    %cst_36 = arith.constant 0.000000e+00 : f32
    %71 = arith.truncf %cst_36 : f32 to bf16
    %72 = vector.broadcast %71 : bf16 to vector<8x256xbf16>
    %73 = arith.select %18, %72, %70 : vector<8x256xi1>, vector<8x256xbf16>
    %c0_37 = arith.constant 0 : index
    %c3 = arith.constant 3 : index
    %c0_38 = arith.constant 0 : index
    %c0_39 = arith.constant 0 : index
    %74 = vector.load %arg2[%c0_37, %c3, %c0_38, %c0_39] : memref<5x9x8x8xbf16, #tpu.memory_space<vmem>>, vector<1x1x8x8xbf16>
    %75 = vector.shape_cast %74 : vector<1x1x8x8xbf16> to vector<8x8xbf16>
    %cst_40 = arith.constant dense<0.000000e+00> : vector<8x256xf32>
    %76 = tpu.matmul %75, %73, %cst_40 {dimension_numbers = #tpu.dot_dimension_numbers<[1], [0], [0], [1], [0, 0, 1, 1], [], []>} : vector<8x8xbf16>, vector<8x256xbf16>, vector<8x256xf32> -> vector<8x256xf32>
    %77 = arith.addf %69, %76 : vector<8x256xf32>
    %78 = vector.extract_strided_slice %45 {offsets = [0, 128], sizes = [8, 256], strides = [1, 1]} : vector<8x512xbf16> to vector<8x256xbf16>
    %c0_41 = arith.constant 0 : index
    %c4 = arith.constant 4 : index
    %c0_42 = arith.constant 0 : index
    %c0_43 = arith.constant 0 : index
    %79 = vector.load %arg2[%c0_41, %c4, %c0_42, %c0_43] : memref<5x9x8x8xbf16, #tpu.memory_space<vmem>>, vector<1x1x8x8xbf16>
    %80 = vector.shape_cast %79 : vector<1x1x8x8xbf16> to vector<8x8xbf16>
    %cst_44 = arith.constant dense<0.000000e+00> : vector<8x256xf32>
    %81 = tpu.matmul %80, %78, %cst_44 {dimension_numbers = #tpu.dot_dimension_numbers<[1], [0], [0], [1], [0, 0, 1, 1], [], []>} : vector<8x8xbf16>, vector<8x256xbf16>, vector<8x256xf32> -> vector<8x256xf32>
    %82 = arith.addf %77, %81 : vector<8x256xf32>
    %83 = vector.extract_strided_slice %45 {offsets = [0, 129], sizes = [8, 256], strides = [1, 1]} : vector<8x512xbf16> to vector<8x256xbf16>
    %cst_45 = arith.constant 0.000000e+00 : f32
    %84 = arith.truncf %cst_45 : f32 to bf16
    %85 = vector.broadcast %84 : bf16 to vector<8x256xbf16>
    %86 = arith.select %20, %85, %83 : vector<8x256xi1>, vector<8x256xbf16>
    %c0_46 = arith.constant 0 : index
    %c5 = arith.constant 5 : index
    %c0_47 = arith.constant 0 : index
    %c0_48 = arith.constant 0 : index
    %87 = vector.load %arg2[%c0_46, %c5, %c0_47, %c0_48] : memref<5x9x8x8xbf16, #tpu.memory_space<vmem>>, vector<1x1x8x8xbf16>
    %88 = vector.shape_cast %87 : vector<1x1x8x8xbf16> to vector<8x8xbf16>
    %cst_49 = arith.constant dense<0.000000e+00> : vector<8x256xf32>
    %89 = tpu.matmul %88, %86, %cst_49 {dimension_numbers = #tpu.dot_dimension_numbers<[1], [0], [0], [1], [0, 0, 1, 1], [], []>} : vector<8x8xbf16>, vector<8x256xbf16>, vector<8x256xf32> -> vector<8x256xf32>
    %90 = arith.addf %82, %89 : vector<8x256xf32>
    %91 = vector.extract_strided_slice %45 {offsets = [0, 143], sizes = [8, 256], strides = [1, 1]} : vector<8x512xbf16> to vector<8x256xbf16>
    %cst_50 = arith.constant 0.000000e+00 : f32
    %92 = arith.truncf %cst_50 : f32 to bf16
    %93 = vector.broadcast %92 : bf16 to vector<8x256xbf16>
    %94 = arith.select %18, %93, %91 : vector<8x256xi1>, vector<8x256xbf16>
    %c0_51 = arith.constant 0 : index
    %c6 = arith.constant 6 : index
    %c0_52 = arith.constant 0 : index
    %c0_53 = arith.constant 0 : index
    %95 = vector.load %arg2[%c0_51, %c6, %c0_52, %c0_53] : memref<5x9x8x8xbf16, #tpu.memory_space<vmem>>, vector<1x1x8x8xbf16>
    %96 = vector.shape_cast %95 : vector<1x1x8x8xbf16> to vector<8x8xbf16>
    %cst_54 = arith.constant dense<0.000000e+00> : vector<8x256xf32>
    %97 = tpu.matmul %96, %94, %cst_54 {dimension_numbers = #tpu.dot_dimension_numbers<[1], [0], [0], [1], [0, 0, 1, 1], [], []>} : vector<8x8xbf16>, vector<8x256xbf16>, vector<8x256xf32> -> vector<8x256xf32>
    %98 = arith.addf %90, %97 : vector<8x256xf32>
    %99 = vector.extract_strided_slice %45 {offsets = [0, 144], sizes = [8, 256], strides = [1, 1]} : vector<8x512xbf16> to vector<8x256xbf16>
    %c0_55 = arith.constant 0 : index
    %c7 = arith.constant 7 : index
    %c0_56 = arith.constant 0 : index
    %c0_57 = arith.constant 0 : index
    %100 = vector.load %arg2[%c0_55, %c7, %c0_56, %c0_57] : memref<5x9x8x8xbf16, #tpu.memory_space<vmem>>, vector<1x1x8x8xbf16>
    %101 = vector.shape_cast %100 : vector<1x1x8x8xbf16> to vector<8x8xbf16>
    %cst_58 = arith.constant dense<0.000000e+00> : vector<8x256xf32>
    %102 = tpu.matmul %101, %99, %cst_58 {dimension_numbers = #tpu.dot_dimension_numbers<[1], [0], [0], [1], [0, 0, 1, 1], [], []>} : vector<8x8xbf16>, vector<8x256xbf16>, vector<8x256xf32> -> vector<8x256xf32>
    %103 = arith.addf %98, %102 : vector<8x256xf32>
    %104 = vector.extract_strided_slice %45 {offsets = [0, 145], sizes = [8, 256], strides = [1, 1]} : vector<8x512xbf16> to vector<8x256xbf16>
    %cst_59 = arith.constant 0.000000e+00 : f32
    %105 = arith.truncf %cst_59 : f32 to bf16
    %106 = vector.broadcast %105 : bf16 to vector<8x256xbf16>
    %107 = arith.select %20, %106, %104 : vector<8x256xi1>, vector<8x256xbf16>
    %c0_60 = arith.constant 0 : index
    %c8 = arith.constant 8 : index
    %c0_61 = arith.constant 0 : index
    %c0_62 = arith.constant 0 : index
    %108 = vector.load %arg2[%c0_60, %c8, %c0_61, %c0_62] : memref<5x9x8x8xbf16, #tpu.memory_space<vmem>>, vector<1x1x8x8xbf16>
    %109 = vector.shape_cast %108 : vector<1x1x8x8xbf16> to vector<8x8xbf16>
    %cst_63 = arith.constant dense<0.000000e+00> : vector<8x256xf32>
    %110 = tpu.matmul %109, %107, %cst_63 {dimension_numbers = #tpu.dot_dimension_numbers<[1], [0], [0], [1], [0, 0, 1, 1], [], []>} : vector<8x8xbf16>, vector<8x256xbf16>, vector<8x256xf32> -> vector<8x256xf32>
    %111 = arith.addf %103, %110 : vector<8x256xf32>
    %112 = vector.broadcast %47 : vector<8x1xf32> to vector<8x256xf32>
    %113 = arith.addf %111, %112 : vector<8x256xf32>
    %cst_64 = arith.constant 0.000000e+00 : f32
    %114 = vector.broadcast %cst_64 : f32 to vector<8x256xf32>
    %115 = arith.maximumf %113, %114 : vector<8x256xf32>
    %c0_65 = arith.constant 0 : index
    %c128 = arith.constant 128 : index
    %116 = vector.load %arg6[%c0_65, %c128] : memref<40x512xf32, #tpu.memory_space<vmem>>, vector<8x256xf32>
    tpu.vector_store %arg6[%c0_65, %c128], %115 {strides = array<i32>} : memref<40x512xf32, #tpu.memory_space<vmem>>, vector<8x256xf32>,
    %c0_66 = arith.constant 0 : index
    %c1_67 = arith.constant 1 : index
    %c0_68 = arith.constant 0 : index
    %c0_69 = arith.constant 0 : index
    %117 = vector.load %arg1[%c0_66, %c1_67, %c0_68, %c0_69] : memref<1x5x8x512xbf16, #tpu.memory_space<vmem>>, vector<1x1x8x512xbf16>
    %118 = vector.shape_cast %117 : vector<1x1x8x512xbf16> to vector<8x512xbf16>
    %c1_70 = arith.constant 1 : index
    %c0_71 = arith.constant 0 : index
    %c0_72 = arith.constant 0 : index
    %119 = vector.load %arg4[%c1_70, %c0_71, %c0_72] : memref<6x8x1xf32, #tpu.memory_space<vmem>>, vector<1x8x1xf32>
    %120 = vector.shape_cast %119 : vector<1x8x1xf32> to vector<8x1xf32>
    %cst_73 = arith.constant 0.000000e+00 : f32
    %121 = vector.broadcast %cst_73 : f32 to vector<8x256xf32>
    %122 = vector.extract_strided_slice %118 {offsets = [0, 111], sizes = [8, 256], strides = [1, 1]} : vector<8x512xbf16> to vector<8x256xbf16>
    %cst_74 = arith.constant 0.000000e+00 : f32
    %123 = arith.truncf %cst_74 : f32 to bf16
    %124 = vector.broadcast %123 : bf16 to vector<8x256xbf16>
    %125 = arith.select %18, %124, %122 : vector<8x256xi1>, vector<8x256xbf16>
    %c1_75 = arith.constant 1 : index
    %c0_76 = arith.constant 0 : index
    %c0_77 = arith.constant 0 : index
    %c0_78 = arith.constant 0 : index
    %126 = vector.load %arg2[%c1_75, %c0_76, %c0_77, %c0_78] : memref<5x9x8x8xbf16, #tpu.memory_space<vmem>>, vector<1x1x8x8xbf16>
    %127 = vector.shape_cast %126 : vector<1x1x8x8xbf16> to vector<8x8xbf16>
    %cst_79 = arith.constant dense<0.000000e+00> : vector<8x256xf32>
    %128 = tpu.matmul %127, %125, %cst_79 {dimension_numbers = #tpu.dot_dimension_numbers<[1], [0], [0], [1], [0, 0, 1, 1], [], []>} : vector<8x8xbf16>, vector<8x256xbf16>, vector<8x256xf32> -> vector<8x256xf32>
    %129 = arith.addf %121, %128 : vector<8x256xf32>
    %130 = vector.extract_strided_slice %118 {offsets = [0, 112], sizes = [8, 256], strides = [1, 1]} : vector<8x512xbf16> to vector<8x256xbf16>
    %c1_80 = arith.constant 1 : index
    %c1_81 = arith.constant 1 : index
    %c0_82 = arith.constant 0 : index
    %c0_83 = arith.constant 0 : index
    %131 = vector.load %arg2[%c1_80, %c1_81, %c0_82, %c0_83] : memref<5x9x8x8xbf16, #tpu.memory_space<vmem>>, vector<1x1x8x8xbf16>
    %132 = vector.shape_cast %131 : vector<1x1x8x8xbf16> to vector<8x8xbf16>
    %cst_84 = arith.constant dense<0.000000e+00> : vector<8x256xf32>
    %133 = tpu.matmul %132, %130, %cst_84 {dimension_numbers = #tpu.dot_dimension_numbers<[1], [0], [0], [1], [0, 0, 1, 1], [], []>} : vector<8x8xbf16>, vector<8x256xbf16>, vector<8x256xf32> -> vector<8x256xf32>
    %134 = arith.addf %129, %133 : vector<8x256xf32>
    %135 = vector.extract_strided_slice %118 {offsets = [0, 113], sizes = [8, 256], strides = [1, 1]} : vector<8x512xbf16> to vector<8x256xbf16>
    %cst_85 = arith.constant 0.000000e+00 : f32
    %136 = arith.truncf %cst_85 : f32 to bf16
    %137 = vector.broadcast %136 : bf16 to vector<8x256xbf16>
    %138 = arith.select %20, %137, %135 : vector<8x256xi1>, vector<8x256xbf16>
    %c1_86 = arith.constant 1 : index
    %c2_87 = arith.constant 2 : index
    %c0_88 = arith.constant 0 : index
    %c0_89 = arith.constant 0 : index
    %139 = vector.load %arg2[%c1_86, %c2_87, %c0_88, %c0_89] : memref<5x9x8x8xbf16, #tpu.memory_space<vmem>>, vector<1x1x8x8xbf16>
    %140 = vector.shape_cast %139 : vector<1x1x8x8xbf16> to vector<8x8xbf16>
    %cst_90 = arith.constant dense<0.000000e+00> : vector<8x256xf32>
    %141 = tpu.matmul %140, %138, %cst_90 {dimension_numbers = #tpu.dot_dimension_numbers<[1], [0], [0], [1], [0, 0, 1, 1], [], []>} : vector<8x8xbf16>, vector<8x256xbf16>, vector<8x256xf32> -> vector<8x256xf32>
    %142 = arith.addf %134, %141 : vector<8x256xf32>
    %143 = vector.extract_strided_slice %118 {offsets = [0, 127], sizes = [8, 256], strides = [1, 1]} : vector<8x512xbf16> to vector<8x256xbf16>
    %cst_91 = arith.constant 0.000000e+00 : f32
    %144 = arith.truncf %cst_91 : f32 to bf16
    %145 = vector.broadcast %144 : bf16 to vector<8x256xbf16>
    %146 = arith.select %18, %145, %143 : vector<8x256xi1>, vector<8x256xbf16>
    %c1_92 = arith.constant 1 : index
    %c3_93 = arith.constant 3 : index
    %c0_94 = arith.constant 0 : index
    %c0_95 = arith.constant 0 : index
    %147 = vector.load %arg2[%c1_92, %c3_93, %c0_94, %c0_95] : memref<5x9x8x8xbf16, #tpu.memory_space<vmem>>, vector<1x1x8x8xbf16>
    %148 = vector.shape_cast %147 : vector<1x1x8x8xbf16> to vector<8x8xbf16>
    %cst_96 = arith.constant dense<0.000000e+00> : vector<8x256xf32>
    %149 = tpu.matmul %148, %146, %cst_96 {dimension_numbers = #tpu.dot_dimension_numbers<[1], [0], [0], [1], [0, 0, 1, 1], [], []>} : vector<8x8xbf16>, vector<8x256xbf16>, vector<8x256xf32> -> vector<8x256xf32>
    %150 = arith.addf %142, %149 : vector<8x256xf32>
    %151 = vector.extract_strided_slice %118 {offsets = [0, 128], sizes = [8, 256], strides = [1, 1]} : vector<8x512xbf16> to vector<8x256xbf16>
    %c1_97 = arith.constant 1 : index
    %c4_98 = arith.constant 4 : index
    %c0_99 = arith.constant 0 : index
    %c0_100 = arith.constant 0 : index
    %152 = vector.load %arg2[%c1_97, %c4_98, %c0_99, %c0_100] : memref<5x9x8x8xbf16, #tpu.memory_space<vmem>>, vector<1x1x8x8xbf16>
    %153 = vector.shape_cast %152 : vector<1x1x8x8xbf16> to vector<8x8xbf16>
    %cst_101 = arith.constant dense<0.000000e+00> : vector<8x256xf32>
    %154 = tpu.matmul %153, %151, %cst_101 {dimension_numbers = #tpu.dot_dimension_numbers<[1], [0], [0], [1], [0, 0, 1, 1], [], []>} : vector<8x8xbf16>, vector<8x256xbf16>, vector<8x256xf32> -> vector<8x256xf32>
    %155 = arith.addf %150, %154 : vector<8x256xf32>
    %156 = vector.extract_strided_slice %118 {offsets = [0, 129], sizes = [8, 256], strides = [1, 1]} : vector<8x512xbf16> to vector<8x256xbf16>
    %cst_102 = arith.constant 0.000000e+00 : f32
    %157 = arith.truncf %cst_102 : f32 to bf16
    %158 = vector.broadcast %157 : bf16 to vector<8x256xbf16>
    %159 = arith.select %20, %158, %156 : vector<8x256xi1>, vector<8x256xbf16>
    %c1_103 = arith.constant 1 : index
    %c5_104 = arith.constant 5 : index
    %c0_105 = arith.constant 0 : index
    %c0_106 = arith.constant 0 : index
    %160 = vector.load %arg2[%c1_103, %c5_104, %c0_105, %c0_106] : memref<5x9x8x8xbf16, #tpu.memory_space<vmem>>, vector<1x1x8x8xbf16>
    %161 = vector.shape_cast %160 : vector<1x1x8x8xbf16> to vector<8x8xbf16>
    %cst_107 = arith.constant dense<0.000000e+00> : vector<8x256xf32>
    %162 = tpu.matmul %161, %159, %cst_107 {dimension_numbers = #tpu.dot_dimension_numbers<[1], [0], [0], [1], [0, 0, 1, 1], [], []>} : vector<8x8xbf16>, vector<8x256xbf16>, vector<8x256xf32> -> vector<8x256xf32>
    %163 = arith.addf %155, %162 : vector<8x256xf32>
    %164 = vector.extract_strided_slice %118 {offsets = [0, 143], sizes = [8, 256], strides = [1, 1]} : vector<8x512xbf16> to vector<8x256xbf16>
    %cst_108 = arith.constant 0.000000e+00 : f32
    %165 = arith.truncf %cst_108 : f32 to bf16
    %166 = vector.broadcast %165 : bf16 to vector<8x256xbf16>
    %167 = arith.select %18, %166, %164 : vector<8x256xi1>, vector<8x256xbf16>
    %c1_109 = arith.constant 1 : index
    %c6_110 = arith.constant 6 : index
    %c0_111 = arith.constant 0 : index
    %c0_112 = arith.constant 0 : index
    %168 = vector.load %arg2[%c1_109, %c6_110, %c0_111, %c0_112] : memref<5x9x8x8xbf16, #tpu.memory_space<vmem>>, vector<1x1x8x8xbf16>
    %169 = vector.shape_cast %168 : vector<1x1x8x8xbf16> to vector<8x8xbf16>
    %cst_113 = arith.constant dense<0.000000e+00> : vector<8x256xf32>
    %170 = tpu.matmul %169, %167, %cst_113 {dimension_numbers = #tpu.dot_dimension_numbers<[1], [0], [0], [1], [0, 0, 1, 1], [], []>} : vector<8x8xbf16>, vector<8x256xbf16>, vector<8x256xf32> -> vector<8x256xf32>
    %171 = arith.addf %163, %170 : vector<8x256xf32>
    %172 = vector.extract_strided_slice %118 {offsets = [0, 144], sizes = [8, 256], strides = [1, 1]} : vector<8x512xbf16> to vector<8x256xbf16>
    %c1_114 = arith.constant 1 : index
    %c7_115 = arith.constant 7 : index
    %c0_116 = arith.constant 0 : index
    %c0_117 = arith.constant 0 : index
    %173 = vector.load %arg2[%c1_114, %c7_115, %c0_116, %c0_117] : memref<5x9x8x8xbf16, #tpu.memory_space<vmem>>, vector<1x1x8x8xbf16>
    %174 = vector.shape_cast %173 : vector<1x1x8x8xbf16> to vector<8x8xbf16>
    %cst_118 = arith.constant dense<0.000000e+00> : vector<8x256xf32>
    %175 = tpu.matmul %174, %172, %cst_118 {dimension_numbers = #tpu.dot_dimension_numbers<[1], [0], [0], [1], [0, 0, 1, 1], [], []>} : vector<8x8xbf16>, vector<8x256xbf16>, vector<8x256xf32> -> vector<8x256xf32>
    %176 = arith.addf %171, %175 : vector<8x256xf32>
    %177 = vector.extract_strided_slice %118 {offsets = [0, 145], sizes = [8, 256], strides = [1, 1]} : vector<8x512xbf16> to vector<8x256xbf16>
    %cst_119 = arith.constant 0.000000e+00 : f32
    %178 = arith.truncf %cst_119 : f32 to bf16
    %179 = vector.broadcast %178 : bf16 to vector<8x256xbf16>
    %180 = arith.select %20, %179, %177 : vector<8x256xi1>, vector<8x256xbf16>
    %c1_120 = arith.constant 1 : index
    %c8_121 = arith.constant 8 : index
    %c0_122 = arith.constant 0 : index
    %c0_123 = arith.constant 0 : index
    %181 = vector.load %arg2[%c1_120, %c8_121, %c0_122, %c0_123] : memref<5x9x8x8xbf16, #tpu.memory_space<vmem>>, vector<1x1x8x8xbf16>
    %182 = vector.shape_cast %181 : vector<1x1x8x8xbf16> to vector<8x8xbf16>
    %cst_124 = arith.constant dense<0.000000e+00> : vector<8x256xf32>
    %183 = tpu.matmul %182, %180, %cst_124 {dimension_numbers = #tpu.dot_dimension_numbers<[1], [0], [0], [1], [0, 0, 1, 1], [], []>} : vector<8x8xbf16>, vector<8x256xbf16>, vector<8x256xf32> -> vector<8x256xf32>
    %184 = arith.addf %176, %183 : vector<8x256xf32>
    %185 = vector.broadcast %120 : vector<8x1xf32> to vector<8x256xf32>
    %186 = arith.addf %184, %185 : vector<8x256xf32>
    %cst_125 = arith.constant 0.000000e+00 : f32
    %187 = vector.broadcast %cst_125 : f32 to vector<8x256xf32>
    %188 = arith.maximumf %186, %187 : vector<8x256xf32>
    %c8_126 = arith.constant 8 : index
    %c128_127 = arith.constant 128 : index
    %189 = vector.load %arg6[%c8_126, %c128_127] : memref<40x512xf32, #tpu.memory_space<vmem>>, vector<8x256xf32>
    tpu.vector_store %arg6[%c8_126, %c128_127], %188 {strides = array<i32>} : memref<40x512xf32, #tpu.memory_space<vmem>>, vector<8x256xf32>,
    %c0_128 = arith.constant 0 : index
    %c2_129 = arith.constant 2 : index
    %c0_130 = arith.constant 0 : index
    %c0_131 = arith.constant 0 : index
    %190 = vector.load %arg1[%c0_128, %c2_129, %c0_130, %c0_131] : memref<1x5x8x512xbf16, #tpu.memory_space<vmem>>, vector<1x1x8x512xbf16>
    %191 = vector.shape_cast %190 : vector<1x1x8x512xbf16> to vector<8x512xbf16>
    %c2_132 = arith.constant 2 : index
    %c0_133 = arith.constant 0 : index
    %c0_134 = arith.constant 0 : index
    %192 = vector.load %arg4[%c2_132, %c0_133, %c0_134] : memref<6x8x1xf32, #tpu.memory_space<vmem>>, vector<1x8x1xf32>
    %193 = vector.shape_cast %192 : vector<1x8x1xf32> to vector<8x1xf32>
    %cst_135 = arith.constant 0.000000e+00 : f32
    %194 = vector.broadcast %cst_135 : f32 to vector<8x256xf32>
    %195 = vector.extract_strided_slice %191 {offsets = [0, 111], sizes = [8, 256], strides = [1, 1]} : vector<8x512xbf16> to vector<8x256xbf16>
    %cst_136 = arith.constant 0.000000e+00 : f32
    %196 = arith.truncf %cst_136 : f32 to bf16
    %197 = vector.broadcast %196 : bf16 to vector<8x256xbf16>
    %198 = arith.select %18, %197, %195 : vector<8x256xi1>, vector<8x256xbf16>
    %c2_137 = arith.constant 2 : index
    %c0_138 = arith.constant 0 : index
    %c0_139 = arith.constant 0 : index
    %c0_140 = arith.constant 0 : index
    %199 = vector.load %arg2[%c2_137, %c0_138, %c0_139, %c0_140] : memref<5x9x8x8xbf16, #tpu.memory_space<vmem>>, vector<1x1x8x8xbf16>
    %200 = vector.shape_cast %199 : vector<1x1x8x8xbf16> to vector<8x8xbf16>
    %cst_141 = arith.constant dense<0.000000e+00> : vector<8x256xf32>
    %201 = tpu.matmul %200, %198, %cst_141 {dimension_numbers = #tpu.dot_dimension_numbers<[1], [0], [0], [1], [0, 0, 1, 1], [], []>} : vector<8x8xbf16>, vector<8x256xbf16>, vector<8x256xf32> -> vector<8x256xf32>
    %202 = arith.addf %194, %201 : vector<8x256xf32>
    %203 = vector.extract_strided_slice %191 {offsets = [0, 112], sizes = [8, 256], strides = [1, 1]} : vector<8x512xbf16> to vector<8x256xbf16>
    %c2_142 = arith.constant 2 : index
    %c1_143 = arith.constant 1 : index
    %c0_144 = arith.constant 0 : index
    %c0_145 = arith.constant 0 : index
    %204 = vector.load %arg2[%c2_142, %c1_143, %c0_144, %c0_145] : memref<5x9x8x8xbf16, #tpu.memory_space<vmem>>, vector<1x1x8x8xbf16>
    %205 = vector.shape_cast %204 : vector<1x1x8x8xbf16> to vector<8x8xbf16>
    %cst_146 = arith.constant dense<0.000000e+00> : vector<8x256xf32>
    %206 = tpu.matmul %205, %203, %cst_146 {dimension_numbers = #tpu.dot_dimension_numbers<[1], [0], [0], [1], [0, 0, 1, 1], [], []>} : vector<8x8xbf16>, vector<8x256xbf16>, vector<8x256xf32> -> vector<8x256xf32>
    %207 = arith.addf %202, %206 : vector<8x256xf32>
    %208 = vector.extract_strided_slice %191 {offsets = [0, 113], sizes = [8, 256], strides = [1, 1]} : vector<8x512xbf16> to vector<8x256xbf16>
    %cst_147 = arith.constant 0.000000e+00 : f32
    %209 = arith.truncf %cst_147 : f32 to bf16
    %210 = vector.broadcast %209 : bf16 to vector<8x256xbf16>
    %211 = arith.select %20, %210, %208 : vector<8x256xi1>, vector<8x256xbf16>
    %c2_148 = arith.constant 2 : index
    %c2_149 = arith.constant 2 : index
    %c0_150 = arith.constant 0 : index
    %c0_151 = arith.constant 0 : index
    %212 = vector.load %arg2[%c2_148, %c2_149, %c0_150, %c0_151] : memref<5x9x8x8xbf16, #tpu.memory_space<vmem>>, vector<1x1x8x8xbf16>
    %213 = vector.shape_cast %212 : vector<1x1x8x8xbf16> to vector<8x8xbf16>
    %cst_152 = arith.constant dense<0.000000e+00> : vector<8x256xf32>
    %214 = tpu.matmul %213, %211, %cst_152 {dimension_numbers = #tpu.dot_dimension_numbers<[1], [0], [0], [1], [0, 0, 1, 1], [], []>} : vector<8x8xbf16>, vector<8x256xbf16>, vector<8x256xf32> -> vector<8x256xf32>
    %215 = arith.addf %207, %214 : vector<8x256xf32>
    %216 = vector.extract_strided_slice %191 {offsets = [0, 127], sizes = [8, 256], strides = [1, 1]} : vector<8x512xbf16> to vector<8x256xbf16>
    %cst_153 = arith.constant 0.000000e+00 : f32
    %217 = arith.truncf %cst_153 : f32 to bf16
    %218 = vector.broadcast %217 : bf16 to vector<8x256xbf16>
    %219 = arith.select %18, %218, %216 : vector<8x256xi1>, vector<8x256xbf16>
    %c2_154 = arith.constant 2 : index
    %c3_155 = arith.constant 3 : index
    %c0_156 = arith.constant 0 : index
    %c0_157 = arith.constant 0 : index
    %220 = vector.load %arg2[%c2_154, %c3_155, %c0_156, %c0_157] : memref<5x9x8x8xbf16, #tpu.memory_space<vmem>>, vector<1x1x8x8xbf16>
    %221 = vector.shape_cast %220 : vector<1x1x8x8xbf16> to vector<8x8xbf16>
    %cst_158 = arith.constant dense<0.000000e+00> : vector<8x256xf32>
    %222 = tpu.matmul %221, %219, %cst_158 {dimension_numbers = #tpu.dot_dimension_numbers<[1], [0], [0], [1], [0, 0, 1, 1], [], []>} : vector<8x8xbf16>, vector<8x256xbf16>, vector<8x256xf32> -> vector<8x256xf32>
    %223 = arith.addf %215, %222 : vector<8x256xf32>
    %224 = vector.extract_strided_slice %191 {offsets = [0, 128], sizes = [8, 256], strides = [1, 1]} : vector<8x512xbf16> to vector<8x256xbf16>
    %c2_159 = arith.constant 2 : index
    %c4_160 = arith.constant 4 : index
    %c0_161 = arith.constant 0 : index
    %c0_162 = arith.constant 0 : index
    %225 = vector.load %arg2[%c2_159, %c4_160, %c0_161, %c0_162] : memref<5x9x8x8xbf16, #tpu.memory_space<vmem>>, vector<1x1x8x8xbf16>
    %226 = vector.shape_cast %225 : vector<1x1x8x8xbf16> to vector<8x8xbf16>
    %cst_163 = arith.constant dense<0.000000e+00> : vector<8x256xf32>
    %227 = tpu.matmul %226, %224, %cst_163 {dimension_numbers = #tpu.dot_dimension_numbers<[1], [0], [0], [1], [0, 0, 1, 1], [], []>} : vector<8x8xbf16>, vector<8x256xbf16>, vector<8x256xf32> -> vector<8x256xf32>
    %228 = arith.addf %223, %227 : vector<8x256xf32>
    %229 = vector.extract_strided_slice %191 {offsets = [0, 129], sizes = [8, 256], strides = [1, 1]} : vector<8x512xbf16> to vector<8x256xbf16>
    %cst_164 = arith.constant 0.000000e+00 : f32
    %230 = arith.truncf %cst_164 : f32 to bf16
    %231 = vector.broadcast %230 : bf16 to vector<8x256xbf16>
    %232 = arith.select %20, %231, %229 : vector<8x256xi1>, vector<8x256xbf16>
    %c2_165 = arith.constant 2 : index
    %c5_166 = arith.constant 5 : index
    %c0_167 = arith.constant 0 : index
    %c0_168 = arith.constant 0 : index
    %233 = vector.load %arg2[%c2_165, %c5_166, %c0_167, %c0_168] : memref<5x9x8x8xbf16, #tpu.memory_space<vmem>>, vector<1x1x8x8xbf16>
    %234 = vector.shape_cast %233 : vector<1x1x8x8xbf16> to vector<8x8xbf16>
    %cst_169 = arith.constant dense<0.000000e+00> : vector<8x256xf32>
    %235 = tpu.matmul %234, %232, %cst_169 {dimension_numbers = #tpu.dot_dimension_numbers<[1], [0], [0], [1], [0, 0, 1, 1], [], []>} : vector<8x8xbf16>, vector<8x256xbf16>, vector<8x256xf32> -> vector<8x256xf32>
    %236 = arith.addf %228, %235 : vector<8x256xf32>
    %237 = vector.extract_strided_slice %191 {offsets = [0, 143], sizes = [8, 256], strides = [1, 1]} : vector<8x512xbf16> to vector<8x256xbf16>
    %cst_170 = arith.constant 0.000000e+00 : f32
    %238 = arith.truncf %cst_170 : f32 to bf16
    %239 = vector.broadcast %238 : bf16 to vector<8x256xbf16>
    %240 = arith.select %18, %239, %237 : vector<8x256xi1>, vector<8x256xbf16>
    %c2_171 = arith.constant 2 : index
    %c6_172 = arith.constant 6 : index
    %c0_173 = arith.constant 0 : index
    %c0_174 = arith.constant 0 : index
    %241 = vector.load %arg2[%c2_171, %c6_172, %c0_173, %c0_174] : memref<5x9x8x8xbf16, #tpu.memory_space<vmem>>, vector<1x1x8x8xbf16>
    %242 = vector.shape_cast %241 : vector<1x1x8x8xbf16> to vector<8x8xbf16>
    %cst_175 = arith.constant dense<0.000000e+00> : vector<8x256xf32>
    %243 = tpu.matmul %242, %240, %cst_175 {dimension_numbers = #tpu.dot_dimension_numbers<[1], [0], [0], [1], [0, 0, 1, 1], [], []>} : vector<8x8xbf16>, vector<8x256xbf16>, vector<8x256xf32> -> vector<8x256xf32>
    %244 = arith.addf %236, %243 : vector<8x256xf32>
    %245 = vector.extract_strided_slice %191 {offsets = [0, 144], sizes = [8, 256], strides = [1, 1]} : vector<8x512xbf16> to vector<8x256xbf16>
    %c2_176 = arith.constant 2 : index
    %c7_177 = arith.constant 7 : index
    %c0_178 = arith.constant 0 : index
    %c0_179 = arith.constant 0 : index
    %246 = vector.load %arg2[%c2_176, %c7_177, %c0_178, %c0_179] : memref<5x9x8x8xbf16, #tpu.memory_space<vmem>>, vector<1x1x8x8xbf16>
    %247 = vector.shape_cast %246 : vector<1x1x8x8xbf16> to vector<8x8xbf16>
    %cst_180 = arith.constant dense<0.000000e+00> : vector<8x256xf32>
    %248 = tpu.matmul %247, %245, %cst_180 {dimension_numbers = #tpu.dot_dimension_numbers<[1], [0], [0], [1], [0, 0, 1, 1], [], []>} : vector<8x8xbf16>, vector<8x256xbf16>, vector<8x256xf32> -> vector<8x256xf32>
    %249 = arith.addf %244, %248 : vector<8x256xf32>
    %250 = vector.extract_strided_slice %191 {offsets = [0, 145], sizes = [8, 256], strides = [1, 1]} : vector<8x512xbf16> to vector<8x256xbf16>
    %cst_181 = arith.constant 0.000000e+00 : f32
    %251 = arith.truncf %cst_181 : f32 to bf16
    %252 = vector.broadcast %251 : bf16 to vector<8x256xbf16>
    %253 = arith.select %20, %252, %250 : vector<8x256xi1>, vector<8x256xbf16>
    %c2_182 = arith.constant 2 : index
    %c8_183 = arith.constant 8 : index
    %c0_184 = arith.constant 0 : index
    %c0_185 = arith.constant 0 : index
    %254 = vector.load %arg2[%c2_182, %c8_183, %c0_184, %c0_185] : memref<5x9x8x8xbf16, #tpu.memory_space<vmem>>, vector<1x1x8x8xbf16>
    %255 = vector.shape_cast %254 : vector<1x1x8x8xbf16> to vector<8x8xbf16>
    %cst_186 = arith.constant dense<0.000000e+00> : vector<8x256xf32>
    %256 = tpu.matmul %255, %253, %cst_186 {dimension_numbers = #tpu.dot_dimension_numbers<[1], [0], [0], [1], [0, 0, 1, 1], [], []>} : vector<8x8xbf16>, vector<8x256xbf16>, vector<8x256xf32> -> vector<8x256xf32>
    %257 = arith.addf %249, %256 : vector<8x256xf32>
    %258 = vector.broadcast %193 : vector<8x1xf32> to vector<8x256xf32>
    %259 = arith.addf %257, %258 : vector<8x256xf32>
    %cst_187 = arith.constant 0.000000e+00 : f32
    %260 = vector.broadcast %cst_187 : f32 to vector<8x256xf32>
    %261 = arith.maximumf %259, %260 : vector<8x256xf32>
    %c16 = arith.constant 16 : index
    %c128_188 = arith.constant 128 : index
    %262 = vector.load %arg6[%c16, %c128_188] : memref<40x512xf32, #tpu.memory_space<vmem>>, vector<8x256xf32>
    tpu.vector_store %arg6[%c16, %c128_188], %261 {strides = array<i32>} : memref<40x512xf32, #tpu.memory_space<vmem>>, vector<8x256xf32>,
    %c0_189 = arith.constant 0 : index
    %c3_190 = arith.constant 3 : index
    %c0_191 = arith.constant 0 : index
    %c0_192 = arith.constant 0 : index
    %263 = vector.load %arg1[%c0_189, %c3_190, %c0_191, %c0_192] : memref<1x5x8x512xbf16, #tpu.memory_space<vmem>>, vector<1x1x8x512xbf16>
    %264 = vector.shape_cast %263 : vector<1x1x8x512xbf16> to vector<8x512xbf16>
    %c3_193 = arith.constant 3 : index
    %c0_194 = arith.constant 0 : index
    %c0_195 = arith.constant 0 : index
    %265 = vector.load %arg4[%c3_193, %c0_194, %c0_195] : memref<6x8x1xf32, #tpu.memory_space<vmem>>, vector<1x8x1xf32>
    %266 = vector.shape_cast %265 : vector<1x8x1xf32> to vector<8x1xf32>
    %cst_196 = arith.constant 0.000000e+00 : f32
    %267 = vector.broadcast %cst_196 : f32 to vector<8x256xf32>
    %268 = vector.extract_strided_slice %264 {offsets = [0, 111], sizes = [8, 256], strides = [1, 1]} : vector<8x512xbf16> to vector<8x256xbf16>
    %cst_197 = arith.constant 0.000000e+00 : f32
    %269 = arith.truncf %cst_197 : f32 to bf16
    %270 = vector.broadcast %269 : bf16 to vector<8x256xbf16>
    %271 = arith.select %18, %270, %268 : vector<8x256xi1>, vector<8x256xbf16>
    %c3_198 = arith.constant 3 : index
    %c0_199 = arith.constant 0 : index
    %c0_200 = arith.constant 0 : index
    %c0_201 = arith.constant 0 : index
    %272 = vector.load %arg2[%c3_198, %c0_199, %c0_200, %c0_201] : memref<5x9x8x8xbf16, #tpu.memory_space<vmem>>, vector<1x1x8x8xbf16>
    %273 = vector.shape_cast %272 : vector<1x1x8x8xbf16> to vector<8x8xbf16>
    %cst_202 = arith.constant dense<0.000000e+00> : vector<8x256xf32>
    %274 = tpu.matmul %273, %271, %cst_202 {dimension_numbers = #tpu.dot_dimension_numbers<[1], [0], [0], [1], [0, 0, 1, 1], [], []>} : vector<8x8xbf16>, vector<8x256xbf16>, vector<8x256xf32> -> vector<8x256xf32>
    %275 = arith.addf %267, %274 : vector<8x256xf32>
    %276 = vector.extract_strided_slice %264 {offsets = [0, 112], sizes = [8, 256], strides = [1, 1]} : vector<8x512xbf16> to vector<8x256xbf16>
    %c3_203 = arith.constant 3 : index
    %c1_204 = arith.constant 1 : index
    %c0_205 = arith.constant 0 : index
    %c0_206 = arith.constant 0 : index
    %277 = vector.load %arg2[%c3_203, %c1_204, %c0_205, %c0_206] : memref<5x9x8x8xbf16, #tpu.memory_space<vmem>>, vector<1x1x8x8xbf16>
    %278 = vector.shape_cast %277 : vector<1x1x8x8xbf16> to vector<8x8xbf16>
    %cst_207 = arith.constant dense<0.000000e+00> : vector<8x256xf32>
    %279 = tpu.matmul %278, %276, %cst_207 {dimension_numbers = #tpu.dot_dimension_numbers<[1], [0], [0], [1], [0, 0, 1, 1], [], []>} : vector<8x8xbf16>, vector<8x256xbf16>, vector<8x256xf32> -> vector<8x256xf32>
    %280 = arith.addf %275, %279 : vector<8x256xf32>
    %281 = vector.extract_strided_slice %264 {offsets = [0, 113], sizes = [8, 256], strides = [1, 1]} : vector<8x512xbf16> to vector<8x256xbf16>
    %cst_208 = arith.constant 0.000000e+00 : f32
    %282 = arith.truncf %cst_208 : f32 to bf16
    %283 = vector.broadcast %282 : bf16 to vector<8x256xbf16>
    %284 = arith.select %20, %283, %281 : vector<8x256xi1>, vector<8x256xbf16>
    %c3_209 = arith.constant 3 : index
    %c2_210 = arith.constant 2 : index
    %c0_211 = arith.constant 0 : index
    %c0_212 = arith.constant 0 : index
    %285 = vector.load %arg2[%c3_209, %c2_210, %c0_211, %c0_212] : memref<5x9x8x8xbf16, #tpu.memory_space<vmem>>, vector<1x1x8x8xbf16>
    %286 = vector.shape_cast %285 : vector<1x1x8x8xbf16> to vector<8x8xbf16>
    %cst_213 = arith.constant dense<0.000000e+00> : vector<8x256xf32>
    %287 = tpu.matmul %286, %284, %cst_213 {dimension_numbers = #tpu.dot_dimension_numbers<[1], [0], [0], [1], [0, 0, 1, 1], [], []>} : vector<8x8xbf16>, vector<8x256xbf16>, vector<8x256xf32> -> vector<8x256xf32>
    %288 = arith.addf %280, %287 : vector<8x256xf32>
    %289 = vector.extract_strided_slice %264 {offsets = [0, 127], sizes = [8, 256], strides = [1, 1]} : vector<8x512xbf16> to vector<8x256xbf16>
    %cst_214 = arith.constant 0.000000e+00 : f32
    %290 = arith.truncf %cst_214 : f32 to bf16
    %291 = vector.broadcast %290 : bf16 to vector<8x256xbf16>
    %292 = arith.select %18, %291, %289 : vector<8x256xi1>, vector<8x256xbf16>
    %c3_215 = arith.constant 3 : index
    %c3_216 = arith.constant 3 : index
    %c0_217 = arith.constant 0 : index
    %c0_218 = arith.constant 0 : index
    %293 = vector.load %arg2[%c3_215, %c3_216, %c0_217, %c0_218] : memref<5x9x8x8xbf16, #tpu.memory_space<vmem>>, vector<1x1x8x8xbf16>
    %294 = vector.shape_cast %293 : vector<1x1x8x8xbf16> to vector<8x8xbf16>
    %cst_219 = arith.constant dense<0.000000e+00> : vector<8x256xf32>
    %295 = tpu.matmul %294, %292, %cst_219 {dimension_numbers = #tpu.dot_dimension_numbers<[1], [0], [0], [1], [0, 0, 1, 1], [], []>} : vector<8x8xbf16>, vector<8x256xbf16>, vector<8x256xf32> -> vector<8x256xf32>
    %296 = arith.addf %288, %295 : vector<8x256xf32>
    %297 = vector.extract_strided_slice %264 {offsets = [0, 128], sizes = [8, 256], strides = [1, 1]} : vector<8x512xbf16> to vector<8x256xbf16>
    %c3_220 = arith.constant 3 : index
    %c4_221 = arith.constant 4 : index
    %c0_222 = arith.constant 0 : index
    %c0_223 = arith.constant 0 : index
    %298 = vector.load %arg2[%c3_220, %c4_221, %c0_222, %c0_223] : memref<5x9x8x8xbf16, #tpu.memory_space<vmem>>, vector<1x1x8x8xbf16>
    %299 = vector.shape_cast %298 : vector<1x1x8x8xbf16> to vector<8x8xbf16>
    %cst_224 = arith.constant dense<0.000000e+00> : vector<8x256xf32>
    %300 = tpu.matmul %299, %297, %cst_224 {dimension_numbers = #tpu.dot_dimension_numbers<[1], [0], [0], [1], [0, 0, 1, 1], [], []>} : vector<8x8xbf16>, vector<8x256xbf16>, vector<8x256xf32> -> vector<8x256xf32>
    %301 = arith.addf %296, %300 : vector<8x256xf32>
    %302 = vector.extract_strided_slice %264 {offsets = [0, 129], sizes = [8, 256], strides = [1, 1]} : vector<8x512xbf16> to vector<8x256xbf16>
    %cst_225 = arith.constant 0.000000e+00 : f32
    %303 = arith.truncf %cst_225 : f32 to bf16
    %304 = vector.broadcast %303 : bf16 to vector<8x256xbf16>
    %305 = arith.select %20, %304, %302 : vector<8x256xi1>, vector<8x256xbf16>
    %c3_226 = arith.constant 3 : index
    %c5_227 = arith.constant 5 : index
    %c0_228 = arith.constant 0 : index
    %c0_229 = arith.constant 0 : index
    %306 = vector.load %arg2[%c3_226, %c5_227, %c0_228, %c0_229] : memref<5x9x8x8xbf16, #tpu.memory_space<vmem>>, vector<1x1x8x8xbf16>
    %307 = vector.shape_cast %306 : vector<1x1x8x8xbf16> to vector<8x8xbf16>
    %cst_230 = arith.constant dense<0.000000e+00> : vector<8x256xf32>
    %308 = tpu.matmul %307, %305, %cst_230 {dimension_numbers = #tpu.dot_dimension_numbers<[1], [0], [0], [1], [0, 0, 1, 1], [], []>} : vector<8x8xbf16>, vector<8x256xbf16>, vector<8x256xf32> -> vector<8x256xf32>
    %309 = arith.addf %301, %308 : vector<8x256xf32>
    %310 = vector.extract_strided_slice %264 {offsets = [0, 143], sizes = [8, 256], strides = [1, 1]} : vector<8x512xbf16> to vector<8x256xbf16>
    %cst_231 = arith.constant 0.000000e+00 : f32
    %311 = arith.truncf %cst_231 : f32 to bf16
    %312 = vector.broadcast %311 : bf16 to vector<8x256xbf16>
    %313 = arith.select %18, %312, %310 : vector<8x256xi1>, vector<8x256xbf16>
    %c3_232 = arith.constant 3 : index
    %c6_233 = arith.constant 6 : index
    %c0_234 = arith.constant 0 : index
    %c0_235 = arith.constant 0 : index
    %314 = vector.load %arg2[%c3_232, %c6_233, %c0_234, %c0_235] : memref<5x9x8x8xbf16, #tpu.memory_space<vmem>>, vector<1x1x8x8xbf16>
    %315 = vector.shape_cast %314 : vector<1x1x8x8xbf16> to vector<8x8xbf16>
    %cst_236 = arith.constant dense<0.000000e+00> : vector<8x256xf32>
    %316 = tpu.matmul %315, %313, %cst_236 {dimension_numbers = #tpu.dot_dimension_numbers<[1], [0], [0], [1], [0, 0, 1, 1], [], []>} : vector<8x8xbf16>, vector<8x256xbf16>, vector<8x256xf32> -> vector<8x256xf32>
    %317 = arith.addf %309, %316 : vector<8x256xf32>
    %318 = vector.extract_strided_slice %264 {offsets = [0, 144], sizes = [8, 256], strides = [1, 1]} : vector<8x512xbf16> to vector<8x256xbf16>
    %c3_237 = arith.constant 3 : index
    %c7_238 = arith.constant 7 : index
    %c0_239 = arith.constant 0 : index
    %c0_240 = arith.constant 0 : index
    %319 = vector.load %arg2[%c3_237, %c7_238, %c0_239, %c0_240] : memref<5x9x8x8xbf16, #tpu.memory_space<vmem>>, vector<1x1x8x8xbf16>
    %320 = vector.shape_cast %319 : vector<1x1x8x8xbf16> to vector<8x8xbf16>
    %cst_241 = arith.constant dense<0.000000e+00> : vector<8x256xf32>
    %321 = tpu.matmul %320, %318, %cst_241 {dimension_numbers = #tpu.dot_dimension_numbers<[1], [0], [0], [1], [0, 0, 1, 1], [], []>} : vector<8x8xbf16>, vector<8x256xbf16>, vector<8x256xf32> -> vector<8x256xf32>
    %322 = arith.addf %317, %321 : vector<8x256xf32>
    %323 = vector.extract_strided_slice %264 {offsets = [0, 145], sizes = [8, 256], strides = [1, 1]} : vector<8x512xbf16> to vector<8x256xbf16>
    %cst_242 = arith.constant 0.000000e+00 : f32
    %324 = arith.truncf %cst_242 : f32 to bf16
    %325 = vector.broadcast %324 : bf16 to vector<8x256xbf16>
    %326 = arith.select %20, %325, %323 : vector<8x256xi1>, vector<8x256xbf16>
    %c3_243 = arith.constant 3 : index
    %c8_244 = arith.constant 8 : index
    %c0_245 = arith.constant 0 : index
    %c0_246 = arith.constant 0 : index
    %327 = vector.load %arg2[%c3_243, %c8_244, %c0_245, %c0_246] : memref<5x9x8x8xbf16, #tpu.memory_space<vmem>>, vector<1x1x8x8xbf16>
    %328 = vector.shape_cast %327 : vector<1x1x8x8xbf16> to vector<8x8xbf16>
    %cst_247 = arith.constant dense<0.000000e+00> : vector<8x256xf32>
    %329 = tpu.matmul %328, %326, %cst_247 {dimension_numbers = #tpu.dot_dimension_numbers<[1], [0], [0], [1], [0, 0, 1, 1], [], []>} : vector<8x8xbf16>, vector<8x256xbf16>, vector<8x256xf32> -> vector<8x256xf32>
    %330 = arith.addf %322, %329 : vector<8x256xf32>
    %331 = vector.broadcast %266 : vector<8x1xf32> to vector<8x256xf32>
    %332 = arith.addf %330, %331 : vector<8x256xf32>
    %cst_248 = arith.constant 0.000000e+00 : f32
    %333 = vector.broadcast %cst_248 : f32 to vector<8x256xf32>
    %334 = arith.maximumf %332, %333 : vector<8x256xf32>
    %c24 = arith.constant 24 : index
    %c128_249 = arith.constant 128 : index
    %335 = vector.load %arg6[%c24, %c128_249] : memref<40x512xf32, #tpu.memory_space<vmem>>, vector<8x256xf32>
    tpu.vector_store %arg6[%c24, %c128_249], %334 {strides = array<i32>} : memref<40x512xf32, #tpu.memory_space<vmem>>, vector<8x256xf32>,
    %c0_250 = arith.constant 0 : index
    %c4_251 = arith.constant 4 : index
    %c0_252 = arith.constant 0 : index
    %c0_253 = arith.constant 0 : index
    %336 = vector.load %arg1[%c0_250, %c4_251, %c0_252, %c0_253] : memref<1x5x8x512xbf16, #tpu.memory_space<vmem>>, vector<1x1x8x512xbf16>
    %337 = vector.shape_cast %336 : vector<1x1x8x512xbf16> to vector<8x512xbf16>
    %c4_254 = arith.constant 4 : index
    %c0_255 = arith.constant 0 : index
    %c0_256 = arith.constant 0 : index
    %338 = vector.load %arg4[%c4_254, %c0_255, %c0_256] : memref<6x8x1xf32, #tpu.memory_space<vmem>>, vector<1x8x1xf32>
    %339 = vector.shape_cast %338 : vector<1x8x1xf32> to vector<8x1xf32>
    %cst_257 = arith.constant 0.000000e+00 : f32
    %340 = vector.broadcast %cst_257 : f32 to vector<8x256xf32>
    %341 = vector.extract_strided_slice %337 {offsets = [0, 111], sizes = [8, 256], strides = [1, 1]} : vector<8x512xbf16> to vector<8x256xbf16>
    %cst_258 = arith.constant 0.000000e+00 : f32
    %342 = arith.truncf %cst_258 : f32 to bf16
    %343 = vector.broadcast %342 : bf16 to vector<8x256xbf16>
    %344 = arith.select %18, %343, %341 : vector<8x256xi1>, vector<8x256xbf16>
    %c4_259 = arith.constant 4 : index
    %c0_260 = arith.constant 0 : index
    %c0_261 = arith.constant 0 : index
    %c0_262 = arith.constant 0 : index
    %345 = vector.load %arg2[%c4_259, %c0_260, %c0_261, %c0_262] : memref<5x9x8x8xbf16, #tpu.memory_space<vmem>>, vector<1x1x8x8xbf16>
    %346 = vector.shape_cast %345 : vector<1x1x8x8xbf16> to vector<8x8xbf16>
    %cst_263 = arith.constant dense<0.000000e+00> : vector<8x256xf32>
    %347 = tpu.matmul %346, %344, %cst_263 {dimension_numbers = #tpu.dot_dimension_numbers<[1], [0], [0], [1], [0, 0, 1, 1], [], []>} : vector<8x8xbf16>, vector<8x256xbf16>, vector<8x256xf32> -> vector<8x256xf32>
    %348 = arith.addf %340, %347 : vector<8x256xf32>
    %349 = vector.extract_strided_slice %337 {offsets = [0, 112], sizes = [8, 256], strides = [1, 1]} : vector<8x512xbf16> to vector<8x256xbf16>
    %c4_264 = arith.constant 4 : index
    %c1_265 = arith.constant 1 : index
    %c0_266 = arith.constant 0 : index
    %c0_267 = arith.constant 0 : index
    %350 = vector.load %arg2[%c4_264, %c1_265, %c0_266, %c0_267] : memref<5x9x8x8xbf16, #tpu.memory_space<vmem>>, vector<1x1x8x8xbf16>
    %351 = vector.shape_cast %350 : vector<1x1x8x8xbf16> to vector<8x8xbf16>
    %cst_268 = arith.constant dense<0.000000e+00> : vector<8x256xf32>
    %352 = tpu.matmul %351, %349, %cst_268 {dimension_numbers = #tpu.dot_dimension_numbers<[1], [0], [0], [1], [0, 0, 1, 1], [], []>} : vector<8x8xbf16>, vector<8x256xbf16>, vector<8x256xf32> -> vector<8x256xf32>
    %353 = arith.addf %348, %352 : vector<8x256xf32>
    %354 = vector.extract_strided_slice %337 {offsets = [0, 113], sizes = [8, 256], strides = [1, 1]} : vector<8x512xbf16> to vector<8x256xbf16>
    %cst_269 = arith.constant 0.000000e+00 : f32
    %355 = arith.truncf %cst_269 : f32 to bf16
    %356 = vector.broadcast %355 : bf16 to vector<8x256xbf16>
    %357 = arith.select %20, %356, %354 : vector<8x256xi1>, vector<8x256xbf16>
    %c4_270 = arith.constant 4 : index
    %c2_271 = arith.constant 2 : index
    %c0_272 = arith.constant 0 : index
    %c0_273 = arith.constant 0 : index
    %358 = vector.load %arg2[%c4_270, %c2_271, %c0_272, %c0_273] : memref<5x9x8x8xbf16, #tpu.memory_space<vmem>>, vector<1x1x8x8xbf16>
    %359 = vector.shape_cast %358 : vector<1x1x8x8xbf16> to vector<8x8xbf16>
    %cst_274 = arith.constant dense<0.000000e+00> : vector<8x256xf32>
    %360 = tpu.matmul %359, %357, %cst_274 {dimension_numbers = #tpu.dot_dimension_numbers<[1], [0], [0], [1], [0, 0, 1, 1], [], []>} : vector<8x8xbf16>, vector<8x256xbf16>, vector<8x256xf32> -> vector<8x256xf32>
    %361 = arith.addf %353, %360 : vector<8x256xf32>
    %362 = vector.extract_strided_slice %337 {offsets = [0, 127], sizes = [8, 256], strides = [1, 1]} : vector<8x512xbf16> to vector<8x256xbf16>
    %cst_275 = arith.constant 0.000000e+00 : f32
    %363 = arith.truncf %cst_275 : f32 to bf16
    %364 = vector.broadcast %363 : bf16 to vector<8x256xbf16>
    %365 = arith.select %18, %364, %362 : vector<8x256xi1>, vector<8x256xbf16>
    %c4_276 = arith.constant 4 : index
    %c3_277 = arith.constant 3 : index
    %c0_278 = arith.constant 0 : index
    %c0_279 = arith.constant 0 : index
    %366 = vector.load %arg2[%c4_276, %c3_277, %c0_278, %c0_279] : memref<5x9x8x8xbf16, #tpu.memory_space<vmem>>, vector<1x1x8x8xbf16>
    %367 = vector.shape_cast %366 : vector<1x1x8x8xbf16> to vector<8x8xbf16>
    %cst_280 = arith.constant dense<0.000000e+00> : vector<8x256xf32>
    %368 = tpu.matmul %367, %365, %cst_280 {dimension_numbers = #tpu.dot_dimension_numbers<[1], [0], [0], [1], [0, 0, 1, 1], [], []>} : vector<8x8xbf16>, vector<8x256xbf16>, vector<8x256xf32> -> vector<8x256xf32>
    %369 = arith.addf %361, %368 : vector<8x256xf32>
    %370 = vector.extract_strided_slice %337 {offsets = [0, 128], sizes = [8, 256], strides = [1, 1]} : vector<8x512xbf16> to vector<8x256xbf16>
    %c4_281 = arith.constant 4 : index
    %c4_282 = arith.constant 4 : index
    %c0_283 = arith.constant 0 : index
    %c0_284 = arith.constant 0 : index
    %371 = vector.load %arg2[%c4_281, %c4_282, %c0_283, %c0_284] : memref<5x9x8x8xbf16, #tpu.memory_space<vmem>>, vector<1x1x8x8xbf16>
    %372 = vector.shape_cast %371 : vector<1x1x8x8xbf16> to vector<8x8xbf16>
    %cst_285 = arith.constant dense<0.000000e+00> : vector<8x256xf32>
    %373 = tpu.matmul %372, %370, %cst_285 {dimension_numbers = #tpu.dot_dimension_numbers<[1], [0], [0], [1], [0, 0, 1, 1], [], []>} : vector<8x8xbf16>, vector<8x256xbf16>, vector<8x256xf32> -> vector<8x256xf32>
    %374 = arith.addf %369, %373 : vector<8x256xf32>
    %375 = vector.extract_strided_slice %337 {offsets = [0, 129], sizes = [8, 256], strides = [1, 1]} : vector<8x512xbf16> to vector<8x256xbf16>
    %cst_286 = arith.constant 0.000000e+00 : f32
    %376 = arith.truncf %cst_286 : f32 to bf16
    %377 = vector.broadcast %376 : bf16 to vector<8x256xbf16>
    %378 = arith.select %20, %377, %375 : vector<8x256xi1>, vector<8x256xbf16>
    %c4_287 = arith.constant 4 : index
    %c5_288 = arith.constant 5 : index
    %c0_289 = arith.constant 0 : index
    %c0_290 = arith.constant 0 : index
    %379 = vector.load %arg2[%c4_287, %c5_288, %c0_289, %c0_290] : memref<5x9x8x8xbf16, #tpu.memory_space<vmem>>, vector<1x1x8x8xbf16>
    %380 = vector.shape_cast %379 : vector<1x1x8x8xbf16> to vector<8x8xbf16>
    %cst_291 = arith.constant dense<0.000000e+00> : vector<8x256xf32>
    %381 = tpu.matmul %380, %378, %cst_291 {dimension_numbers = #tpu.dot_dimension_numbers<[1], [0], [0], [1], [0, 0, 1, 1], [], []>} : vector<8x8xbf16>, vector<8x256xbf16>, vector<8x256xf32> -> vector<8x256xf32>
    %382 = arith.addf %374, %381 : vector<8x256xf32>
    %383 = vector.extract_strided_slice %337 {offsets = [0, 143], sizes = [8, 256], strides = [1, 1]} : vector<8x512xbf16> to vector<8x256xbf16>
    %cst_292 = arith.constant 0.000000e+00 : f32
    %384 = arith.truncf %cst_292 : f32 to bf16
    %385 = vector.broadcast %384 : bf16 to vector<8x256xbf16>
    %386 = arith.select %18, %385, %383 : vector<8x256xi1>, vector<8x256xbf16>
    %c4_293 = arith.constant 4 : index
    %c6_294 = arith.constant 6 : index
    %c0_295 = arith.constant 0 : index
    %c0_296 = arith.constant 0 : index
    %387 = vector.load %arg2[%c4_293, %c6_294, %c0_295, %c0_296] : memref<5x9x8x8xbf16, #tpu.memory_space<vmem>>, vector<1x1x8x8xbf16>
    %388 = vector.shape_cast %387 : vector<1x1x8x8xbf16> to vector<8x8xbf16>
    %cst_297 = arith.constant dense<0.000000e+00> : vector<8x256xf32>
    %389 = tpu.matmul %388, %386, %cst_297 {dimension_numbers = #tpu.dot_dimension_numbers<[1], [0], [0], [1], [0, 0, 1, 1], [], []>} : vector<8x8xbf16>, vector<8x256xbf16>, vector<8x256xf32> -> vector<8x256xf32>
    %390 = arith.addf %382, %389 : vector<8x256xf32>
    %391 = vector.extract_strided_slice %337 {offsets = [0, 144], sizes = [8, 256], strides = [1, 1]} : vector<8x512xbf16> to vector<8x256xbf16>
    %c4_298 = arith.constant 4 : index
    %c7_299 = arith.constant 7 : index
    %c0_300 = arith.constant 0 : index
    %c0_301 = arith.constant 0 : index
    %392 = vector.load %arg2[%c4_298, %c7_299, %c0_300, %c0_301] : memref<5x9x8x8xbf16, #tpu.memory_space<vmem>>, vector<1x1x8x8xbf16>
    %393 = vector.shape_cast %392 : vector<1x1x8x8xbf16> to vector<8x8xbf16>
    %cst_302 = arith.constant dense<0.000000e+00> : vector<8x256xf32>
    %394 = tpu.matmul %393, %391, %cst_302 {dimension_numbers = #tpu.dot_dimension_numbers<[1], [0], [0], [1], [0, 0, 1, 1], [], []>} : vector<8x8xbf16>, vector<8x256xbf16>, vector<8x256xf32> -> vector<8x256xf32>
    %395 = arith.addf %390, %394 : vector<8x256xf32>
    %396 = vector.extract_strided_slice %337 {offsets = [0, 145], sizes = [8, 256], strides = [1, 1]} : vector<8x512xbf16> to vector<8x256xbf16>
    %cst_303 = arith.constant 0.000000e+00 : f32
    %397 = arith.truncf %cst_303 : f32 to bf16
    %398 = vector.broadcast %397 : bf16 to vector<8x256xbf16>
    %399 = arith.select %20, %398, %396 : vector<8x256xi1>, vector<8x256xbf16>
    %c4_304 = arith.constant 4 : index
    %c8_305 = arith.constant 8 : index
    %c0_306 = arith.constant 0 : index
    %c0_307 = arith.constant 0 : index
    %400 = vector.load %arg2[%c4_304, %c8_305, %c0_306, %c0_307] : memref<5x9x8x8xbf16, #tpu.memory_space<vmem>>, vector<1x1x8x8xbf16>
    %401 = vector.shape_cast %400 : vector<1x1x8x8xbf16> to vector<8x8xbf16>
    %cst_308 = arith.constant dense<0.000000e+00> : vector<8x256xf32>
    %402 = tpu.matmul %401, %399, %cst_308 {dimension_numbers = #tpu.dot_dimension_numbers<[1], [0], [0], [1], [0, 0, 1, 1], [], []>} : vector<8x8xbf16>, vector<8x256xbf16>, vector<8x256xf32> -> vector<8x256xf32>
    %403 = arith.addf %395, %402 : vector<8x256xf32>
    %404 = vector.broadcast %339 : vector<8x1xf32> to vector<8x256xf32>
    %405 = arith.addf %403, %404 : vector<8x256xf32>
    %cst_309 = arith.constant 0.000000e+00 : f32
    %406 = vector.broadcast %cst_309 : f32 to vector<8x256xf32>
    %407 = arith.maximumf %405, %406 : vector<8x256xf32>
    %c32 = arith.constant 32 : index
    %c128_310 = arith.constant 128 : index
    %408 = vector.load %arg6[%c32, %c128_310] : memref<40x512xf32, #tpu.memory_space<vmem>>, vector<8x256xf32>
    tpu.vector_store %arg6[%c32, %c128_310], %407 {strides = array<i32>} : memref<40x512xf32, #tpu.memory_space<vmem>>, vector<8x256xf32>,
    %c0_311 = arith.constant 0 : index
    %c0_312 = arith.constant 0 : index
    %409 = vector.load %arg6[%c0_311, %c0_312] : memref<40x512xf32, #tpu.memory_space<vmem>>, vector<40x512xf32>
    %410 = arith.truncf %409 : vector<40x512xf32> to vector<40x512xbf16>
    %c5_313 = arith.constant 5 : index
    %c0_314 = arith.constant 0 : index
    %c0_315 = arith.constant 0 : index
    %411 = vector.load %arg4[%c5_313, %c0_314, %c0_315] : memref<6x8x1xf32, #tpu.memory_space<vmem>>, vector<1x8x1xf32>
    %412 = vector.shape_cast %411 : vector<1x8x1xf32> to vector<8x1xf32>
    %cst_316 = arith.constant 0.000000e+00 : f32
    %413 = vector.broadcast %cst_316 : f32 to vector<8x256xf32>
    %414 = vector.extract_strided_slice %410 {offsets = [0, 111], sizes = [40, 256], strides = [1, 1]} : vector<40x512xbf16> to vector<40x256xbf16>
    %cst_317 = arith.constant 0.000000e+00 : f32
    %415 = arith.truncf %cst_317 : f32 to bf16
    %416 = vector.broadcast %415 : bf16 to vector<40x256xbf16>
    %417 = arith.select %39, %416, %414 : vector<40x256xi1>, vector<40x256xbf16>
    %c0_318 = arith.constant 0 : index
    %c0_319 = arith.constant 0 : index
    %c0_320 = arith.constant 0 : index
    %418 = vector.load %arg3[%c0_318, %c0_319, %c0_320] : memref<9x8x40xbf16, #tpu.memory_space<vmem>>, vector<1x8x40xbf16>
    %419 = vector.shape_cast %418 : vector<1x8x40xbf16> to vector<8x40xbf16>
    %cst_321 = arith.constant dense<0.000000e+00> : vector<8x256xf32>
    %420 = tpu.matmul %419, %417, %cst_321 {dimension_numbers = #tpu.dot_dimension_numbers<[1], [0], [0], [1], [0, 0, 1, 1], [], []>} : vector<8x40xbf16>, vector<40x256xbf16>, vector<8x256xf32> -> vector<8x256xf32>
    %421 = arith.addf %413, %420 : vector<8x256xf32>
    %422 = vector.extract_strided_slice %410 {offsets = [0, 112], sizes = [40, 256], strides = [1, 1]} : vector<40x512xbf16> to vector<40x256xbf16>
    %c1_322 = arith.constant 1 : index
    %c0_323 = arith.constant 0 : index
    %c0_324 = arith.constant 0 : index
    %423 = vector.load %arg3[%c1_322, %c0_323, %c0_324] : memref<9x8x40xbf16, #tpu.memory_space<vmem>>, vector<1x8x40xbf16>
    %424 = vector.shape_cast %423 : vector<1x8x40xbf16> to vector<8x40xbf16>
    %cst_325 = arith.constant dense<0.000000e+00> : vector<8x256xf32>
    %425 = tpu.matmul %424, %422, %cst_325 {dimension_numbers = #tpu.dot_dimension_numbers<[1], [0], [0], [1], [0, 0, 1, 1], [], []>} : vector<8x40xbf16>, vector<40x256xbf16>, vector<8x256xf32> -> vector<8x256xf32>
    %426 = arith.addf %421, %425 : vector<8x256xf32>
    %427 = vector.extract_strided_slice %410 {offsets = [0, 113], sizes = [40, 256], strides = [1, 1]} : vector<40x512xbf16> to vector<40x256xbf16>
    %cst_326 = arith.constant 0.000000e+00 : f32
    %428 = arith.truncf %cst_326 : f32 to bf16
    %429 = vector.broadcast %428 : bf16 to vector<40x256xbf16>
    %430 = arith.select %41, %429, %427 : vector<40x256xi1>, vector<40x256xbf16>
    %c2_327 = arith.constant 2 : index
    %c0_328 = arith.constant 0 : index
    %c0_329 = arith.constant 0 : index
    %431 = vector.load %arg3[%c2_327, %c0_328, %c0_329] : memref<9x8x40xbf16, #tpu.memory_space<vmem>>, vector<1x8x40xbf16>
    %432 = vector.shape_cast %431 : vector<1x8x40xbf16> to vector<8x40xbf16>
    %cst_330 = arith.constant dense<0.000000e+00> : vector<8x256xf32>
    %433 = tpu.matmul %432, %430, %cst_330 {dimension_numbers = #tpu.dot_dimension_numbers<[1], [0], [0], [1], [0, 0, 1, 1], [], []>} : vector<8x40xbf16>, vector<40x256xbf16>, vector<8x256xf32> -> vector<8x256xf32>
    %434 = arith.addf %426, %433 : vector<8x256xf32>
    %435 = vector.extract_strided_slice %410 {offsets = [0, 127], sizes = [40, 256], strides = [1, 1]} : vector<40x512xbf16> to vector<40x256xbf16>
    %cst_331 = arith.constant 0.000000e+00 : f32
    %436 = arith.truncf %cst_331 : f32 to bf16
    %437 = vector.broadcast %436 : bf16 to vector<40x256xbf16>
    %438 = arith.select %39, %437, %435 : vector<40x256xi1>, vector<40x256xbf16>
    %c3_332 = arith.constant 3 : index
    %c0_333 = arith.constant 0 : index
    %c0_334 = arith.constant 0 : index
    %439 = vector.load %arg3[%c3_332, %c0_333, %c0_334] : memref<9x8x40xbf16, #tpu.memory_space<vmem>>, vector<1x8x40xbf16>
    %440 = vector.shape_cast %439 : vector<1x8x40xbf16> to vector<8x40xbf16>
    %cst_335 = arith.constant dense<0.000000e+00> : vector<8x256xf32>
    %441 = tpu.matmul %440, %438, %cst_335 {dimension_numbers = #tpu.dot_dimension_numbers<[1], [0], [0], [1], [0, 0, 1, 1], [], []>} : vector<8x40xbf16>, vector<40x256xbf16>, vector<8x256xf32> -> vector<8x256xf32>
    %442 = arith.addf %434, %441 : vector<8x256xf32>
    %443 = vector.extract_strided_slice %410 {offsets = [0, 128], sizes = [40, 256], strides = [1, 1]} : vector<40x512xbf16> to vector<40x256xbf16>
    %c4_336 = arith.constant 4 : index
    %c0_337 = arith.constant 0 : index
    %c0_338 = arith.constant 0 : index
    %444 = vector.load %arg3[%c4_336, %c0_337, %c0_338] : memref<9x8x40xbf16, #tpu.memory_space<vmem>>, vector<1x8x40xbf16>
    %445 = vector.shape_cast %444 : vector<1x8x40xbf16> to vector<8x40xbf16>
    %cst_339 = arith.constant dense<0.000000e+00> : vector<8x256xf32>
    %446 = tpu.matmul %445, %443, %cst_339 {dimension_numbers = #tpu.dot_dimension_numbers<[1], [0], [0], [1], [0, 0, 1, 1], [], []>} : vector<8x40xbf16>, vector<40x256xbf16>, vector<8x256xf32> -> vector<8x256xf32>
    %447 = arith.addf %442, %446 : vector<8x256xf32>
    %448 = vector.extract_strided_slice %410 {offsets = [0, 129], sizes = [40, 256], strides = [1, 1]} : vector<40x512xbf16> to vector<40x256xbf16>
    %cst_340 = arith.constant 0.000000e+00 : f32
    %449 = arith.truncf %cst_340 : f32 to bf16
    %450 = vector.broadcast %449 : bf16 to vector<40x256xbf16>
    %451 = arith.select %41, %450, %448 : vector<40x256xi1>, vector<40x256xbf16>
    %c5_341 = arith.constant 5 : index
    %c0_342 = arith.constant 0 : index
    %c0_343 = arith.constant 0 : index
    %452 = vector.load %arg3[%c5_341, %c0_342, %c0_343] : memref<9x8x40xbf16, #tpu.memory_space<vmem>>, vector<1x8x40xbf16>
    %453 = vector.shape_cast %452 : vector<1x8x40xbf16> to vector<8x40xbf16>
    %cst_344 = arith.constant dense<0.000000e+00> : vector<8x256xf32>
    %454 = tpu.matmul %453, %451, %cst_344 {dimension_numbers = #tpu.dot_dimension_numbers<[1], [0], [0], [1], [0, 0, 1, 1], [], []>} : vector<8x40xbf16>, vector<40x256xbf16>, vector<8x256xf32> -> vector<8x256xf32>
    %455 = arith.addf %447, %454 : vector<8x256xf32>
    %456 = vector.extract_strided_slice %410 {offsets = [0, 143], sizes = [40, 256], strides = [1, 1]} : vector<40x512xbf16> to vector<40x256xbf16>
    %cst_345 = arith.constant 0.000000e+00 : f32
    %457 = arith.truncf %cst_345 : f32 to bf16
    %458 = vector.broadcast %457 : bf16 to vector<40x256xbf16>
    %459 = arith.select %39, %458, %456 : vector<40x256xi1>, vector<40x256xbf16>
    %c6_346 = arith.constant 6 : index
    %c0_347 = arith.constant 0 : index
    %c0_348 = arith.constant 0 : index
    %460 = vector.load %arg3[%c6_346, %c0_347, %c0_348] : memref<9x8x40xbf16, #tpu.memory_space<vmem>>, vector<1x8x40xbf16>
    %461 = vector.shape_cast %460 : vector<1x8x40xbf16> to vector<8x40xbf16>
    %cst_349 = arith.constant dense<0.000000e+00> : vector<8x256xf32>
    %462 = tpu.matmul %461, %459, %cst_349 {dimension_numbers = #tpu.dot_dimension_numbers<[1], [0], [0], [1], [0, 0, 1, 1], [], []>} : vector<8x40xbf16>, vector<40x256xbf16>, vector<8x256xf32> -> vector<8x256xf32>
    %463 = arith.addf %455, %462 : vector<8x256xf32>
    %464 = vector.extract_strided_slice %410 {offsets = [0, 144], sizes = [40, 256], strides = [1, 1]} : vector<40x512xbf16> to vector<40x256xbf16>
    %c7_350 = arith.constant 7 : index
    %c0_351 = arith.constant 0 : index
    %c0_352 = arith.constant 0 : index
    %465 = vector.load %arg3[%c7_350, %c0_351, %c0_352] : memref<9x8x40xbf16, #tpu.memory_space<vmem>>, vector<1x8x40xbf16>
    %466 = vector.shape_cast %465 : vector<1x8x40xbf16> to vector<8x40xbf16>
    %cst_353 = arith.constant dense<0.000000e+00> : vector<8x256xf32>
    %467 = tpu.matmul %466, %464, %cst_353 {dimension_numbers = #tpu.dot_dimension_numbers<[1], [0], [0], [1], [0, 0, 1, 1], [], []>} : vector<8x40xbf16>, vector<40x256xbf16>, vector<8x256xf32> -> vector<8x256xf32>
    %468 = arith.addf %463, %467 : vector<8x256xf32>
    %469 = vector.extract_strided_slice %410 {offsets = [0, 145], sizes = [40, 256], strides = [1, 1]} : vector<40x512xbf16> to vector<40x256xbf16>
    %cst_354 = arith.constant 0.000000e+00 : f32
    %470 = arith.truncf %cst_354 : f32 to bf16
    %471 = vector.broadcast %470 : bf16 to vector<40x256xbf16>
    %472 = arith.select %41, %471, %469 : vector<40x256xi1>, vector<40x256xbf16>
    %c8_355 = arith.constant 8 : index
    %c0_356 = arith.constant 0 : index
    %c0_357 = arith.constant 0 : index
    %473 = vector.load %arg3[%c8_355, %c0_356, %c0_357] : memref<9x8x40xbf16, #tpu.memory_space<vmem>>, vector<1x8x40xbf16>
    %474 = vector.shape_cast %473 : vector<1x8x40xbf16> to vector<8x40xbf16>
    %cst_358 = arith.constant dense<0.000000e+00> : vector<8x256xf32>
    %475 = tpu.matmul %474, %472, %cst_358 {dimension_numbers = #tpu.dot_dimension_numbers<[1], [0], [0], [1], [0, 0, 1, 1], [], []>} : vector<8x40xbf16>, vector<40x256xbf16>, vector<8x256xf32> -> vector<8x256xf32>
    %476 = arith.addf %468, %475 : vector<8x256xf32>
    %477 = vector.broadcast %412 : vector<8x1xf32> to vector<8x256xf32>
    %478 = arith.addf %476, %477 : vector<8x256xf32>
    %cst_359 = arith.constant 0.000000e+00 : f32
    %479 = vector.broadcast %cst_359 : f32 to vector<8x256xf32>
    %480 = arith.maximumf %478, %479 : vector<8x256xf32>
    %c0_360 = arith.constant 0 : index
    %c0_361 = arith.constant 0 : index
    %c0_362 = arith.constant 0 : index
    %481 = vector.load %arg5[%c0_360, %c0_361, %c0_362] : memref<1x8x256xf32, #tpu.memory_space<vmem>>, vector<1x8x256xf32>
    %482 = vector.shape_cast %481 : vector<1x8x256xf32> to vector<8x256xf32>
    %483 = vector.shape_cast %480 : vector<8x256xf32> to vector<1x8x256xf32>
    tpu.vector_store %arg5[%c0_360, %c0_361, %c0_362], %483 {strides = array<i32>} : memref<1x8x256xf32, #tpu.memory_space<vmem>>, vector<1x8x256xf32>,
    return
  }
  func.func @transform_0(%arg0: i32) -> (i32, i32, i32, i32) {
    %c0_i32 = arith.constant 0 : i32
    %c0_i32_0 = arith.constant 0 : i32
    %c0_i32_1 = arith.constant 0 : i32
    %c0_i32_2 = arith.constant 0 : i32
    return %arg0, %c0_i32, %c0_i32_0, %c0_i32_1 : i32, i32, i32, i32
  }
  func.func @transform_1(%arg0: i32) -> (i32, i32, i32, i32) {
    %c0_i32 = arith.constant 0 : i32
    %c0_i32_0 = arith.constant 0 : i32
    %c0_i32_1 = arith.constant 0 : i32
    %c0_i32_2 = arith.constant 0 : i32
    %c0_i32_3 = arith.constant 0 : i32
    return %c0_i32, %c0_i32_0, %c0_i32_1, %c0_i32_2 : i32, i32, i32, i32
  }
  func.func @transform_2(%arg0: i32) -> (i32, i32, i32) {
    %c0_i32 = arith.constant 0 : i32
    %c0_i32_0 = arith.constant 0 : i32
    %c0_i32_1 = arith.constant 0 : i32
    %c0_i32_2 = arith.constant 0 : i32
    return %c0_i32, %c0_i32_0, %c0_i32_1 : i32, i32, i32
  }
  func.func @transform_3(%arg0: i32) -> (i32, i32, i32) {
    %c0_i32 = arith.constant 0 : i32
    %c0_i32_0 = arith.constant 0 : i32
    %c0_i32_1 = arith.constant 0 : i32
    %c0_i32_2 = arith.constant 0 : i32
    return %c0_i32, %c0_i32_0, %c0_i32_1 : i32, i32, i32
  }
  func.func @transform_4(%arg0: i32) -> (i32, i32, i32) {
    %c0_i32 = arith.constant 0 : i32
    %c0_i32_0 = arith.constant 0 : i32
    %c0_i32_1 = arith.constant 0 : i32
    return %arg0, %c0_i32, %c0_i32_0 : i32, i32, i32
  }
}

</mosaic_0001>

<bundles_post_ra>
// kernel: unet_up2_forward.1
= control target key start
LH: loop header
LB: loop body
LE: loop exit
PB: predicated region body
PF: predicated region fallthrough
CT: control target
= control target key end

     0   :  { %s4780_s15 = smov 0   ;;  %s6347_s0 = inlined_call_operand.vmem [shape: bf16[2,5,8,512], index: 0, kind: input, shape index: {}]   ;;  %s6348_s1 = inlined_call_operand.vmem [shape: bf16[5,9,8,8], index: 1, kind: input, shape index: {}]   ;;  %s6349_s2 = inlined_call_operand.vmem [shape: bf16[9,8,40], index: 2, kind: input, shape index: {}]   ;;  %s6350_s3 = inlined_call_operand.vmem [shape: f32[6,8,1], index: 3, kind: input, shape index: {}]   ;;  %s6351_s4 = inlined_call_operand.vmem [shape: f32[2,8,256], index: 4, kind: output, shape index: {}]  }
   0x1 LB: > { %s4387_s16 = sadd.s32 4294967295, %s4743_s15   ;;  %p4391_p0 = scmp.ge.s32.totalorder %s4743_s15, 1  ;;  %s4743_s15 = sphi %s4780_s15, %s14_s15  }
   0x2   : > { %p162_p1 = scmp.lt.s32.totalorder %s4743_s15, 3 }
   0x4   : > { %p163_p2 = pnand %p4391_p0, %p162_p1 }
   0x5   : > { %v201_v0 = vlaneseq (!%p163_p2)  ;;  %p188_p3 = scmp.lt.s32.totalorder (!%p163_p2), %s4387_s16, 1  ;;  %v4745_v1 = vmov (!%p163_p2), 0   ;;  %s4746_s21 = smov (!%p163_p2), 111   ;;  %vm6352_vm6 = vcmask (!%p163_p2), 908288   ;;  %vm410_vm9 = vcmask (!%p163_p2), 924672  }
   0x6   : > { %166 = sbr.rel (%p163_p2) target bundleno = 1056 (0x420), region = 36  ;;  %329 = vmatprep.mubr.bf16.mxu0 (!%p163_p2), %v4745_v1  ;;  %396 = vmatprep.mubr.bf16.mxu1 (!%p163_p2), %v4745_v1  ;;  %s4747_s22 = smov (!%p163_p2), 127   ;;  %vm490_vm12 = vcmask (!%p163_p2), 1039360   ;;  %vm283_vm14 = vcmask (!%p163_p2), 130048   ;;  %vm6354_vm15 = vcmask (!%p163_p2), 1043456  }
   0x7   : > { %v202_v2 = vand.u32 (!%p163_p2), 127, %v201_v0  ;;  %4685 = vset.pattern.permute.xlu0 (!%p163_p2), %v4745_v1  ;;  %4686 = vset.pattern.permute.xlu1 (!%p163_p2), %v4745_v1  ;;  %v4795_v6 = vshrl.u32 (!%p163_p2), %v201_v0, 7  ;;  %s4748_s23 = smov (!%p163_p2), 113   ;;  %s4749_s24 = smov (!%p163_p2), 16  }
   0x8   : > { %s4750_s25 = smov (!%p163_p2), 112   ;;  %s4751_s26 = smov (!%p163_p2), 17  }
   0x9   : > { %v203_v3 = vadd.s32 (!%p163_p2), 128, %v202_v2  ;;  %v208_v4 = vand.u32 (!%p163_p2), 15, %v202_v2  ;;  %v3433_v11 = vsub.s32 (!%p163_p2), 0, %v4795_v6  ;;  %v3437_v12 = vsub.s32 (!%p163_p2), 4, %v4795_v6  ;;  %s4752_s27 = smov (!%p163_p2), 1   ;;  %s4753_s28 = smov (!%p163_p2), 15  }
   0xb   : > { %v215_v5 = vand.u32 (!%p163_p2), 15, %v203_v3  ;;  %vm228_vm0 = vcmp.eq.s32.totalorder (!%p163_p2), %v208_v4, 0  ;;  %vm230_vm1 = vcmp.eq.s32.totalorder (!%p163_p2), %v208_v4, 15  ;;  %v4395_v3 = vld [vmem:[%s6348_s1 + $0x4] sm:$0xf] (!%p163_p2) }
   0xd   : > { %s6395_s16 = smov (!%p188_p3, %s4387_s16), 1  ;;  %vm229_vm2 = vcmp.eq.s32.totalorder %v215_v5, 0  ;;  %vm231_vm3 = vcmp.eq.s32.totalorder %v215_v5, 15 }
   0xe   : > { %s4666_s17 = smul.u32 80, %s6395_s16  ;;  %vm4805_vm4 = vmpackc.low %vm229_vm2, %vm228_vm0  ;;  %vm352_vm2 = vcmask 138240   ;;  %s4665_s29 = sshll.u32 %s6395_s16, 4 }
   0xf   : > { %v4812_v9 = vsel %vm4805_vm4, 65537, %v4745_v1  ;;  %vm4814_vm5 = vmpackc.low %vm231_vm3, %vm230_vm1  ;;  %vm286_vm1 = vcmask 64512   ;;  %vm432_vm3 = vcmask 121856   ;;  %s197_s6 = scalar_lea.vmem %s6351_s4, %s4665_s29 }
  0x10   : > { %s4800_s20 = scalar_lea.vmem %s6347_s0, %s4666_s17  ;;  %257 = vrot.lane.b32.xlu0 %v4812_v9, %s4746_s21  ;;  %487 = vrot.lane.b32.xlu1 %v4812_v9, %s4747_s22  ;;  %v406_v13 = vsel %vm4814_vm5, 65537, %v4745_v1 }
  0x11   : > { %v4803_v7 = vld [vmem:[%s4800_s20] sm:$0xff]  ;;  %v4831_v15 = vrot.slane %v406_v13, %v3433_v11  ;;  %v4835_v16 = vrot.slane %v406_v13, %v3437_v12  ;;  %v253_v17 = vld [vmem:[%s4800_s20 + $0x8] sm:$0xff]  ;;  %v4860_v20 = vld [vmem:[%s4800_s20 + $0x10] sm:$0xff] }
  0x12   : > { %v4396_v14 = vcombine.low %v4803_v7, %v4803_v7  ;;  %v4840_v18 = vcombine.low %v253_v17, %v253_v17  ;;  %v4844_v19 = vcombine.high %v4803_v7, %v4803_v7  ;;  %v4432_v21 = vcombine.high %v253_v17, %v253_v17  ;;  %v4869_v23 = vld [vmem:[%s4800_s20 + $0x18] sm:$0xff]  ;;  %v4915_v45 = vld [vmem:[%s4800_s20 + $0x20] sm:$0xff]  ;;  %v4940_v54 = vld [vmem:[%s4800_s20 + $0x30] sm:$0xff] }
  0x13   : > { %v4445_v22 = vcombine.low %v4860_v20, %v4860_v20  ;;  %v4875_v24 = vcombine.high %v4860_v20, %v4860_v20  ;;  %v4879_v25 = vcombine.low %v4869_v23, %v4869_v23  ;;  %v4943_v55 = vld [vmem:[%s4800_s20 + $0x38] sm:$0xff] }
  0x14   : > { %407 = vrot.lane.b32.xlu0 %v406_v13, %s4748_s23  ;;  %277 = vrot.lane.b32.xlu1 %v4396_v14, %s4749_s24 }
  0x18   : > { %281 = vrot.lane.b32.xlu1 %v4840_v18, %s4749_s24  ;;  %279 = vrot.lane.b32.xlu0 %v4844_v19, %s4749_s24 }
  0x1c   : > { %621 = vrot.lane.b32.xlu1 %v4803_v7, %s4747_s22  ;;  %623 = vrot.lane.b32.xlu0 %v253_v17, %s4747_s22 }
  0x20   : > { %691 = vrot.lane.b32.xlu1 %v4803_v7, %s4748_s23  ;;  %693 = vrot.lane.b32.xlu0 %v253_v17, %s4748_s23 }
  0x24   : > { %825 = vrot.lane.b32.xlu1 %v4803_v7, %s4746_s21  ;;  %827 = vrot.lane.b32.xlu0 %v253_v17, %s4746_s21 }
  0x28   : > { %764 = vrot.lane.b32.xlu1 %v4844_v19, %s4750_s25  ;;  %766 = vrot.lane.b32.xlu0 %v4840_v18, %s4750_s25 }
  0x2c   : > { %768 = vrot.lane.b32.xlu1 %v4432_v21, %s4750_s25  ;;  %924 = vrot.lane.b32.xlu0 %v4445_v22, %s4749_s24 }
  0x30   : > { %926 = vrot.lane.b32.xlu1 %v4875_v24, %s4749_s24  ;;  %928 = vrot.lane.b32.xlu0 %v4879_v25, %s4749_s24 }
  0x82   : > { %v258_v26 = vpop.permute.xlu0 %257  ;;  %v488_v27 = vpop.permute.xlu1 %487 }
  0x83   : > { %v259_v28 = vrot.slane %v258_v26, 4  ;;  %v489_v29 = vrot.slane %v488_v27, 4 }
  0x85   : > { %vm4885_vm7 = vcmp.ne.s16.totalorder %v259_v28, 0  ;;  %vm4889_vm8 = vcmp.ne.s16.totalorder %v489_v29, 0  ;;  %v4894_v32 = vsel %vm6352_vm6, %v259_v28, %v258_v26  ;;  %v4921_v46 = vsel %vm490_vm12, %v489_v29, %v488_v27  ;;  %v5003_v27 = vld [vmem:[%s4800_s20 + $0x40] sm:$0xff]  ;;  %v5006_v28 = vld [vmem:[%s4800_s20 + $0x48] sm:$0xff] }
  0x86   : > { %v408_v33 = vpop.permute.xlu0 %407  ;;  %v265_v34 = vsel %vm4885_vm7, 0, %v253_v17  ;;  %v495_v35 = vsel %vm4889_vm8, 0, %v253_v17  ;;  %vm262_vm10 = vcmp.ne.s16.totalorder %v4894_v32, 0  ;;  %v278_v43 = vpop.permute.xlu1 %277  ;;  %vm492_vm0 = vcmp.ne.s16.totalorder %v4921_v46, 0 }
  0x87   : > { %v409_v36 = vrot.slane %v408_v33, 4  ;;  %v4403_v37 = vcombine.low %v265_v34, %v265_v34  ;;  %v4415_v39 = vcombine.low %v495_v35, %v495_v35  ;;  %v264_v44 = vsel %vm262_vm10, 0, %v4803_v7 }
  0x88   : > { %v4402_v47 = vcombine.high %v264_v44, %v264_v44  ;;  %v4401_v48 = vcombine.low %v264_v44, %v264_v44  ;;  %v4926_v49 = vsel %vm262_vm10, 0, %v4915_v45  ;;  %v911_v60 = vsel %vm4885_vm7, 0, %v4869_v23 }
  0x89   : > { %vm4901_vm11 = vcmp.ne.s16.totalorder %v409_v36, 0  ;;  %350 = vrot.lane.b32.xlu0 %v4403_v37, %s4751_s26  ;;  %v4907_v40 = vsel %vm410_vm9, %v409_v36, %v408_v33  ;;  %v4958_v63 = vsel %vm492_vm0, 0, %v4915_v45  ;;  %v4963_v0 = vsel %vm262_vm10, 0, %v4940_v54 }
  0x8a   : > { %v415_v41 = vsel %vm4901_vm11, 0, %v253_v17  ;;  %vm412_vm13 = vcmp.ne.s16.totalorder %v4907_v40, 0  ;;  %v282_v51 = vpop.permute.xlu1 %281  ;;  %v280_v52 = vpop.permute.xlu0 %279  ;;  %v1049_v62 = vsel %vm4901_vm11, 0, %v4869_v23  ;;  %v4968_v2 = vsel %vm4885_vm7, 0, %v4943_v55 }
  0x8b   : > { %v4409_v42 = vcombine.low %v415_v41, %v415_v41  ;;  %v414_v50 = vsel %vm412_vm13, 0, %v4803_v7  ;;  %v4937_v53 = vsel %vm412_vm13, 0, %v4915_v45  ;;  %v285_v56 = vsel %vm283_vm14, %v280_v52, %v282_v51 }
  0x8c   : > { %v284_v57 = vsel %vm283_vm14, %v278_v43, %v280_v52  ;;  %v4407_v58 = vcombine.low %v414_v50, %v414_v50  ;;  %v4408_v59 = vcombine.high %v414_v50, %v414_v50  ;;  %4399 = vmatprep.subr.msk.bf16.mxu0 %vm6354_vm15, %v285_v56  ;;  %v4452_v4 = vcombine.low %v911_v60, %v911_v60 }
  0x8d   : > { %510 = vrot.lane.b32.xlu0 %v4415_v39, %s4752_s27  ;;  %430 = vrot.lane.b32.xlu1 %v4409_v42, %s4753_s28  ;;  %v292_v61 = vsel %vm6354_vm15, %v284_v57, 0  ;;  %v4458_v5 = vcombine.low %v1049_v62, %v1049_v62  ;;  %v494_v13 = vsel %vm492_vm0, 0, %v4803_v7  ;;  %v4982_v14 = vsel %vm412_vm13, 0, %v4940_v54  ;;  %v4490_v57 = vld [vmem:[%s4800_s20 + $0x28] sm:$0xff] }
  0x8e   : > { %298 = vmatpush1.bf16.msra.mxu0 %v292_v61  ;;  %v4987_v17 = vsel %vm4901_vm11, 0, %v4943_v55  ;;  %v4992_v21 = vsel %vm492_vm0, 0, %v4940_v54  ;;  %v5000_v7 = vsel %vm4889_vm8, 0, %v4943_v55  ;;  %v4414_v22 = vcombine.high %v494_v13, %v494_v13  ;;  %v5116_v62 = vpop.permute.xlu0 %623 }
  0x8f   : > { %v4413_v26 = vcombine.low %v494_v13, %v494_v13  ;;  %v1121_v29 = vsel %vm4889_vm8, 0, %v4869_v23  ;;  %v5016_v33 = vsel %vm262_vm10, 0, %v5003_v27  ;;  %v5021_v34 = vsel %vm4885_vm7, 0, %v5006_v28 }
  0x90   : > { %v4464_v35 = vcombine.low %v1121_v29, %v1121_v29  ;;  %v5029_v36 = vsel %vm412_vm13, 0, %v5003_v27  ;;  %v5034_v37 = vsel %vm4901_vm11, 0, %v5006_v28  ;;  %v5039_v39 = vsel %vm492_vm0, 0, %v5003_v27 }
  0x91   : > { %348 = vrot.lane.b32.xlu1 %v4402_v47, %s4751_s26  ;;  %346 = vrot.lane.b32.xlu0 %v4401_v48, %s4751_s26  ;;  %v5044_v41 = vsel %vm4889_vm8, 0, %v5006_v28  ;;  %v4481_v42 = vcombine.high %v4869_v23, %v4869_v23  ;;  %v910_v43 = vsel %vm262_vm10, 0, %v4860_v20  ;;  %v1048_v48 = vsel %vm412_vm13, 0, %v4860_v20 }
  0x92   : > { %4400 = vmatmul.mubr.msk.bf16.vlgmr.msra.gmra.mrb[0].mxu0 %vm286_vm1, %v4395_v3  ;;  %v4450_v44 = vcombine.low %v910_v43, %v910_v43  ;;  %v4451_v47 = vcombine.high %v910_v43, %v910_v43  ;;  %v4457_v50 = vcombine.high %v1048_v48, %v1048_v48  ;;  %v4456_v32 = vcombine.low %v1048_v48, %v1048_v48 }
  0x93   : > { %476 = vmatprep.mubr.bf16.mxu0 %v4745_v1  ;;  %v1120_v51 = vsel %vm492_vm0, 0, %v4860_v20  ;;  %v4494_v40 = vcombine.low %v4915_v45, %v4915_v45  ;;  %v5082_v56 = vcombine.high %v4915_v45, %v4915_v45  ;;  %v5090_v46 = vcombine.low %v4490_v57, %v4490_v57 }
  0x94   : > { %v4463_v52 = vcombine.high %v1120_v51, %v1120_v51  ;;  %v1744_v60 = vsel %vm4889_vm8, 0, %v4490_v57  ;;  %v4500_v31 = vcombine.high %v4926_v49, %v4926_v49  ;;  %v4499_v38 = vcombine.low %v4926_v49, %v4926_v49 }
  0x95   : > { %426 = vrot.lane.b32.xlu1 %v4407_v58, %s4753_s28  ;;  %428 = vrot.lane.b32.xlu0 %v4408_v59, %s4753_s28  ;;  %v1672_v59 = vsel %vm4901_vm11, 0, %v4490_v57  ;;  %v4513_v61 = vcombine.low %v1744_v60, %v1744_v60  ;;  %v4505_v3 = vcombine.low %v4937_v53, %v4937_v53  ;;  %v4512_v13 = vcombine.high %v4958_v63, %v4958_v63 }
  0x96   : > { %v4507_v30 = vcombine.low %v1672_v59, %v1672_v59  ;;  %v4543_v29 = vcombine.low %v4940_v54, %v4940_v54  ;;  %v4549_v48 = vcombine.high %v4963_v0, %v4963_v0  ;;  %vm6353_vm8 = vcmask 916480  }
  0x99   : > { %994 = vrot.lane.b32.xlu1 %v4452_v4, %s4751_s26  ;;  %1064 = vrot.lane.b32.xlu0 %v4458_v5, %s4753_s28  ;;  %v5124_v4 = vpop.permute.xlu1 %621  ;;  %v5126_v5 = vpop.permute.xlu0 %693 }
  0x9d   : > { %508 = vrot.lane.b32.xlu1 %v4414_v22, %s4752_s27  ;;  %506 = vrot.lane.b32.xlu0 %v4413_v26, %s4752_s27  ;;  %v692_v49 = vpop.permute.xlu1 %691  ;;  %v5138_v22 = vpop.permute.xlu0 %827  ;;  %v4530_v26 = vcombine.high %v4490_v57, %v4490_v57 }
  0x9e   : > { %v695_v60 = vrot.slane %v692_v49, 4 }
  0xa1   : > { %1136 = vrot.lane.b32.xlu1 %v4464_v35, %s4752_s27  ;;  %1246 = vrot.lane.b32.xlu0 %v4860_v20, %s4747_s22  ;;  %v5142_v35 = vpop.permute.xlu1 %825  ;;  %v5154_v43 = vpop.permute.xlu0 %766 }
  0xa5   : > { %1248 = vrot.lane.b32.xlu1 %v4869_v23, %s4747_s22  ;;  %1315 = vrot.lane.b32.xlu0 %v4860_v20, %s4748_s23 }
  0xa9   : > { %1317 = vrot.lane.b32.xlu1 %v4869_v23, %s4748_s23  ;;  %1388 = vrot.lane.b32.xlu0 %v4875_v24, %s4750_s25 }
  0xad   : > { %1390 = vrot.lane.b32.xlu1 %v4879_v25, %s4750_s25  ;;  %1392 = vrot.lane.b32.xlu0 %v4481_v42, %s4750_s25  ;;  %v5148_v42 = vcombine.high %v4940_v54, %v4940_v54 }
  0xb1   : > { %1448 = vrot.lane.b32.xlu1 %v4860_v20, %s4746_s21  ;;  %1450 = vrot.lane.b32.xlu0 %v4869_v23, %s4746_s21  ;;  %v4462_v23 = vcombine.low %v1120_v51, %v1120_v51  ;;  %v1534_v20 = vsel %vm4885_vm7, 0, %v4490_v57  ;;  %v4554_v51 = vcombine.low %v4982_v14, %v4982_v14  ;;  %vm512_vm7 = vcmask 7168  }
  0xb2   : > { %v4501_v58 = vcombine.low %v1534_v20, %v1534_v20  ;;  %v4560_v20 = vcombine.low %v4992_v21, %v4992_v21 }
  0xb5   : > { %990 = vrot.lane.b32.xlu1 %v4450_v44, %s4751_s26  ;;  %992 = vrot.lane.b32.xlu0 %v4451_v47, %s4751_s26  ;;  %v5160_v44 = vpop.permute.xlu1 %764  ;;  %v4548_v47 = vcombine.low %v4963_v0, %v4963_v0  ;;  %v4555_v0 = vcombine.high %v4982_v14, %v4982_v14 }
  0xb9   : > { %1062 = vrot.lane.b32.xlu1 %v4457_v50, %s4753_s28  ;;  %1060 = vrot.lane.b32.xlu0 %v4456_v32, %s4753_s28  ;;  %v5166_v50 = vpop.permute.xlu0 %924  ;;  %v4550_v32 = vcombine.low %v4968_v2, %v4968_v2 }
  0xbd   : > { %1132 = vrot.lane.b32.xlu1 %v4462_v23, %s4752_s27  ;;  %1134 = vrot.lane.b32.xlu0 %v4463_v52, %s4752_s27  ;;  %v5174_v23 = vpop.permute.xlu1 %768  ;;  %v5178_v52 = vpop.permute.xlu0 %928 }
  0xc1   : > { %1547 = vrot.lane.b32.xlu1 %v4494_v40, %s4749_s24  ;;  %1549 = vrot.lane.b32.xlu0 %v5082_v56, %s4749_s24  ;;  %v4556_v40 = vcombine.low %v4987_v17, %v4987_v17  ;;  %v5186_v2 = vpop.permute.xlu1 %926  ;;  %v4562_v17 = vcombine.low %v5000_v7, %v5000_v7 }
  0xc5   : > { %1551 = vrot.lane.b32.xlu1 %v5090_v46, %s4749_s24  ;;  %1617 = vrot.lane.b32.xlu0 %v4501_v58, %s4751_s26  ;;  %v4561_v58 = vcombine.high %v4992_v21, %v4992_v21  ;;  %v625_v21 = vrot.slane %v5124_v4, 4 }
  0xc9   : > { %1687 = vrot.lane.b32.xlu1 %v4507_v30, %s4753_s28  ;;  %1759 = vrot.lane.b32.xlu0 %v4513_v61, %s4752_s27  ;;  %v696_v30 = vrot.slane %v5126_v5, 4 }
  0xcd   : > { %1869 = vrot.lane.b32.xlu1 %v4915_v45, %s4747_s22  ;;  %1871 = vrot.lane.b32.xlu0 %v4490_v57, %s4747_s22 }
  0xd1   : > { %1938 = vrot.lane.b32.xlu1 %v4915_v45, %s4748_s23  ;;  %1940 = vrot.lane.b32.xlu0 %v4490_v57, %s4748_s23 }
  0xd5   : > { %2071 = vrot.lane.b32.xlu1 %v4915_v45, %s4746_s21  ;;  %2073 = vrot.lane.b32.xlu0 %v4490_v57, %s4746_s21  ;;  %v4506_v45 = vcombine.high %v4937_v53, %v4937_v53  ;;  %v4511_v53 = vcombine.low %v4958_v63, %v4958_v63  ;;  %v5152_v63 = vcombine.low %v4943_v55, %v4943_v55 }
  0xd9   : > { %1615 = vrot.lane.b32.xlu1 %v4500_v31, %s4751_s26  ;;  %1613 = vrot.lane.b32.xlu0 %v4499_v38, %s4751_s26  ;;  %v626_v38 = vrot.slane %v5116_v62, 4 }
  0xdd   : > { %1683 = vrot.lane.b32.xlu1 %v4505_v3, %s4753_s28  ;;  %1685 = vrot.lane.b32.xlu0 %v4506_v45, %s4753_s28  ;;  %v697_v3 = vsel %vm6354_vm15, %v695_v60, %v696_v30 }
  0xde   : > { %v698_v4 = vsel %vm410_vm9, %v697_v3, %v5126_v5  ;;  %v4592_v3 = vcombine.low %v5003_v27, %v5003_v27 }
  0xe1   : > { %2011 = vrot.lane.b32.xlu1 %v5082_v56, %s4750_s25  ;;  %2013 = vrot.lane.b32.xlu0 %v5090_v46, %s4750_s25 }
  0xe5   : > { %1757 = vrot.lane.b32.xlu1 %v4512_v13, %s4752_s27  ;;  %1755 = vrot.lane.b32.xlu0 %v4511_v53, %s4752_s27 }
  0xe9   : > { %2015 = vrot.lane.b32.xlu1 %v4530_v26, %s4750_s25  ;;  %2170 = vrot.lane.b32.xlu0 %v4543_v29, %s4749_s24  ;;  %v628_v26 = vsel %vm6354_vm15, %v625_v21, %v626_v38 }
  0xed   : > { %2172 = vrot.lane.b32.xlu1 %v5148_v42, %s4749_s24  ;;  %2174 = vrot.lane.b32.xlu0 %v5152_v63, %s4749_s24 }
  0xf1   : > { %2236 = vrot.lane.b32.xlu1 %v4548_v47, %s4751_s26  ;;  %2238 = vrot.lane.b32.xlu0 %v4549_v48, %s4751_s26  ;;  %v266_v48 = vld [vmem:[%s6348_s1] sm:$0xf] }
  0xf5   : > { %2240 = vrot.lane.b32.xlu1 %v4550_v32, %s4751_s26  ;;  %2306 = vrot.lane.b32.xlu0 %v4554_v51, %s4753_s28  ;;  %v829_v32 = vrot.slane %v5142_v35, 4  ;;  %v830_v51 = vrot.slane %v5138_v22, 4  ;;  %v4406_v35 = vld [vmem:[%s6348_s1 + $0x8] sm:$0xf] }
  0xf7   : > { %v831_v60 = vsel %vm6354_vm15, %v829_v32, %v830_v51  ;;  %v4597_v51 = vcombine.low %v5016_v33, %v5016_v33 }
  0xf8   : > { %v832_v30 = vsel %vm6352_vm6, %v831_v60, %v5138_v22  ;;  %v5269_v22 = vcombine.high %v5003_v27, %v5003_v27 }
  0xf9   : > { %2308 = vrot.lane.b32.xlu1 %v4555_v0, %s4753_s28  ;;  %2310 = vrot.lane.b32.xlu0 %v4556_v40, %s4753_s28  ;;  %v700_v0 = vsel %vm4805_vm4, 0, %v698_v4  ;;  %v4579_v40 = vcombine.high %v4943_v55, %v4943_v55 }
  0xfb   : > { %v351_v57 = vpop.permute.xlu0 %350 }
  0xfd   : > { %2378 = vrot.lane.b32.xlu1 %v4560_v20, %s4752_s27  ;;  %2380 = vrot.lane.b32.xlu0 %v4561_v58, %s4752_s27 }
  0xff   : > { %v511_v14 = vpop.permute.xlu0 %510  ;;  %v431_v59 = vpop.permute.xlu1 %430 }
 0x101   : > { %2382 = vrot.lane.b32.xlu1 %v4562_v17, %s4752_s27  ;;  %2492 = vrot.lane.b32.xlu0 %v4940_v54, %s4747_s22  ;;  %v4428_v17 = vcombine.high %v700_v0, %v700_v0 }
 0x103   : > { %v349_v61 = vpop.permute.xlu1 %348  ;;  %v347_v31 = vpop.permute.xlu0 %346 }
 0x104   : > { %v354_v45 = vsel %vm352_vm2, %v349_v61, %v351_v57  ;;  %v353_v7 = vsel %vm352_vm2, %v347_v31, %v349_v61  ;;  %v629_v57 = vsel %vm490_vm12, %v628_v26, %v5116_v62 }
 0x105   : > { %2494 = vrot.lane.b32.xlu1 %v4943_v55, %s4747_s22  ;;  %4404 = vmatprep.subr.msk.bf16.mxu1 %vm6354_vm15, %v354_v45  ;;  %v359_v49 = vsel %vm6354_vm15, %v353_v7, 0  ;;  %v631_v62 = vsel %vm4814_vm5, 0, %v629_v57  ;;  %v4427_v45 = vcombine.low %v700_v0, %v700_v0  ;;  %v771_v0 = vsel %vm6353_vm8, %v5160_v44, %v5154_v43 }
 0x106   : > { %2561 = vrot.lane.b32.xlu0 %v4940_v54, %s4748_s23  ;;  %365 = vmatpush1.bf16.msra.mxu1 %v359_v49  ;;  %v4423_v31 = vcombine.high %v631_v62, %v631_v62  ;;  %v4422_v7 = vcombine.low %v631_v62, %v631_v62  ;;  %v4598_v57 = vcombine.high %v5016_v33, %v5016_v33 }
 0x107   : > { %v427_v13 = vpop.permute.xlu1 %426  ;;  %v429_v53 = vpop.permute.xlu0 %428  ;;  %v712_v26 = vsel %vm6354_vm15, %v4427_v45, 0  ;;  %v931_v33 = vsel %vm283_vm14, %v5186_v2, %v5178_v52  ;;  %v4603_v62 = vcombine.low %v5029_v36, %v5029_v36  ;;  %v4431_v52 = vld [vmem:[%s6348_s1 + $0x1c] sm:$0xf]  ;;  %v4611_v45 = vcombine.low %v5044_v41, %v5044_v41 }
 0x108   : > { %v433_v29 = vsel %vm432_vm3, %v427_v13, %v429_v53  ;;  %v434_v47 = vsel %vm432_vm3, %v429_v53, %v431_v59  ;;  %v573_v59 = vsel %vm6354_vm15, %v4844_v19, 0  ;;  %v5288_v13 = vcombine.low %v5006_v28, %v5006_v28 }
 0x109   : > { %2563 = vrot.lane.b32.xlu1 %v4943_v55, %s4748_s23  ;;  %4410 = vmatprep.subr.msk.bf16.mxu0 %vm6354_vm15, %v434_v47  ;;  %v439_v5 = vsel %vm6354_vm15, %v433_v29, 0  ;;  %v643_v29 = vsel %vm6354_vm15, %v4422_v7, 0  ;;  %v772_v47 = vsel %vm6353_vm8, %v5154_v43, %v5174_v23  ;;  %v4421_v23 = vld [vmem:[%s6348_s1 + $0x14] sm:$0xf]  ;;  %v777_v43 = vsel %vm6354_vm15, %v771_v0, 0 }
 0x10a   : > { %2634 = vrot.lane.b32.xlu0 %v5148_v42, %s4750_s25  ;;  %445 = vmatpush1.bf16.msra.mxu0 %v439_v5 }
 0x10b   : > { %v5236_v20 = vpop.permute.xlu1 %994  ;;  %4405 = vmatmul.mubr.msk.bf16.vlgmr.msra.gmra.mrb[0].mxu1 %vm286_vm1, %v266_v48  ;;  %v5239_v58 = vpop.permute.xlu0 %1064  ;;  %4419 = vmatprep.subr.msk.bf16.mxu0 %vm6354_vm15, %v4840_v18 }
 0x10c   : > { %556 = vmatprep.mubr.bf16.mxu1 %v4745_v1 }
 0x10d   : > { %2636 = vrot.lane.b32.xlu1 %v5152_v63, %s4750_s25  ;;  %4411 = vmatmul.mubr.msk.bf16.vlgmr.msra.gmra.mrb[4].mxu0 %vm286_vm1, %v4406_v35 }
 0x10e   : > { %2638 = vrot.lane.b32.xlu0 %v4579_v40, %s4750_s25  ;;  %579 = vmatpush1.bf16.msra.mxu0 %v573_v59  ;;  %v4426_v59 = vld [vmem:[%s6348_s1 + $0x18] sm:$0xf] }
 0x10f   : > { %v509_v18 = vpop.permute.xlu1 %508  ;;  %4429 = vmatprep.subr.msk.bf16.mxu0 %vm6354_vm15, %v4428_v17  ;;  %v507_v19 = vpop.permute.xlu0 %506  ;;  %610 = vmatprep.mubr.bf16.mxu0 %v4745_v1  ;;  %v4599_v17 = vcombine.low %v5021_v34, %v5021_v34 }
 0x110   : > { %v513_v21 = vsel %vm512_vm7, %v507_v19, %v509_v18  ;;  %v514_v61 = vsel %vm512_vm7, %v509_v18, %v511_v14  ;;  %v4412_v14 = vld [vmem:[%s6348_s1 + $0xc] sm:$0xf]  ;;  %v4604_v18 = vcombine.high %v5029_v36, %v5029_v36  ;;  %v930_v19 = vsel %vm283_vm14, %v5166_v50, %v5186_v2 }
 0x111   : > { %v519_v38 = vsel %vm6354_vm15, %v513_v21, 0  ;;  %2694 = vrot.lane.b32.xlu1 %v4940_v54, %s4746_s21  ;;  %4416 = vmatprep.subr.msk.bf16.mxu1 %vm6354_vm15, %v514_v61  ;;  %v834_v54 = vsel %vm4814_vm5, 0, %v832_v30  ;;  %v4605_v36 = vcombine.low %v5034_v37, %v5034_v37  ;;  %v4435_v61 = vld [vmem:[%s6348_s1 + $0x20] sm:$0xf]  ;;  %v936_v37 = vsel %vm6354_vm15, %v930_v19, 0 }
 0x112   : > { %2696 = vrot.lane.b32.xlu0 %v4943_v55, %s4746_s21  ;;  %525 = vmatpush1.bf16.msra.mxu1 %v519_v38  ;;  %v4418_v55 = vld [vmem:[%s6348_s1 + $0x10] sm:$0xf]  ;;  %v4437_v53 = vcombine.high %v834_v54, %v834_v54  ;;  %v4436_v5 = vcombine.low %v834_v54, %v834_v54  ;;  %v4609_v38 = vcombine.low %v5039_v39, %v5039_v39 }
 0x113   : > { %v5276_v49 = vpop.permute.xlu1 %1136  ;;  %4424 = vmatprep.subr.msk.bf16.mxu1 %vm6354_vm15, %v4423_v31  ;;  %v5279_v4 = vpop.permute.xlu0 %1246 }
 0x114   : > { %v846_v44 = vsel %vm6354_vm15, %v4436_v5, 0  ;;  %v1250_v50 = vrot.slane %v5279_v4, 4 }
 0x115   : > { %2793 = vrot.lane.b32.xlu1 %v4592_v3, %s4749_s24  ;;  %4417 = vmatmul.mubr.msk.bf16.vlgmr.msra.gmra.mrb[4].mxu1 %vm286_vm1, %v4412_v14  ;;  %v4610_v14 = vcombine.high %v5039_v39, %v5039_v39 }
 0x116   : > { %2795 = vrot.lane.b32.xlu0 %v5269_v22, %s4749_s24  ;;  %4420 = vmatmul.mubr.msk.bf16.vlgmr.msra.gmra.mrb[8].mxu0 %vm286_vm1, %v4418_v55 }
 0x117   : > { %718 = vmatpush1.bf16.msra.mxu0 %v712_v26  ;;  %649 = vmatpush1.bf16.msra.mxu1 %v643_v29  ;;  %v5298_v48 = vpop.permute.xlu1 %1248  ;;  %v5300_v32 = vpop.permute.xlu0 %1315 }
 0x118   : > { %4438 = vmatprep.subr.msk.bf16.mxu0 %vm6354_vm15, %v4437_v53  ;;  %4433 = vmatprep.subr.msk.bf16.mxu1 %vm6354_vm15, %v772_v47  ;;  %v1251_v31 = vrot.slane %v5298_v48, 4  ;;  %v1319_v41 = vrot.slane %v5300_v32, 4  ;;  %v4444_v53 = vld [vmem:[%s6348_s1 + $0x28] sm:$0xf]  ;;  %v4443_v47 = vld [vmem:[%s6348_s1 + $0x24] sm:$0xf] }
 0x119   : > { %2797 = vrot.lane.b32.xlu1 %v5288_v13, %s4749_s24  ;;  %680 = vmatprep.mubr.bf16.mxu1 %v4745_v1 }
 0x11a   : > { %2859 = vrot.lane.b32.xlu0 %v4597_v51, %s4751_s26  ;;  %749 = vmatprep.mubr.bf16.mxu0 %v4745_v1  ;;  %v1252_v7 = vsel %vm6354_vm15, %v1250_v50, %v1251_v31 }
 0x11b   : > { %v5317_v40 = vpop.permute.xlu1 %1317  ;;  %v5319_v35 = vpop.permute.xlu0 %1388 }
 0x11c   : > { %v1320_v54 = vrot.slane %v5317_v40, 4 }
 0x11d   : > { %2861 = vrot.lane.b32.xlu1 %v4598_v57, %s4751_s26  ;;  %4425 = vmatmul.mubr.msk.bf16.vlgmr.msra.gmra.mrb[8].mxu1 %vm286_vm1, %v4421_v23 }
 0x11e   : > { %2863 = vrot.lane.b32.xlu0 %v4599_v17, %s4751_s26  ;;  %4430 = vmatmul.mubr.msk.bf16.vlgmr.msra.gmra.mrb[12].mxu0 %vm286_vm1, %v4426_v59  ;;  %v1321_v51 = vsel %vm6354_vm15, %v1319_v41, %v1320_v54  ;;  %v4442_v41 = vld [vmem:[%s6350_s3 + $0x8] sm:$0xff] }
 0x11f   : > { %783 = vmatpush1.bf16.msra.mxu1 %v777_v43  ;;  %852 = vmatpush1.bf16.msra.mxu0 %v846_v44  ;;  %v5337_v60 = vpop.permute.xlu1 %1390  ;;  %v5339_v34 = vpop.permute.xlu0 %1392  ;;  %v1322_v0 = vsel %vm410_vm9, %v1321_v51, %v5317_v40 }
 0x120   : > { %4448 = vmatprep.subr.msk.bf16.mxu1 %vm6354_vm15, %v931_v33  ;;  %814 = vmatprep.mubr.bf16.mxu1 %v4745_v1 }
 0x121   : > { %2929 = vrot.lane.b32.xlu1 %v4603_v62, %s4753_s28  ;;  %883 = vmatprep.mubr.bf16.mxu0 %v4745_v1  ;;  %v4455_v62 = vld [vmem:[%s6348_s1 + $0x2c] sm:$0xf] }
 0x122   : > { %2931 = vrot.lane.b32.xlu0 %v4604_v18, %s4753_s28 }
 0x123   : > { %v5356_v30 = vpop.permute.xlu1 %1448  ;;  %v5358_v21 = vpop.permute.xlu0 %1450 }
 0x124   : > { %v1452_v59 = vrot.slane %v5356_v30, 4  ;;  %v1453_v17 = vrot.slane %v5358_v21, 4  ;;  %v4461_v30 = vld [vmem:[%s6348_s1 + $0x30] sm:$0xf] }
 0x125   : > { %2933 = vrot.lane.b32.xlu1 %v4605_v36, %s4753_s28  ;;  %4434 = vmatmul.mubr.msk.bf16.vlgmr.msra.gmra.mrb[12].mxu1 %vm286_vm1, %v4431_v52 }
 0x126   : > { %3001 = vrot.lane.b32.xlu0 %v4609_v38, %s4752_s27  ;;  %4439 = vmatmul.mubr.msk.bf16.vlgmr.msra.gmra.mrb[16].mxu0 %vm286_vm1, %v4435_v61  ;;  %v1454_v36 = vsel %vm6354_vm15, %v1452_v59, %v1453_v17  ;;  %v1198_v61 = vsel %vm6354_vm15, %v4875_v24, 0  ;;  %v1395_v38 = vsel %vm6353_vm8, %v5337_v60, %v5339_v34  ;;  %v4628_v34 = vcombine.high %v5006_v28, %v5006_v28 }
 0x127   : > { %942 = vmatpush1.bf16.msra.mxu1 %v936_v37  ;;  %v991_v2 = vpop.permute.xlu1 %990  ;;  %v993_v3 = vpop.permute.xlu0 %992  ;;  %973 = vmatprep.mubr.bf16.mxu1 %v4745_v1  ;;  %v1455_v24 = vsel %vm6352_vm6, %v1454_v36, %v5358_v21 }
 0x128   : > { %v996_v4 = vsel %vm352_vm2, %v991_v2, %v993_v3  ;;  %v997_v55 = vsel %vm352_vm2, %v993_v3, %v5236_v20  ;;  %1039 = vmatprep.mubr.bf16.mxu0 %v4745_v1  ;;  %v1253_v20 = vsel %vm490_vm12, %v1252_v7, %v5298_v48  ;;  %v1457_v21 = vsel %vm4814_vm5, 0, %v1455_v24  ;;  %v4467_v2 = vld [vmem:[%s6348_s1 + $0x34] sm:$0xf] }
 0x129   : > { %3003 = vrot.lane.b32.xlu1 %v4610_v14, %s4752_s27  ;;  %4453 = vmatprep.subr.msk.bf16.mxu0 %vm6354_vm15, %v997_v55  ;;  %v1002_v39 = vsel %vm6354_vm15, %v996_v4, 0  ;;  %v1255_v48 = vsel %vm4814_vm5, 0, %v1253_v20  ;;  %v1394_v3 = vsel %vm6353_vm8, %v5319_v35, %v5337_v60  ;;  %v4486_v7 = vcombine.high %v1457_v21, %v1457_v21  ;;  %v254_v60 = vld [vmem:[%s6350_s3] sm:$0xff]  ;;  %v4475_v20 = vld [vmem:[%s6348_s1 + $0x3c] sm:$0xf] }
 0x12a   : > { %3005 = vrot.lane.b32.xlu0 %v4611_v45, %s4752_s27  ;;  %1008 = vmatpush1.bf16.msra.mxu0 %v1002_v39  ;;  %v4472_v33 = vcombine.high %v1255_v48, %v1255_v48  ;;  %v4471_v18 = vcombine.low %v1255_v48, %v1255_v48  ;;  %v4470_v45 = vld [vmem:[%s6348_s1 + $0x38] sm:$0xf]  ;;  %v1400_v35 = vsel %vm6354_vm15, %v1394_v3, 0  ;;  %v5516_v48 = vrot.slane %v4812_v9, %v3433_v11  ;;  %v4589_v11 = vld [vmem:[%s6350_s3 + $0x20] sm:$0xff]  ;;  %v4504_v3 = vld [vmem:[%s6348_s1 + $0x50] sm:$0xf] }
 0x12b   : > { %v1063_v26 = vpop.permute.xlu1 %1062  ;;  %v1061_v29 = vpop.permute.xlu0 %1060 }
 0x12c   : > { %v1066_v32 = vsel %vm432_vm3, %v1061_v29, %v1063_v26  ;;  %v1067_v23 = vsel %vm432_vm3, %v1063_v26, %v5239_v58  ;;  %v4540_v26 = vld [vmem:[%s6350_s3 + $0x18] sm:$0xff] }
 0x12d   : > { %v1072_v5 = vsel %vm6354_vm15, %v1066_v32, 0  ;;  %3115 = vrot.lane.b32.xlu1 %v5003_v27, %s4747_s22  ;;  %4449 = vmatmul.mubr.msk.bf16.vlgmr.msra.gmra.mrb[16].mxu1 %vm286_vm1, %v4444_v53  ;;  %v4485_v53 = vcombine.low %v1457_v21, %v1457_v21  ;;  %v4480_v32 = vld [vmem:[%s6348_s1 + $0x40] sm:$0xf] }
 0x12e   : > { %3117 = vrot.lane.b32.xlu0 %v5006_v28, %s4747_s22  ;;  %4454 = vmatmul.mubr.msk.bf16.vlgmr.msra.gmra.mrb[20].mxu0 %vm286_vm1, %v4443_v47 }
 0x12f   : > { %4459 = vmatprep.subr.msk.bf16.mxu1 %vm6354_vm15, %v1067_v23  ;;  %v1133_v58 = vpop.permute.xlu1 %1132  ;;  %v1135_v57 = vpop.permute.xlu0 %1134  ;;  %1109 = vmatprep.mubr.bf16.mxu1 %v4745_v1  ;;  %v1469_v23 = vsel %vm6354_vm15, %v4485_v53, 0  ;;  %v4510_v53 = vld [vmem:[%s6348_s1 + $0x54] sm:$0xf] }
 0x130   : > { %1078 = vmatpush1.bf16.msra.mxu1 %v1072_v5  ;;  %v1138_v43 = vsel %vm512_vm7, %v1133_v58, %v1135_v57  ;;  %v1139_v44 = vsel %vm512_vm7, %v1135_v57, %v5276_v49  ;;  %1181 = vmatprep.mubr.bf16.mxu0 %v4745_v1  ;;  %v1324_v49 = vsel %vm4805_vm4, 0, %v1322_v0  ;;  %v4491_v5 = vld [vmem:[%s6350_s3 + $0x10] sm:$0xff] }
 0x131   : > { %3184 = vrot.lane.b32.xlu1 %v5003_v27, %s4748_s23  ;;  %4465 = vmatprep.subr.msk.bf16.mxu0 %vm6354_vm15, %v1139_v44  ;;  %v1144_v40 = vsel %vm6354_vm15, %v1138_v43, 0  ;;  %v4477_v31 = vcombine.high %v1324_v49, %v1324_v49  ;;  %v4476_v37 = vcombine.low %v1324_v49, %v1324_v49  ;;  %v4484_v43 = vld [vmem:[%s6348_s1 + $0x44] sm:$0xf] }
 0x132   : > { %3186 = vrot.lane.b32.xlu0 %v5006_v28, %s4748_s23  ;;  %1150 = vmatpush1.bf16.msra.mxu0 %v1144_v40 }
 0x133   : > { %v1548_v52 = vpop.permute.xlu1 %1547  ;;  %4473 = vmatprep.subr.msk.bf16.mxu0 %vm6354_vm15, %v4472_v33  ;;  %v1550_v19 = vpop.permute.xlu0 %1549  ;;  %4468 = vmatprep.subr.msk.bf16.mxu1 %vm6354_vm15, %v4879_v25  ;;  %v1267_v25 = vsel %vm6354_vm15, %v4471_v18, 0  ;;  %v1336_v54 = vsel %vm6354_vm15, %v4476_v37, 0  ;;  %v4493_v18 = vld [vmem:[%s6348_s1 + $0x4c] sm:$0xf] }
 0x134   : > { %v1553_v29 = vsel %vm283_vm14, %v1548_v52, %v1550_v19 }
 0x135   : > { %3317 = vrot.lane.b32.xlu1 %v5003_v27, %s4746_s21  ;;  %4460 = vmatmul.mubr.msk.bf16.vlgmr.msra.gmra.mrb[20].mxu1 %vm286_vm1, %v4455_v62  ;;  %v1559_v0 = vsel %vm6354_vm15, %v1553_v29, 0 }
 0x136   : > { %3319 = vrot.lane.b32.xlu0 %v5006_v28, %s4746_s21  ;;  %4466 = vmatmul.mubr.msk.bf16.vlgmr.msra.gmra.mrb[24].mxu0 %vm286_vm1, %v4461_v30 }
 0x137   : > { %1204 = vmatpush1.bf16.msra.mxu1 %v1198_v61  ;;  %1273 = vmatpush1.bf16.msra.mxu0 %v1267_v25  ;;  %v1552_v27 = vpop.permute.xlu1 %1551  ;;  %v5453_v50 = vpop.permute.xlu0 %1617 }
 0x138   : > { %4478 = vmatprep.subr.msk.bf16.mxu1 %vm6354_vm15, %v4477_v31  ;;  %4482 = vmatprep.subr.msk.bf16.mxu0 %vm6354_vm15, %v1395_v38  ;;  %v1554_v4 = vsel %vm283_vm14, %v1550_v19, %v1552_v27  ;;  %v5540_v19 = vrot.slane %v4812_v9, %v3437_v12 }
 0x139   : > { %3257 = vrot.lane.b32.xlu1 %v5269_v22, %s4750_s25  ;;  %1235 = vmatprep.mubr.bf16.mxu1 %v4745_v1 }
 0x13a   : > { %3259 = vrot.lane.b32.xlu0 %v5288_v13, %s4750_s25  ;;  %1304 = vmatprep.mubr.bf16.mxu0 %v4745_v1 }
 0x13b   : > { %v5473_v14 = vpop.permute.xlu1 %1687  ;;  %v5475_v28 = vpop.permute.xlu0 %1759 }
 0x13d   : > { %3261 = vrot.lane.b32.xlu1 %v4628_v34, %s4750_s25  ;;  %4469 = vmatmul.mubr.msk.bf16.vlgmr.msra.gmra.mrb[24].mxu1 %vm286_vm1, %v4467_v2 }
 0x13e   : > { %4474 = vmatmul.mubr.msk.bf16.vlgmr.msra.gmra.mrb[28].mxu0 %vm286_vm1, %v4470_v45  ;;  %1342 = vmatpush1.bf16.msra.mxu1 %v1336_v54 }
 0x13f   : > { %1406 = vmatpush1.bf16.msra.mxu0 %v1400_v35  ;;  %4487 = vmatprep.subr.msk.bf16.mxu1 %vm6354_vm15, %v4486_v7  ;;  %v1870_v55 = vpop.permute.xlu1 %1869  ;;  %v5490_v39 = vpop.permute.xlu0 %1871 }
 0x140   : > { %4497 = vmatprep.subr.msk.bf16.mxu0 %vm6354_vm15, %v1554_v4  ;;  %1373 = vmatprep.mubr.bf16.mxu1 %v4745_v1  ;;  %v1873_v44 = vrot.slane %v1870_v55, 4  ;;  %v1874_v33 = vrot.slane %v5490_v39, 4 }
 0x141   : > { %1437 = vmatprep.mubr.bf16.mxu0 %v4745_v1  ;;  %896 = vperm.xlu0 %4685, %v254_v60  }
 0x142   : > { %1519 = vperm.xlu1 %4686, %v4442_v41   ;;  %v1875_v61 = vsel %vm6354_vm15, %v1873_v44, %v1874_v33 }
 0x143   : > { %v1939_v47 = vpop.permute.xlu1 %1938  ;;  %v1941_v51 = vpop.permute.xlu0 %1940  ;;  %v1876_v34 = vsel %vm490_vm12, %v1875_v61, %v5490_v39  ;;  %v4533_v61 = vld [vmem:[%s6348_s1 + $0x68] sm:$0xf] }
 0x144   : > { %v1942_v59 = vrot.slane %v1939_v47, 4  ;;  %v1943_v17 = vrot.slane %v1941_v51, 4  ;;  %v1878_v7 = vsel %vm4814_vm5, 0, %v1876_v34  ;;  %v4516_v47 = vld [vmem:[%s6348_s1 + $0x58] sm:$0xf] }
 0x145   : > { %4479 = vmatmul.mubr.msk.bf16.vlgmr.msra.gmra.mrb[28].mxu1 %vm286_vm1, %v4475_v20  ;;  %2765 = vperm.xlu0 %4685, %v4540_v26   ;;  %v4521_v55 = vcombine.high %v1878_v7, %v1878_v7  ;;  %v4520_v41 = vcombine.low %v1878_v7, %v1878_v7  ;;  %v4542_v34 = vld [vmem:[%s6348_s1 + $0x70] sm:$0xf] }
 0x146   : > { %4483 = vmatmul.mubr.msk.bf16.vlgmr.msra.gmra.mrb[32].mxu0 %vm286_vm1, %v4480_v32  ;;  %1475 = vmatpush1.bf16.msra.mxu1 %v1469_v23  ;;  %v1944_v30 = vsel %vm6354_vm15, %v1942_v59, %v1943_v17 }
 0x147   : > { %1565 = vmatpush1.bf16.msra.mxu0 %v1559_v0  ;;  %v2072_v58 = vpop.permute.xlu1 %2071  ;;  %v2074_v57 = vpop.permute.xlu0 %2073  ;;  %1506 = vmatprep.mubr.bf16.mxu1 %v4745_v1  ;;  %v1945_v6 = vsel %vm410_vm9, %v1944_v30, %v1941_v51  ;;  %v1890_v51 = vsel %vm6354_vm15, %v4520_v41, 0  ;;  %v4559_v41 = vld [vmem:[%s6348_s1 + $0x78] sm:$0xf] }
 0x148   : > { %1596 = vmatprep.mubr.bf16.mxu0 %v4745_v1  ;;  %2142 = vperm.xlu1 %4686, %v4491_v5   ;;  %v2075_v38 = vrot.slane %v2072_v58, 4  ;;  %v2076_v24 = vrot.slane %v2074_v57, 4  ;;  %v1947_v37 = vsel %vm4805_vm4, 0, %v1945_v6 }
 0x149   : > { %3439 = vrot.lane.b32.xlu0 %v5516_v48, %s4746_s21  ;;  %v4526_v54 = vcombine.high %v1947_v37, %v1947_v37  ;;  %v4525_v20 = vcombine.low %v1947_v37, %v1947_v37 }
 0x14a   : > { %v2077_v45 = vsel %vm6354_vm15, %v2075_v38, %v2076_v24 }
 0x14b   : > { %v1616_v40 = vpop.permute.xlu1 %1615  ;;  %v1614_v62 = vpop.permute.xlu0 %1613  ;;  %v2078_v35 = vsel %vm6352_vm6, %v2077_v45, %v2074_v57  ;;  %v1959_v5 = vsel %vm6354_vm15, %v4525_v20, 0  ;;  %v4519_v57 = vld [vmem:[%s6348_s1 + $0x5c] sm:$0xf] }
 0x14c   : > { %v1619_v49 = vsel %vm352_vm2, %v1614_v62, %v1616_v40  ;;  %v1620_v52 = vsel %vm352_vm2, %v1616_v40, %v5453_v50  ;;  %3388 = vperm.xlu1 %4686, %v4589_v11   ;;  %v4492_v50 = vld [vmem:[%s6348_s1 + $0x48] sm:$0xf] }
 0x14d   : > { %v1625_v36 = vsel %vm6354_vm15, %v1619_v49, 0  ;;  %4488 = vmatmul.mubr.msk.bf16.vlgmr.msra.gmra.mrb[32].mxu1 %vm286_vm1, %v4484_v43  ;;  %4502 = vmatprep.subr.msk.bf16.mxu1 %vm6354_vm15, %v1620_v52  ;;  %v4524_v43 = vld [vmem:[%s6348_s1 + $0x60] sm:$0xf]  ;;  %v4529_v49 = vld [vmem:[%s6348_s1 + $0x64] sm:$0xf] }
 0x14e   : > { %4498 = vmatmul.mubr.msk.bf16.vlgmr.msra.gmra.mrb[36].mxu0 %vm286_vm1, %v4493_v18  ;;  %1631 = vmatpush1.bf16.msra.mxu1 %v1625_v36 }
 0x14f   : > { %v1684_v31 = vpop.permute.xlu1 %1683  ;;  %v1686_v25 = vpop.permute.xlu0 %1685  ;;  %1662 = vmatprep.mubr.bf16.mxu1 %v4745_v1  ;;  %1732 = vmatprep.mubr.bf16.mxu0 %v4745_v1 }
 0x150   : > { %v1689_v9 = vsel %vm432_vm3, %v1684_v31, %v1686_v25  ;;  %v1690_v12 = vsel %vm432_vm3, %v1686_v25, %v5473_v14  ;;  %3441 = vrot.lane.b32.xlu1 %v5540_v19, %s4746_s21  ;;  %3642 = vrot.lane.b32.xlu0 %v4831_v15, %s4748_s23  ;;  %v1821_v14 = vsel %vm6354_vm15, %v5082_v56, 0 }
 0x151   : > { %4508 = vmatprep.subr.msk.bf16.mxu0 %vm6354_vm15, %v1690_v12  ;;  %v1695_v27 = vsel %vm6354_vm15, %v1689_v9, 0 }
 0x152   : > { %1701 = vmatpush1.bf16.msra.mxu0 %v1695_v27 }
 0x153   : > { %v2012_v21 = vpop.permute.xlu1 %2011  ;;  %v2014_v2 = vpop.permute.xlu0 %2013  ;;  %4517 = vmatprep.subr.msk.bf16.mxu0 %vm6354_vm15, %v5090_v46 }
 0x154   : > { %3644 = vrot.lane.b32.xlu1 %v4835_v16, %s4748_s23  ;;  %3750 = vrot.lane.b32.xlu0 %v5516_v48, %s4747_s22 }
 0x155   : > { %4503 = vmatmul.mubr.msk.bf16.vlgmr.msra.gmra.mrb[36].mxu1 %vm286_vm1, %v4492_v50 }
 0x156   : > { %4509 = vmatmul.mubr.msk.bf16.vlgmr.msra.gmra.mrb[40].mxu0 %vm286_vm1, %v4504_v3  ;;  %1804 = vmatprep.mubr.bf16.mxu1 %v4745_v1  ;;  %v4541_v3 = vld [vmem:[%s6348_s1 + $0x6c] sm:$0xf] }
 0x157   : > { %1827 = vmatpush1.bf16.msra.mxu0 %v1821_v14  ;;  %v1758_v56 = vpop.permute.xlu1 %1757  ;;  %v1756_v46 = vpop.permute.xlu0 %1755  ;;  %1858 = vmatprep.mubr.bf16.mxu0 %v4745_v1 }
 0x158   : > { %4527 = vmatprep.subr.msk.bf16.mxu0 %vm6354_vm15, %v4526_v54  ;;  %v1761_v60 = vsel %vm512_vm7, %v1756_v46, %v1758_v56  ;;  %v1762_v4 = vsel %vm512_vm7, %v1758_v56, %v5475_v28  ;;  %3752 = vrot.lane.b32.xlu1 %v5540_v19, %s4747_s22  ;;  %v2080_v28 = vsel %vm4814_vm5, 0, %v2078_v35 }
 0x159   : > { %v1767_v39 = vsel %vm6354_vm15, %v1761_v60, 0  ;;  %4514 = vmatprep.subr.msk.bf16.mxu1 %vm6354_vm15, %v1762_v4  ;;  %3912 = vrot.lane.b32.xlu0 %v4831_v15, %s4752_s27  ;;  %v4535_v32 = vcombine.high %v2080_v28, %v2080_v28  ;;  %v4534_v59 = vcombine.low %v2080_v28, %v2080_v28  ;;  %v4553_v4 = vld [vmem:[%s6348_s1 + $0x74] sm:$0xf] }
 0x15a   : > { %1773 = vmatpush1.bf16.msra.mxu1 %v1767_v39 }
 0x15b   : > { %v2016_v26 = vpop.permute.xlu1 %2015  ;;  %4522 = vmatprep.subr.msk.bf16.mxu1 %vm6354_vm15, %v4521_v55  ;;  %v2171_v29 = vpop.permute.xlu0 %2170 }
 0x15c   : > { %3914 = vrot.lane.b32.xlu1 %v4835_v16, %s4752_s27  ;;  %v2018_v23 = vsel %vm6353_vm8, %v2014_v2, %v2016_v26 }
 0x15d   : > { %4515 = vmatmul.mubr.msk.bf16.vlgmr.msra.gmra.mrb[40].mxu1 %vm286_vm1, %v4510_v53  ;;  %4020 = vrot.lane.b32.xlu0 %v5516_v48, %s4753_s28  ;;  %v2017_v48 = vsel %vm6353_vm8, %v2012_v21, %v2014_v2  ;;  %v2444_v53 = vsel %vm6354_vm15, %v5148_v42, 0 }
 0x15e   : > { %4518 = vmatmul.mubr.msk.bf16.vlgmr.msra.gmra.mrb[44].mxu0 %vm286_vm1, %v4516_v47  ;;  %1896 = vmatpush1.bf16.msra.mxu1 %v1890_v51  ;;  %v2023_v44 = vsel %vm6354_vm15, %v2017_v48, 0 }
 0x15f   : > { %1965 = vmatpush1.bf16.msra.mxu0 %v1959_v5  ;;  %v2173_v0 = vpop.permute.xlu1 %2172  ;;  %4531 = vmatprep.subr.msk.bf16.mxu1 %vm6354_vm15, %v2018_v23  ;;  %v2175_v58 = vpop.permute.xlu0 %2174 }
 0x160   : > { %4536 = vmatprep.subr.msk.bf16.mxu0 %vm6354_vm15, %v4535_v32  ;;  %1927 = vmatprep.mubr.bf16.mxu1 %v4745_v1  ;;  %v2177_v33 = vsel %vm283_vm14, %v2173_v0, %v2175_v58 }
 0x161   : > { %1996 = vmatprep.mubr.bf16.mxu0 %v4745_v1  ;;  %4022 = vrot.lane.b32.xlu1 %v5540_v19, %s4753_s28 }
 0x162   : > { %4213 = vrot.lane.b32.xlu0 %v4831_v15, %s4751_s26  ;;  %v2092_v15 = vsel %vm6354_vm15, %v4534_v59, 0  ;;  %v4565_v59 = vld [vmem:[%s6348_s1 + $0x7c] sm:$0xf] }
 0x163   : > { %v2237_v17 = vpop.permute.xlu1 %2236  ;;  %v2239_v11 = vpop.permute.xlu0 %2238 }
 0x164   : > { %v2242_v19 = vsel %vm352_vm2, %v2237_v17, %v2239_v11 }
 0x165   : > { %4523 = vmatmul.mubr.msk.bf16.vlgmr.msra.gmra.mrb[44].mxu1 %vm286_vm1, %v4519_v57  ;;  %4215 = vrot.lane.b32.xlu1 %v4835_v16, %s4751_s26  ;;  %v2176_v16 = vsel %vm283_vm14, %v2171_v29, %v2173_v0  ;;  %v5645_v52 = vpop.f32.mrb[0].mxu0  ;;  %v2248_v12 = vsel %vm6354_vm15, %v2242_v19, 0 }
 0x166   : > { %4528 = vmatmul.mubr.msk.bf16.vlgmr.msra.gmra.mrb[48].mxu0 %vm286_vm1, %v4524_v43  ;;  %2029 = vmatpush1.bf16.msra.mxu1 %v2023_v44  ;;  %v5652_v25 = vpop.f32.mrb[1].mxu0  ;;  %v2182_v6 = vsel %vm6354_vm15, %v2176_v16, 0  ;;  %v4568_v43 = vld [vmem:[%s6348_s1 + $0x80] sm:$0xf] }
 0x167   : > { %2098 = vmatpush1.bf16.msra.mxu0 %v2092_v15  ;;  %4546 = vmatprep.subr.msk.bf16.mxu1 %vm6354_vm15, %v2177_v33  ;;  %v2241_v40 = vpop.permute.xlu1 %2240  ;;  %v2307_v62 = vpop.permute.xlu0 %2306 }
 0x168   : > { %v2243_v18 = vsel %vm352_vm2, %v2239_v11, %v2241_v40  ;;  %2060 = vmatprep.mubr.bf16.mxu1 %v4745_v1  ;;  %2129 = vmatprep.mubr.bf16.mxu0 %v4745_v1  ;;  %v335_v9 = vpop.f32.mrb[2].mxu0 }
 0x169   : > { %4551 = vmatprep.subr.msk.bf16.mxu0 %vm6354_vm15, %v2243_v18  ;;  %v336_v38 = vpop.f32.mrb[3].mxu0 }
 0x16b   : > { %v2309_v30 = vpop.permute.xlu1 %2308  ;;  %v2311_v36 = vpop.permute.xlu0 %2310 }
 0x16c   : > { %v2313_v31 = vsel %vm432_vm3, %v2309_v30, %v2311_v36  ;;  %v2312_v50 = vsel %vm432_vm3, %v2307_v62, %v2309_v30 }
 0x16d   : > { %4532 = vmatmul.mubr.msk.bf16.vlgmr.msra.gmra.mrb[48].mxu1 %vm286_vm1, %v4529_v49  ;;  %v2318_v45 = vsel %vm6354_vm15, %v2312_v50, 0 }
 0x16e   : > { %4537 = vmatmul.mubr.msk.bf16.vlgmr.msra.gmra.mrb[52].mxu0 %vm286_vm1, %v4533_v61  ;;  %2188 = vmatpush1.bf16.msra.mxu1 %v2182_v6  ;;  %v4573_v61 = vld [vmem:[%s6348_s1 + $0x84] sm:$0xf] }
 0x16f   : > { %2254 = vmatpush1.bf16.msra.mxu0 %v2248_v12  ;;  %4557 = vmatprep.subr.msk.bf16.mxu1 %vm6354_vm15, %v2313_v31  ;;  %v2379_v24 = vpop.permute.xlu1 %2378  ;;  %v2381_v27 = vpop.permute.xlu0 %2380  ;;  %v4578_v12 = vld [vmem:[%s6348_s1 + $0x88] sm:$0xf] }
 0x170   : > { %2219 = vmatprep.mubr.bf16.mxu1 %v4745_v1  ;;  %2285 = vmatprep.mubr.bf16.mxu0 %v4745_v1  ;;  %v2384_v37 = vsel %vm512_vm7, %v2379_v24, %v2381_v27 }
 0x171   : > { %v2390_v7 = vsel %vm6354_vm15, %v2384_v37, 0 }
 0x173   : > { %v2383_v21 = vpop.permute.xlu1 %2382  ;;  %v2493_v2 = vpop.permute.xlu0 %2492 }
 0x174   : > { %v2385_v14 = vsel %vm512_vm7, %v2381_v27, %v2383_v21  ;;  %v2496_v56 = vrot.slane %v2493_v2, 4  ;;  %v4754_v21 = vmov 0.0|0.0  }
 0x175   : > { %4547 = vmatmul.mubr.msk.bf16.vlgmr.msra.gmra.mrb[52].mxu1 %vm286_vm1, %v4542_v34  ;;  %4563 = vmatprep.subr.msk.bf16.mxu0 %vm6354_vm15, %v2385_v14  ;;  %v4582_v14 = vld [vmem:[%s6348_s1 + $0x8c] sm:$0xf] }
 0x176   : > { %4552 = vmatmul.mubr.msk.bf16.vlgmr.msra.gmra.mrb[56].mxu0 %vm286_vm1, %v4541_v3  ;;  %2324 = vmatpush1.bf16.msra.mxu1 %v2318_v45 }
 0x177   : > { %2396 = vmatpush1.bf16.msra.mxu0 %v2390_v7  ;;  %v2495_v54 = vpop.permute.xlu1 %2494  ;;  %2355 = vmatprep.mubr.bf16.mxu1 %v4745_v1  ;;  %v4591_v7 = vld [vmem:[%s6348_s1 + $0x94] sm:$0xf] }
 0x178   : > { %v2497_v46 = vrot.slane %v2495_v54, 4  ;;  %v2562_v35 = vpop.permute.xlu0 %2561  ;;  %2427 = vmatprep.mubr.bf16.mxu0 %v4745_v1  ;;  %4566 = vmatprep.subr.msk.bf16.mxu1 %vm6354_vm15, %v5152_v63 }
 0x179   : > { %v2565_v63 = vrot.slane %v2562_v35, 4  ;;  %3468 = vrot.lane.b32.xlu0 %v4754_v21, %s4749_s24  ;;  %3474 = vrot.lane.b32.xlu1 %v4754_v21, %s4749_s24 }
 0x17a   : > { %v2498_v60 = vsel %vm6354_vm15, %v2496_v56, %v2497_v46 }
 0x17b   : > { %v2499_v55 = vsel %vm490_vm12, %v2498_v60, %v2495_v54  ;;  %v2564_v39 = vpop.permute.xlu1 %2563 }
 0x17c   : > { %v2501_v20 = vsel %vm4814_vm5, 0, %v2499_v55  ;;  %v2566_v28 = vrot.slane %v2564_v39, 4  ;;  %v2635_v26 = vpop.permute.xlu0 %2634 }
 0x17d   : > { %v4570_v29 = vcombine.high %v2501_v20, %v2501_v20  ;;  %4558 = vmatmul.mubr.msk.bf16.vlgmr.msra.gmra.mrb[56].mxu1 %vm286_vm1, %v4553_v4  ;;  %v4569_v47 = vcombine.low %v2501_v20, %v2501_v20  ;;  %3480 = vrot.lane.b32.xlu0 %v4754_v21, %s4749_s24 }
 0x17e   : > { %v2567_v51 = vsel %vm6354_vm15, %v2565_v63, %v2566_v28  ;;  %4564 = vmatmul.mubr.msk.bf16.vlgmr.msra.gmra.mrb[60].mxu0 %vm286_vm1, %v4559_v41  ;;  %2450 = vmatpush1.bf16.msra.mxu1 %v2444_v53  ;;  %v4602_v53 = vld [vmem:[%s6348_s1 + $0x98] sm:$0xf] }
 0x17f   : > { %v2568_v32 = vsel %vm410_vm9, %v2567_v51, %v2564_v39  ;;  %v2637_v23 = vpop.permute.xlu1 %2636  ;;  %4571 = vmatprep.subr.msk.bf16.mxu0 %vm6354_vm15, %v4570_v29  ;;  %v2513_v42 = vsel %vm6354_vm15, %v4569_v47, 0  ;;  %2481 = vmatprep.mubr.bf16.mxu1 %v4745_v1  ;;  %v4590_v39 = vld [vmem:[%s6348_s1 + $0x90] sm:$0xf]  ;;  %v3067_v29 = vsel %vm6354_vm15, %v5269_v22, 0  ;;  %v4608_v22 = vld [vmem:[%s6348_s1 + $0x9c] sm:$0xf] }
 0x180   : > { %v2570_v5 = vsel %vm4805_vm4, 0, %v2568_v32  ;;  %v2639_v0 = vpop.permute.xlu0 %2638  ;;  %2519 = vmatpush1.bf16.msra.mxu0 %v2513_v42  ;;  %2550 = vmatprep.mubr.bf16.mxu0 %v4745_v1  ;;  %v2640_v17 = vsel %vm6353_vm8, %v2635_v26, %v2637_v23 }
 0x181   : > { %v4575_v58 = vcombine.high %v2570_v5, %v2570_v5  ;;  %v2641_v48 = vsel %vm6353_vm8, %v2637_v23, %v2639_v0  ;;  %v4574_v57 = vcombine.low %v2570_v5, %v2570_v5  ;;  %v2646_v62 = vsel %vm6354_vm15, %v2640_v17, 0  ;;  %4693 = vrot.lane.b32.xlu0 %v4745_v1, %s4753_s28  ;;  %4688 = vrot.lane.b32.xlu1 %v4745_v1, %s4751_s26  ;;  %v4614_v5 = vld [vmem:[%s6348_s1 + $0xa0] sm:$0xf] }
 0x182   : > { %4580 = vmatprep.subr.msk.bf16.mxu0 %vm6354_vm15, %v2641_v48 }
 0x183   : > { %v2695_v11 = vpop.permute.xlu1 %2694  ;;  %4576 = vmatprep.subr.msk.bf16.mxu1 %vm6354_vm15, %v4575_v58  ;;  %v2582_v44 = vsel %vm6354_vm15, %v4574_v57, 0 }
 0x184   : > { %v2698_v33 = vrot.slane %v2695_v11, 4  ;;  %v2697_v15 = vpop.permute.xlu0 %2696 }
 0x185   : > { %v2699_v40 = vrot.slane %v2697_v15, 4  ;;  %4567 = vmatmul.mubr.msk.bf16.vlgmr.msra.gmra.mrb[60].mxu1 %vm286_vm1, %v4565_v59  ;;  %3682 = vrot.lane.b32.xlu0 %v4745_v1, %s4753_s28 }
 0x186   : > { %4572 = vmatmul.mubr.msk.bf16.vlgmr.msra.gmra.mrb[64].mxu0 %vm286_vm1, %v4568_v43  ;;  %2588 = vmatpush1.bf16.msra.mxu1 %v2582_v44 }
 0x187   : > { %v2700_v18 = vsel %vm6354_vm15, %v2698_v33, %v2699_v40  ;;  %2652 = vmatpush1.bf16.msra.mxu0 %v2646_v62  ;;  %v2794_v16 = vpop.permute.xlu1 %2793  ;;  %2619 = vmatprep.mubr.bf16.mxu1 %v4745_v1 }
 0x188   : > { %v2701_v49 = vsel %vm6352_vm6, %v2700_v18, %v2697_v15  ;;  %v2796_v19 = vpop.permute.xlu0 %2795  ;;  %2683 = vmatprep.mubr.bf16.mxu0 %v4745_v1  ;;  %3568 = vrot.lane.b32.xlu1 %v4745_v1, %s4751_s26 }
 0x189   : > { %v2703_v30 = vsel %vm4814_vm5, 0, %v2701_v49  ;;  %v2799_v6 = vsel %vm283_vm14, %v2794_v16, %v2796_v19  ;;  %3790 = vrot.lane.b32.xlu0 %v4745_v1, %s4752_s27 }
 0x18a   : > { %v4584_v36 = vcombine.high %v2703_v30, %v2703_v30  ;;  %v4583_v31 = vcombine.low %v2703_v30, %v2703_v30  ;;  %v2805_v50 = vsel %vm6354_vm15, %v2799_v6, 0  ;;  %v4617_v30 = vld [vmem:[%s6348_s1 + $0xa4] sm:$0xf] }
 0x18b   : > { %v2798_v9 = vpop.permute.xlu1 %2797 }
 0x18c   : > { %v2800_v38 = vsel %vm283_vm14, %v2796_v19, %v2798_v9  ;;  %4585 = vmatprep.subr.msk.bf16.mxu1 %vm6354_vm15, %v4584_v36  ;;  %v2860_v24 = vpop.permute.xlu0 %2859  ;;  %v2715_v27 = vsel %vm6354_vm15, %v4583_v31, 0  ;;  %4698 = vrot.lane.b32.xlu1 %v4745_v1, %s4752_s27 }
 0x18d   : > { %4577 = vmatmul.mubr.msk.bf16.vlgmr.msra.gmra.mrb[64].mxu1 %vm286_vm1, %v4573_v61  ;;  %4595 = vmatprep.subr.msk.bf16.mxu0 %vm6354_vm15, %v2800_v38 }
 0x18e   : > { %2721 = vmatpush1.bf16.msra.mxu1 %v2715_v27  ;;  %4581 = vmatmul.mubr.msk.bf16.vlgmr.msra.gmra.mrb[68].mxu0 %vm286_vm1, %v4578_v12  ;;  %v4622_v12 = vld [vmem:[%s6348_s1 + $0xa8] sm:$0xf] }
 0x18f   : > { %2811 = vmatpush1.bf16.msra.mxu0 %v2805_v50  ;;  %v2862_v34 = vpop.permute.xlu1 %2861  ;;  %2752 = vmatprep.mubr.bf16.mxu1 %v4745_v1 }
 0x190   : > { %v2864_v37 = vpop.permute.xlu0 %2863  ;;  %2842 = vmatprep.mubr.bf16.mxu0 %v4745_v1  ;;  %v2865_v3 = vsel %vm352_vm2, %v2860_v24, %v2862_v34  ;;  %4703 = vrot.lane.b32.xlu0 %v4745_v1, %s4747_s22 }
 0x191   : > { %v2866_v2 = vsel %vm352_vm2, %v2862_v34, %v2864_v37  ;;  %v2871_v56 = vsel %vm6354_vm15, %v2865_v3, 0  ;;  %4708 = vrot.lane.b32.xlu1 %v4745_v1, %s4748_s23  ;;  %v4631_v3 = vld [vmem:[%s6348_s1 + $0xb0] sm:$0xf] }
 0x192   : > { %4600 = vmatprep.subr.msk.bf16.mxu1 %vm6354_vm15, %v2866_v2  ;;  %v4627_v2 = vld [vmem:[%s6348_s1 + $0xac] sm:$0xf] }
 0x193   : > { %v2930_v45 = vpop.permute.xlu1 %2929 }
 0x194   : > { %v2932_v54 = vpop.permute.xlu0 %2931  ;;  %4064 = vrot.lane.b32.xlu0 %v4745_v1, %s4748_s23 }
 0x195   : > { %4586 = vmatmul.mubr.msk.bf16.vlgmr.msra.gmra.mrb[68].mxu1 %vm286_vm1, %v4582_v14  ;;  %v2935_v46 = vsel %vm432_vm3, %v2930_v45, %v2932_v54  ;;  %3956 = vrot.lane.b32.xlu1 %v4745_v1, %s4747_s22 }
 0x196   : > { %2877 = vmatpush1.bf16.msra.mxu1 %v2871_v56  ;;  %4596 = vmatmul.mubr.msk.bf16.vlgmr.msra.gmra.mrb[72].mxu0 %vm286_vm1, %v4591_v7  ;;  %v2941_v55 = vsel %vm6354_vm15, %v2935_v46, 0 }
 0x197   : > { %v2934_v35 = vpop.permute.xlu1 %2933  ;;  %2908 = vmatprep.mubr.bf16.mxu1 %v4745_v1  ;;  %2978 = vmatprep.mubr.bf16.mxu0 %v4745_v1 }
 0x198   : > { %v2936_v60 = vsel %vm432_vm3, %v2932_v54, %v2934_v35  ;;  %v3002_v4 = vpop.permute.xlu0 %3001 }
 0x199   : > { %4606 = vmatprep.subr.msk.bf16.mxu0 %vm6354_vm15, %v2936_v60 }
 0x19a   : > { %2947 = vmatpush1.bf16.msra.mxu0 %v2941_v55 }
 0x19b   : > { %v3004_v41 = vpop.permute.xlu1 %3003  ;;  %4615 = vmatprep.subr.msk.bf16.mxu0 %vm6354_vm15, %v5288_v13 }
 0x19c   : > { %v3007_v20 = vsel %vm512_vm7, %v3002_v4, %v3004_v41  ;;  %v3006_v63 = vpop.permute.xlu0 %3005 }
 0x19d   : > { %v3013_v28 = vsel %vm6354_vm15, %v3007_v20, 0  ;;  %v3008_v26 = vsel %vm512_vm7, %v3004_v41, %v3006_v63  ;;  %4601 = vmatmul.mubr.msk.bf16.vlgmr.msra.gmra.mrb[72].mxu1 %vm286_vm1, %v4590_v39 }
 0x19e   : > { %4612 = vmatprep.subr.msk.bf16.mxu1 %vm6354_vm15, %v3008_v26  ;;  %4607 = vmatmul.mubr.msk.bf16.vlgmr.msra.gmra.mrb[76].mxu0 %vm286_vm1, %v4602_v53 }
 0x19f   : > { %3019 = vmatpush1.bf16.msra.mxu1 %v3013_v28  ;;  %v3116_v13 = vpop.permute.xlu1 %3115  ;;  %3050 = vmatprep.mubr.bf16.mxu1 %v4745_v1 }
 0x1a0   : > { %v3119_v47 = vrot.slane %v3116_v13, 4  ;;  %v3118_v51 = vpop.permute.xlu0 %3117  ;;  %3073 = vmatpush1.bf16.msra.mxu0 %v3067_v29  ;;  %3104 = vmatprep.mubr.bf16.mxu0 %v4745_v1 }
 0x1a1   : > { %v3120_v32 = vrot.slane %v3118_v51, 4 }
 0x1a3   : > { %v3121_v23 = vsel %vm6354_vm15, %v3119_v47, %v3120_v32  ;;  %v3185_v42 = vpop.permute.xlu1 %3184 }
 0x1a4   : > { %v3122_v0 = vsel %vm490_vm12, %v3121_v23, %v3118_v51  ;;  %v3188_v58 = vrot.slane %v3185_v42, 4  ;;  %v3187_v48 = vpop.permute.xlu0 %3186 }
 0x1a5   : > { %v3124_v57 = vsel %vm4814_vm5, 0, %v3122_v0  ;;  %v3189_v59 = vrot.slane %v3187_v48, 4  ;;  %4613 = vmatmul.mubr.msk.bf16.vlgmr.msra.gmra.mrb[76].mxu1 %vm286_vm1, %v4608_v22 }
 0x1a6   : > { %v4618_v17 = vcombine.low %v3124_v57, %v3124_v57  ;;  %v4619_v11 = vcombine.high %v3124_v57, %v3124_v57  ;;  %4616 = vmatmul.mubr.msk.bf16.vlgmr.msra.gmra.mrb[80].mxu0 %vm286_vm1, %v4614_v5  ;;  %3173 = vmatprep.mubr.bf16.mxu1 %v4745_v1 }
 0x1a7   : > { %v3190_v43 = vsel %vm6354_vm15, %v3188_v58, %v3189_v59  ;;  %v3318_v44 = vpop.permute.xlu1 %3317  ;;  %3242 = vmatprep.mubr.bf16.mxu0 %v4745_v1 }
 0x1a8   : > { %v3191_v33 = vsel %vm410_vm9, %v3190_v43, %v3187_v48  ;;  %v3321_v15 = vrot.slane %v3318_v44, 4  ;;  %4620 = vmatprep.subr.msk.bf16.mxu1 %vm6354_vm15, %v4619_v11  ;;  %v3320_v40 = vpop.permute.xlu0 %3319  ;;  %v3136_v62 = vsel %vm6354_vm15, %v4618_v17, 0 }
 0x1a9   : > { %v3193_v18 = vsel %vm4805_vm4, 0, %v3191_v33  ;;  %v3322_v16 = vrot.slane %v3320_v40, 4  ;;  %3142 = vmatpush1.bf16.msra.mxu1 %v3136_v62 }
 0x1aa   : > { %v4623_v49 = vcombine.low %v3193_v18, %v3193_v18  ;;  %v4624_v19 = vcombine.high %v3193_v18, %v3193_v18 }
 0x1ab   : > { %v3323_v36 = vsel %vm6354_vm15, %v3321_v15, %v3322_v16  ;;  %v3258_v61 = vpop.permute.xlu1 %3257 }
 0x1ac   : > { %v3324_v8 = vsel %vm6352_vm6, %v3323_v36, %v3320_v40  ;;  %4625 = vmatprep.subr.msk.bf16.mxu0 %vm6354_vm15, %v4624_v19  ;;  %v3260_v31 = vpop.permute.xlu0 %3259  ;;  %v3205_v6 = vsel %vm6354_vm15, %v4623_v49, 0 }
 0x1ad   : > { %v3326_v9 = vsel %vm4814_vm5, 0, %v3324_v8  ;;  %3211 = vmatpush1.bf16.msra.mxu0 %v3205_v6  ;;  %4621 = vmatmul.mubr.msk.bf16.vlgmr.msra.gmra.mrb[80].mxu1 %vm286_vm1, %v4617_v30  ;;  %v3263_v27 = vsel %vm6353_vm8, %v3258_v61, %v3260_v31 }
 0x1ae   : > { %v4632_v38 = vcombine.low %v3326_v9, %v3326_v9  ;;  %v4633_v24 = vcombine.high %v3326_v9, %v3326_v9  ;;  %3306 = vmatprep.mubr.bf16.mxu1 %v4745_v1  ;;  %v3269_v37 = vsel %vm6354_vm15, %v3263_v27, 0 }
 0x1af   : > { %v3262_v50 = vpop.permute.xlu1 %3261 }
 0x1b0   : > { %v3264_v10 = vsel %vm6353_vm8, %v3260_v31, %v3262_v50  ;;  %4626 = vmatmul.mubr.msk.bf16.vlgmr.msra.gmra.mrb[84].mxu0 %vm286_vm1, %v4622_v12  ;;  %4634 = vmatprep.subr.msk.bf16.mxu0 %vm6354_vm15, %v4633_v24  ;;  %v3338_v34 = vsel %vm6354_vm15, %v4632_v38, 0 }
 0x1b1   : > { %3344 = vmatpush1.bf16.msra.mxu0 %v3338_v34  ;;  %4629 = vmatprep.subr.msk.bf16.mxu1 %vm6354_vm15, %v3264_v10 }
 0x1b2   : > { %3275 = vmatpush1.bf16.msra.mxu1 %v3269_v37  ;;  %3375 = vmatprep.mubr.bf16.mxu0 %v4745_v1 }
 0x1b5   : > { %4630 = vmatmul.mubr.msk.bf16.vlgmr.msra.gmra.mrb[84].mxu1 %vm286_vm1, %v4627_v2 }
 0x1b6   : > { %3538 = vmatprep.mubr.bf16.mxu1 %v4745_v1 }
 0x1b8   : > { %4635 = vmatmul.mubr.msk.bf16.vlgmr.msra.gmra.mrb[88].mxu0 %vm286_vm1, %v4631_v3 }
 0x1b9   : > { %3625 = vmatprep.mubr.bf16.mxu0 %v4745_v1 }
 0x1c0   : > { %v897_v8 = vpop.permute.xlu0 %896 }
 0x1c1   : > { %v5855_v6 = vpop.permute.xlu1 %1519 }
 0x1c4   : > { %v5857_v2 = vpop.permute.xlu0 %2765 }
 0x1de   : > { %v398_v14 = vpop.f32.mrb[0].mxu1 }
 0x1df   : > { %v399_v45 = vadd.f32 %v398_v14, %v5645_v52  ;;  %v400_v7 = vpop.f32.mrb[1].mxu1  ;;  %v5859_v14 = vpop.permute.xlu1 %2142 }
 0x1e0   : > { %v401_v54 = vadd.f32 %v400_v7, %v5652_v25  ;;  %v478_v56 = vpop.f32.mrb[4].mxu0  ;;  %v402_v46 = vpop.f32.mrb[2].mxu1 }
 0x1e1   : > { %v485_v35 = vadd.f32 %v478_v56, %v399_v45  ;;  %v480_v60 = vpop.f32.mrb[5].mxu0  ;;  %v403_v4 = vpop.f32.mrb[3].mxu1 }
 0x1e2   : > { %v486_v55 = vadd.f32 %v480_v60, %v401_v54  ;;  %v482_v39 = vpop.f32.mrb[6].mxu0 }
 0x1e3   : > { %v483_v41 = vpop.f32.mrb[7].mxu0 }
 0x1e8   : > { %v558_v53 = vpop.f32.mrb[4].mxu1 }
 0x1e9   : > { %v565_v20 = vadd.f32 %v558_v53, %v485_v35  ;;  %v560_v63 = vpop.f32.mrb[5].mxu1  ;;  %v612_v28 = vpop.f32.mrb[8].mxu0 }
 0x1ea   : > { %v566_v26 = vadd.f32 %v560_v63, %v486_v55  ;;  %v614_v29 = vpop.f32.mrb[9].mxu0  ;;  %v562_v13 = vpop.f32.mrb[6].mxu1 }
 0x1eb   : > { %v619_v47 = vadd.f32 %v612_v28, %v565_v20  ;;  %v563_v52 = vpop.f32.mrb[7].mxu1  ;;  %v616_v51 = vpop.f32.mrb[10].mxu0 }
 0x1ec   : > { %v620_v32 = vadd.f32 %v614_v29, %v566_v26  ;;  %v617_v25 = vpop.f32.mrb[11].mxu0  ;;  %v3440_v53 = vpop.permute.xlu0 %3439 }
 0x1ed   : > { %v5861_v20 = vpop.permute.xlu1 %3388 }
 0x1f0   : > { %v682_v22 = vpop.f32.mrb[8].mxu1 }
 0x1f1   : > { %v689_v23 = vadd.f32 %v682_v22, %v619_v47  ;;  %v684_v42 = vpop.f32.mrb[9].mxu1  ;;  %v751_v5 = vpop.f32.mrb[12].mxu0 }
 0x1f2   : > { %v690_v0 = vadd.f32 %v684_v42, %v620_v32  ;;  %v753_v58 = vpop.f32.mrb[13].mxu0  ;;  %v686_v48 = vpop.f32.mrb[10].mxu1 }
 0x1f3   : > { %v758_v57 = vadd.f32 %v751_v5, %v689_v23  ;;  %v687_v59 = vpop.f32.mrb[11].mxu1  ;;  %v755_v17 = vpop.f32.mrb[14].mxu0 }
 0x1f4   : > { %v759_v11 = vadd.f32 %v753_v58, %v690_v0  ;;  %v756_v43 = vpop.f32.mrb[15].mxu0  ;;  %v3643_v42 = vpop.permute.xlu0 %3642 }
 0x1f5   : > { %v5863_v5 = vpop.permute.xlu1 %3441 }
 0x1f6   : > { %vm3446_vm13 = vcmp.ne.s16.totalorder %v5863_v5, 0 }
 0x1f8   : > { %v816_v44 = vpop.f32.mrb[12].mxu1 }
 0x1f9   : > { %v823_v33 = vadd.f32 %v816_v44, %v758_v57  ;;  %v818_v15 = vpop.f32.mrb[13].mxu1  ;;  %v885_v40 = vpop.f32.mrb[16].mxu0 }
 0x1fa   : > { %v824_v62 = vadd.f32 %v818_v15, %v759_v11  ;;  %v887_v18 = vpop.f32.mrb[17].mxu0  ;;  %v820_v16 = vpop.f32.mrb[14].mxu1 }
 0x1fb   : > { %v892_v49 = vadd.f32 %v885_v40, %v823_v33  ;;  %v821_v19 = vpop.f32.mrb[15].mxu1  ;;  %v889_v30 = vpop.f32.mrb[18].mxu0 }
 0x1fc   : > { %v5853_v36 = vadd.f32 %v887_v18, %v824_v62  ;;  %v890_v61 = vpop.f32.mrb[19].mxu0  ;;  %v3751_v62 = vpop.permute.xlu0 %3750 }
 0x1fd   : > { %v5865_v18 = vpop.permute.xlu1 %3644  ;;  %v899_v19 = vadd.f32 %v897_v8, %v892_v49 }
 0x1fe   : > { %v5872_v49 = vsel %vm410_vm9, %v3643_v42, %v5865_v18 }
 0x1ff   : > { %vm3648_vm4 = vcmp.ne.s16.totalorder %v5872_v49, 0 }
 0x200   : > { %v975_v31 = vpop.f32.mrb[16].mxu1 }
 0x201   : > { %v977_v9 = vpop.f32.mrb[17].mxu1  ;;  %v1041_v12 = vpop.f32.mrb[20].mxu0 }
 0x202   : > { %v979_v38 = vpop.f32.mrb[18].mxu1  ;;  %v1042_v24 = vadd.f32 %v1041_v12, %v975_v31  ;;  %v1043_v27 = vpop.f32.mrb[21].mxu0 }
 0x203   : > { %v980_v50 = vpop.f32.mrb[19].mxu1  ;;  %v1044_v10 = vadd.f32 %v1043_v27, %v977_v9  ;;  %v1045_v34 = vpop.f32.mrb[22].mxu0  ;;  %v900_v9 = vadd.f32 %v897_v8, %v5853_v36  ;;  %v5878_v8 = vsel %vm6352_vm6, %v3440_v53, %v5863_v5  ;;  %vm3649_vm6 = vcmp.ne.s16.totalorder %v5865_v18, 0 }
 0x204   : > { %v1046_v37 = vpop.f32.mrb[23].mxu0  ;;  %vm3445_vm5 = vcmp.ne.s16.totalorder %v5878_v8, 0 }
 0x208   : > { %v1111_v3 = vpop.f32.mrb[20].mxu1 }
 0x209   : > { %v1118_v45 = vadd.f32 %v1111_v3, %v1042_v24  ;;  %v1113_v7 = vpop.f32.mrb[21].mxu1  ;;  %v1183_v54 = vpop.f32.mrb[24].mxu0  ;;  %v901_v3 = vmax.f32 %v899_v19, 0.0 }
 0x20a   : > { %v1119_v56 = vadd.f32 %v1113_v7, %v1044_v10  ;;  %v1185_v46 = vpop.f32.mrb[25].mxu0  ;;  %v1115_v35 = vpop.f32.mrb[22].mxu1  ;;  %v902_v7 = vmax.f32 %v900_v9, 0.0 }
 0x20b   : > { %v1190_v60 = vadd.f32 %v1183_v54, %v1118_v45  ;;  %v1116_v4 = vpop.f32.mrb[23].mxu1  ;;  %v1187_v55 = vpop.f32.mrb[26].mxu0 }
 0x20c   : > { %v1191_v39 = vadd.f32 %v1185_v46, %v1119_v56  ;;  %v1188_v41 = vpop.f32.mrb[27].mxu0  ;;  %v5874_v54 = vpop.permute.xlu0 %3912 }
 0x20d   : > { %v5882_v46 = vpop.permute.xlu1 %3752  ;;  %vm3917_vm0 = vcmp.ne.s16.totalorder %v5874_v54, 0 }
 0x20e   : > { %vm3757_vm1 = vcmp.ne.s16.totalorder %v5882_v46, 0 }
 0x210   : > { %v1237_v63 = vpop.f32.mrb[24].mxu1 }
 0x211   : > { %v1244_v28 = vadd.f32 %v1237_v63, %v1190_v60  ;;  %v1239_v26 = vpop.f32.mrb[25].mxu1  ;;  %v1306_v29 = vpop.f32.mrb[28].mxu0  ;;  %v5894_v63 = vsel %vm490_vm12, %v3751_v62, %v5882_v46 }
 0x212   : > { %v1245_v13 = vadd.f32 %v1239_v26, %v1191_v39  ;;  %v1308_v47 = vpop.f32.mrb[29].mxu0  ;;  %v1241_v52 = vpop.f32.mrb[26].mxu1  ;;  %vm3756_vm11 = vcmp.ne.s16.totalorder %v5894_v63, 0 }
 0x213   : > { %v1313_v51 = vadd.f32 %v1306_v29, %v1244_v28  ;;  %v1242_v32 = vpop.f32.mrb[27].mxu1  ;;  %v1310_v25 = vpop.f32.mrb[30].mxu0 }
 0x214   : > { %v1314_v22 = vadd.f32 %v1308_v47, %v1245_v13  ;;  %v1311_v23 = vpop.f32.mrb[31].mxu0  ;;  %v5896_v13 = vpop.permute.xlu0 %4020 }
 0x215   : > { %vm4025_vm10 = vcmp.ne.s16.totalorder %v5896_v13, 0  ;;  %v3915_v25 = vpop.permute.xlu1 %3914 }
 0x218   : > { %v1375_v0 = vpop.f32.mrb[28].mxu1 }
 0x219   : > { %v1382_v58 = vadd.f32 %v1375_v0, %v1313_v51  ;;  %v1377_v48 = vpop.f32.mrb[29].mxu1  ;;  %v1439_v57 = vpop.f32.mrb[32].mxu0 }
 0x21a   : > { %v1383_v59 = vadd.f32 %v1377_v48, %v1314_v22  ;;  %v1441_v17 = vpop.f32.mrb[33].mxu0  ;;  %v1379_v11 = vpop.f32.mrb[30].mxu1 }
 0x21b   : > { %v1446_v43 = vadd.f32 %v1439_v57, %v1382_v58  ;;  %v1380_v44 = vpop.f32.mrb[31].mxu1  ;;  %v1443_v33 = vpop.f32.mrb[34].mxu0 }
 0x21c   : > { %v1447_v15 = vadd.f32 %v1441_v17, %v1383_v59  ;;  %v1444_v40 = vpop.f32.mrb[35].mxu0  ;;  %v4023_v62 = vpop.permute.xlu1 %4022 }
 0x21d   : > { %v5929_v19 = vsel %vm432_vm3, %v5896_v13, %v4023_v62 }
 0x21e   : > { %vm4026_vm8 = vcmp.ne.s16.totalorder %v5929_v19, 0 }
 0x220   : > { %v1508_v16 = vpop.f32.mrb[32].mxu1 }
 0x221   : > { %v1515_v30 = vadd.f32 %v1508_v16, %v1446_v43  ;;  %v1510_v61 = vpop.f32.mrb[33].mxu1  ;;  %v1598_v31 = vpop.f32.mrb[36].mxu0 }
 0x222   : > { %v1516_v12 = vadd.f32 %v1510_v61, %v1447_v15  ;;  %v1512_v38 = vpop.f32.mrb[34].mxu1  ;;  %v1600_v24 = vpop.f32.mrb[37].mxu0 }
 0x223   : > { %v1522_v27 = vadd.f32 %v5855_v6, %v1515_v30  ;;  %v1513_v50 = vpop.f32.mrb[35].mxu1  ;;  %v1602_v10 = vpop.f32.mrb[38].mxu0  ;;  %v5934_v30 = vsel %vm512_vm7, %v5874_v54, %v3915_v25 }
 0x224   : > { %v1523_v34 = vadd.f32 %v5855_v6, %v1516_v12  ;;  %v1603_v37 = vpop.f32.mrb[39].mxu0  ;;  %vm3918_vm15 = vcmp.ne.s16.totalorder %v5934_v30, 0 }
 0x225   : > { %v1524_v45 = vmax.f32 %v1522_v27, 0.0 }
 0x226   : > { %v1525_v36 = vmax.f32 %v1523_v34, 0.0 }
 0x227   : > { %v5880_v56 = vpack.c.bf16 %v1524_v45, %v901_v3 }
 0x228   : > { %v5884_v6 = vpack.c.bf16 %v1525_v36, %v902_v7  ;;  %v1664_v35 = vpop.f32.mrb[36].mxu1 }
 0x229   : > { %v1665_v60 = vadd.f32 %v1664_v35, %v1598_v31  ;;  %v1666_v4 = vpop.f32.mrb[37].mxu1  ;;  %3470 = vrot.lane.b32.xlu0 %v5880_v56, %s4749_s24  ;;  %v1734_v55 = vpop.f32.mrb[40].mxu0  ;;  %v3651_v52 = vsel %vm3648_vm4, 0, %v5880_v56  ;;  %v3448_v32 = vsel %vm3445_vm5, 0, %v5880_v56  ;;  %v4028_v23 = vsel %vm4025_vm10, 0, %v5880_v56 }
 0x22a   : > { %v1667_v39 = vadd.f32 %v1666_v4, %v1600_v24  ;;  %3472 = vrot.lane.b32.xlu1 %v5884_v6, %s4749_s24  ;;  %v1736_v41 = vpop.f32.mrb[41].mxu0  ;;  %v1668_v53 = vpop.f32.mrb[38].mxu1  ;;  %v3759_v48 = vsel %vm3756_vm11, 0, %v5880_v56  ;;  %v3449_v15 = vsel %vm3446_vm13, 0, %v5884_v6  ;;  %v3920_v16 = vsel %vm3917_vm0, 0, %v5880_v56 }
 0x22b   : > { %v1741_v28 = vadd.f32 %v1734_v55, %v1665_v60  ;;  %v1669_v26 = vpop.f32.mrb[39].mxu1  ;;  %v1738_v29 = vpop.f32.mrb[42].mxu0  ;;  %v3760_v31 = vsel %vm3757_vm1, 0, %v5884_v6  ;;  %v3652_v24 = vsel %vm3649_vm6, 0, %v5884_v6  ;;  %v4029_v7 = vsel %vm4026_vm8, 0, %v5884_v6 }
 0x22c   : > { %v1742_v47 = vadd.f32 %v1736_v41, %v1667_v39  ;;  %v1739_v51 = vpop.f32.mrb[43].mxu0  ;;  %v3921_v35 = vsel %vm3918_vm15, 0, %v5884_v6 }
 0x22d   : > { %3672 = vrot.lane.b32.xlu0 %v3651_v52, %s4753_s28 }
 0x22e   : > { %3558 = vrot.lane.b32.xlu1 %v3448_v32, %s4751_s26 }
 0x230   : > { %v1806_v22 = vpop.f32.mrb[40].mxu1 }
 0x231   : > { %v1813_v42 = vadd.f32 %v1806_v22, %v1741_v28  ;;  %v1808_v0 = vpop.f32.mrb[41].mxu1  ;;  %4048 = vrot.lane.b32.xlu0 %v4028_v23, %s4748_s23  ;;  %v1860_v58 = vpop.f32.mrb[44].mxu0 }
 0x232   : > { %v1814_v57 = vadd.f32 %v1808_v0, %v1742_v47  ;;  %3780 = vrot.lane.b32.xlu1 %v3759_v48, %s4752_s27  ;;  %v1862_v59 = vpop.f32.mrb[45].mxu0  ;;  %v1810_v17 = vpop.f32.mrb[42].mxu1 }
 0x233   : > { %v1867_v11 = vadd.f32 %v1860_v58, %v1813_v42  ;;  %v1811_v43 = vpop.f32.mrb[43].mxu1  ;;  %v1864_v44 = vpop.f32.mrb[46].mxu0 }
 0x234   : > { %v1868_v33 = vadd.f32 %v1862_v59, %v1814_v57  ;;  %v1865_v40 = vpop.f32.mrb[47].mxu0 }
 0x235   : > { %3560 = vrot.lane.b32.xlu0 %v3449_v15, %s4751_s26 }
 0x236   : > { %3940 = vrot.lane.b32.xlu1 %v3920_v16, %s4747_s22 }
 0x238   : > { %v1929_v61 = vpop.f32.mrb[44].mxu1 }
 0x239   : > { %v1936_v9 = vadd.f32 %v1929_v61, %v1867_v11  ;;  %v1931_v12 = vpop.f32.mrb[45].mxu1  ;;  %3782 = vrot.lane.b32.xlu0 %v3760_v31, %s4752_s27  ;;  %v1998_v38 = vpop.f32.mrb[48].mxu0 }
 0x23a   : > { %v1937_v27 = vadd.f32 %v1931_v12, %v1868_v33  ;;  %3674 = vrot.lane.b32.xlu1 %v3652_v24, %s4753_s28  ;;  %v2000_v50 = vpop.f32.mrb[49].mxu0  ;;  %v1933_v10 = vpop.f32.mrb[46].mxu1 }
 0x23b   : > { %v2005_v34 = vadd.f32 %v1998_v38, %v1936_v9  ;;  %v1934_v37 = vpop.f32.mrb[47].mxu1  ;;  %v2002_v3 = vpop.f32.mrb[50].mxu0 }
 0x23c   : > { %v2006_v45 = vadd.f32 %v2000_v50, %v1937_v27  ;;  %v2003_v36 = vpop.f32.mrb[51].mxu0 }
 0x23d   : > { %4050 = vrot.lane.b32.xlu0 %v4029_v7, %s4748_s23 }
 0x23e   : > { %3942 = vrot.lane.b32.xlu1 %v3921_v35, %s4747_s22 }
 0x240   : > { %v2062_v60 = vpop.f32.mrb[48].mxu1 }
 0x241   : > { %v2069_v4 = vadd.f32 %v2062_v60, %v2005_v34  ;;  %v2064_v55 = vpop.f32.mrb[49].mxu1  ;;  %v2131_v39 = vpop.f32.mrb[52].mxu0 }
 0x242   : > { %v2070_v41 = vadd.f32 %v2064_v55, %v2006_v45  ;;  %v2133_v53 = vpop.f32.mrb[53].mxu0  ;;  %v2066_v28 = vpop.f32.mrb[50].mxu1 }
 0x243   : > { %v2138_v26 = vadd.f32 %v2131_v39, %v2069_v4  ;;  %v2067_v29 = vpop.f32.mrb[51].mxu1  ;;  %v2135_v47 = vpop.f32.mrb[54].mxu0 }
 0x244   : > { %v2139_v52 = vadd.f32 %v2133_v53, %v2070_v41  ;;  %v2136_v51 = vpop.f32.mrb[55].mxu0 }
 0x248   : > { %v2221_v32 = vpop.f32.mrb[52].mxu1 }
 0x249   : > { %v2223_v25 = vpop.f32.mrb[53].mxu1  ;;  %v2287_v22 = vpop.f32.mrb[56].mxu0 }
 0x24a   : > { %v2225_v23 = vpop.f32.mrb[54].mxu1  ;;  %v2288_v42 = vadd.f32 %v2287_v22, %v2221_v32  ;;  %v2289_v0 = vpop.f32.mrb[57].mxu0  ;;  %v2145_v22 = vadd.f32 %v5859_v14, %v2138_v26 }
 0x24b   : > { %v2226_v58 = vpop.f32.mrb[55].mxu1  ;;  %v2290_v48 = vadd.f32 %v2289_v0, %v2223_v25  ;;  %v2291_v57 = vpop.f32.mrb[58].mxu0 }
 0x24c   : > { %v2292_v59 = vpop.f32.mrb[59].mxu0  ;;  %v2146_v58 = vadd.f32 %v5859_v14, %v2139_v52 }
 0x24e   : > { %v2148_v26 = vmax.f32 %v2146_v58, 0.0 }
 0x250   : > { %v2357_v17 = vpop.f32.mrb[56].mxu1 }
 0x251   : > { %v2364_v11 = vadd.f32 %v2357_v17, %v2288_v42  ;;  %v2359_v43 = vpop.f32.mrb[57].mxu1  ;;  %v2429_v44 = vpop.f32.mrb[60].mxu0 }
 0x252   : > { %v2365_v33 = vadd.f32 %v2359_v43, %v2290_v48  ;;  %v2431_v15 = vpop.f32.mrb[61].mxu0  ;;  %v2361_v40 = vpop.f32.mrb[58].mxu1 }
 0x253   : > { %v2436_v62 = vadd.f32 %v2429_v44, %v2364_v11  ;;  %v2362_v16 = vpop.f32.mrb[59].mxu1  ;;  %v2433_v61 = vpop.f32.mrb[62].mxu0  ;;  %v2147_v40 = vmax.f32 %v2145_v22, 0.0 }
 0x254   : > { %v2437_v31 = vadd.f32 %v2431_v15, %v2365_v33  ;;  %v2434_v9 = vpop.f32.mrb[63].mxu0  ;;  %v5957_v44 = vpop.permute.xlu0 %4213 }
 0x258   : > { %v2483_v12 = vpop.f32.mrb[60].mxu1  ;;  %v5964_v52 = vpop.permute.xlu0 %3468 }
 0x259   : > { %v2490_v38 = vadd.f32 %v2483_v12, %v2436_v62  ;;  %v2485_v24 = vpop.f32.mrb[61].mxu1  ;;  %v2552_v27 = vpop.f32.mrb[64].mxu0 }
 0x25a   : > { %v2491_v50 = vadd.f32 %v2485_v24, %v2437_v31  ;;  %v2554_v10 = vpop.f32.mrb[65].mxu0  ;;  %v2487_v34 = vpop.f32.mrb[62].mxu1 }
 0x25b   : > { %v2559_v37 = vadd.f32 %v2552_v27, %v2490_v38  ;;  %v2488_v3 = vpop.f32.mrb[63].mxu1  ;;  %v2556_v45 = vpop.f32.mrb[66].mxu0 }
 0x25c   : > { %v2560_v7 = vadd.f32 %v2554_v10, %v2491_v50  ;;  %v2557_v36 = vpop.f32.mrb[67].mxu0 }
 0x260   : > { %v2621_v35 = vpop.f32.mrb[64].mxu1 }
 0x261   : > { %v2628_v60 = vadd.f32 %v2621_v35, %v2559_v37  ;;  %v2623_v4 = vpop.f32.mrb[65].mxu1  ;;  %v2685_v55 = vpop.f32.mrb[68].mxu0 }
 0x262   : > { %v2629_v39 = vadd.f32 %v2623_v4, %v2560_v7  ;;  %v2687_v41 = vpop.f32.mrb[69].mxu0  ;;  %v2625_v53 = vpop.f32.mrb[66].mxu1 }
 0x263   : > { %v2692_v28 = vadd.f32 %v2685_v55, %v2628_v60  ;;  %v2626_v29 = vpop.f32.mrb[67].mxu1  ;;  %v2689_v47 = vpop.f32.mrb[70].mxu0 }
 0x264   : > { %v2693_v51 = vadd.f32 %v2687_v41, %v2629_v39  ;;  %v2690_v32 = vpop.f32.mrb[71].mxu0  ;;  %v5970_v37 = vpop.permute.xlu1 %4215 }
 0x265   : > { %v5980_v35 = vpop.permute.xlu0 %3480  ;;  %v4217_v54 = vsel %vm352_vm2, %v5957_v44, %v5970_v37 }
 0x268   : > { %v2754_v25 = vpop.f32.mrb[68].mxu1  ;;  %v5985_v55 = vpop.permute.xlu1 %3474 }
 0x269   : > { %v2761_v23 = vadd.f32 %v2754_v25, %v2692_v28  ;;  %v2756_v42 = vpop.f32.mrb[69].mxu1  ;;  %v2844_v0 = vpop.f32.mrb[72].mxu0 }
 0x26a   : > { %v2762_v48 = vadd.f32 %v2756_v42, %v2693_v51  ;;  %v2758_v57 = vpop.f32.mrb[70].mxu1  ;;  %v2846_v59 = vpop.f32.mrb[73].mxu0 }
 0x26b   : > { %v2768_v17 = vadd.f32 %v5857_v2, %v2761_v23  ;;  %v2759_v11 = vpop.f32.mrb[71].mxu1  ;;  %v2848_v43 = vpop.f32.mrb[74].mxu0 }
 0x26c   : > { %v2769_v33 = vadd.f32 %v5857_v2, %v2762_v48  ;;  %v2849_v15 = vpop.f32.mrb[75].mxu0  ;;  %v5995_v58 = vpop.permute.xlu0 %4693 }
 0x26d   : > { %v2770_v62 = vmax.f32 %v2768_v17, 0.0  ;;  %v6002_v57 = vpop.permute.xlu1 %4688 }
 0x26e   : > { %v2771_v16 = vmax.f32 %v2769_v33, 0.0 }
 0x26f   : > { %v5960_v61 = vpack.c.bf16 %v2770_v62, %v2147_v40 }
 0x270   : > { %v5962_v31 = vpack.c.bf16 %v2771_v16, %v2148_v26  ;;  %v2910_v14 = vpop.f32.mrb[72].mxu1  ;;  %v6012_v62 = vpop.permute.xlu0 %3682 }
 0x271   : > { %v2911_v9 = vadd.f32 %v2910_v14, %v2844_v0  ;;  %v2912_v12 = vpop.f32.mrb[73].mxu1  ;;  %3476 = vrot.lane.b32.xlu1 %v5960_v61, %s4749_s24  ;;  %v2980_v38 = vpop.f32.mrb[76].mxu0  ;;  %v3451_v45 = vsel %vm3445_vm5, 0, %v5960_v61  ;;  %v3762_v36 = vsel %vm3756_vm11, 0, %v5960_v61  ;;  %v3654_v4 = vsel %vm3648_vm4, 0, %v5960_v61 }
 0x272   : > { %v2913_v24 = vadd.f32 %v2912_v12, %v2846_v59  ;;  %3478 = vrot.lane.b32.xlu0 %v5962_v31, %s4749_s24  ;;  %v2982_v2 = vpop.f32.mrb[77].mxu0  ;;  %v2914_v27 = vpop.f32.mrb[74].mxu1  ;;  %v3923_v28 = vsel %vm3917_vm0, 0, %v5960_v61  ;;  %v3763_v42 = vsel %vm3757_vm1, 0, %v5962_v31  ;;  %v4031_v48 = vsel %vm4025_vm10, 0, %v5960_v61 }
 0x273   : > { %v2987_v50 = vadd.f32 %v2980_v38, %v2911_v9  ;;  %v2915_v10 = vpop.f32.mrb[75].mxu1  ;;  %v2984_v34 = vpop.f32.mrb[78].mxu0  ;;  %v3924_v17 = vsel %vm3918_vm15, 0, %v5962_v31  ;;  %v3452_v33 = vsel %vm3446_vm13, 0, %v5962_v31  ;;  %v4032_v12 = vsel %vm4026_vm8, 0, %v5962_v31 }
 0x274   : > { %v2988_v3 = vadd.f32 %v2982_v2, %v2913_v24  ;;  %v2985_v7 = vpop.f32.mrb[79].mxu0  ;;  %v6017_v38 = vpop.permute.xlu1 %3568  ;;  %v3655_v27 = vsel %vm3649_vm6, 0, %v5962_v31 }
 0x275   : > { %3564 = vrot.lane.b32.xlu1 %v3451_v45, %s4751_s26  ;;  %v6024_v45 = vpop.permute.xlu0 %3790 }
 0x276   : > { %3786 = vrot.lane.b32.xlu0 %v3762_v36, %s4752_s27 }
 0x278   : > { %v3052_v60 = vpop.f32.mrb[76].mxu1 }
 0x279   : > { %v3059_v39 = vadd.f32 %v3052_v60, %v2987_v50  ;;  %v3054_v41 = vpop.f32.mrb[77].mxu1  ;;  %3678 = vrot.lane.b32.xlu1 %v3654_v4, %s4753_s28  ;;  %v3106_v53 = vpop.f32.mrb[80].mxu0 }
 0x27a   : > { %v3060_v29 = vadd.f32 %v3054_v41, %v2988_v3  ;;  %3946 = vrot.lane.b32.xlu0 %v3923_v28, %s4747_s22  ;;  %v3108_v47 = vpop.f32.mrb[81].mxu0  ;;  %v3056_v51 = vpop.f32.mrb[78].mxu1 }
 0x27b   : > { %v3113_v32 = vadd.f32 %v3106_v53, %v3059_v39  ;;  %v3057_v25 = vpop.f32.mrb[79].mxu1  ;;  %v3110_v22 = vpop.f32.mrb[82].mxu0 }
 0x27c   : > { %v3114_v23 = vadd.f32 %v3108_v47, %v3060_v29  ;;  %v3111_v0 = vpop.f32.mrb[83].mxu0  ;;  %v6026_v60 = vpop.permute.xlu1 %4698 }
 0x27d   : > { %3788 = vrot.lane.b32.xlu1 %v3763_v42, %s4752_s27  ;;  %v6030_v25 = vpop.permute.xlu0 %4703 }
 0x27e   : > { %4054 = vrot.lane.b32.xlu0 %v4031_v48, %s4748_s23 }
 0x280   : > { %v3175_v59 = vpop.f32.mrb[80].mxu1 }
 0x281   : > { %v3182_v11 = vadd.f32 %v3175_v59, %v3113_v32  ;;  %v3177_v43 = vpop.f32.mrb[81].mxu1  ;;  %3948 = vrot.lane.b32.xlu1 %v3924_v17, %s4747_s22  ;;  %v6042_v59 = vpop.permute.xlu0 %4064 }
 0x282   : > { %v3183_v15 = vadd.f32 %v3177_v43, %v3114_v23  ;;  %3566 = vrot.lane.b32.xlu0 %v3452_v33, %s4751_s26  ;;  %v3179_v40 = vpop.f32.mrb[82].mxu1  ;;  %v6032_v23 = vpop.permute.xlu1 %4708 }
 0x283   : > { %v3244_v26 = vpop.f32.mrb[84].mxu0  ;;  %v3180_v16 = vpop.f32.mrb[83].mxu1 }
 0x284   : > { %v3251_v14 = vadd.f32 %v3244_v26, %v3182_v11  ;;  %v3246_v9 = vpop.f32.mrb[85].mxu0 }
 0x285   : > { %v3252_v24 = vadd.f32 %v3246_v9, %v3183_v15  ;;  %4056 = vrot.lane.b32.xlu1 %v4032_v12, %s4748_s23  ;;  %v3248_v2 = vpop.f32.mrb[86].mxu0  ;;  %v4695_v15 = vunpack.i.l.bf16 %v5995_v58  ;;  %v4700_v9 = vunpack.i.l.bf16 %v6026_v60 }
 0x286   : > { %3680 = vrot.lane.b32.xlu0 %v3655_v27, %s4753_s28  ;;  %v3249_v50 = vpop.f32.mrb[87].mxu0  ;;  %v6044_v17 = vpop.permute.xlu1 %3956  ;;  %v4690_v27 = vunpack.i.l.bf16 %v6002_v57 }
 0x288   : > { %v3308_v10 = vpop.f32.mrb[84].mxu1 }
 0x289   : > { %v3315_v34 = vadd.f32 %v3308_v10, %v3251_v14  ;;  %v3310_v3 = vpop.f32.mrb[85].mxu1 }
 0x28a   : > { %v3316_v7 = vadd.f32 %v3310_v3, %v3252_v24  ;;  %v3312_v36 = vpop.f32.mrb[86].mxu1 }
 0x28b   : > { %v3377_v4 = vpop.f32.mrb[88].mxu0  ;;  %v3313_v39 = vpop.f32.mrb[87].mxu1 }
 0x28c   : > { %v3384_v41 = vadd.f32 %v3377_v4, %v3315_v34  ;;  %v3379_v53 = vpop.f32.mrb[89].mxu0  ;;  %v4705_v39 = vunpack.i.l.bf16 %v6030_v25 }
 0x28d   : > { %v3385_v28 = vadd.f32 %v3379_v53, %v3316_v7  ;;  %v3381_v29 = vpop.f32.mrb[90].mxu0  ;;  %v4710_v7 = vunpack.i.l.bf16 %v6032_v23 }
 0x28e   : > { %v3391_v47 = vadd.f32 %v5861_v20, %v3384_v41  ;;  %v3382_v51 = vpop.f32.mrb[91].mxu0 }
 0x28f   : > { %v3392_v32 = vadd.f32 %v5861_v20, %v3385_v28 }
 0x290   : > { %v3393_v22 = vmax.f32 %v3391_v47, 0.0 }
 0x291   : > { %v3394_v42 = vmax.f32 %v3392_v32, 0.0 }
 0x292   : > { %v6034_v0 = vpack.c.bf16 %v3393_v22, %v3393_v22 }
 0x293   : > { %v6036_v48 = vpack.c.bf16 %v3394_v42, %v3394_v42 }
 0x294   : > { %3482 = vrot.lane.b32.xlu1 %v6034_v0, %s4749_s24  ;;  %v3657_v20 = vsel %vm3648_vm4, 0, %v6034_v0  ;;  %v3454_v11 = vsel %vm3445_vm5, 0, %v6034_v0  ;;  %v3765_v43 = vsel %vm3756_vm11, 0, %v6034_v0  ;;  %v4034_v49 = vsel %vm4025_vm10, 0, %v6034_v0 }
 0x295   : > { %3484 = vrot.lane.b32.xlu0 %v6036_v48, %s4749_s24  ;;  %v3926_v63 = vsel %vm3917_vm0, 0, %v6034_v0  ;;  %v3658_v2 = vsel %vm3649_vm6, 0, %v6036_v48  ;;  %vm4219_vm4 = vcmp.ne.s16.totalorder %v4217_v54, 0  ;;  %v3766_v4 = vsel %vm3757_vm1, 0, %v6036_v48 }
 0x296   : > { %v4222_v10 = vsel %vm4219_vm4, 0, %v5884_v6  ;;  %vm4218_vm6 = vcmp.ne.s16.totalorder %v5957_v44, 0  ;;  %v3927_v32 = vsel %vm3918_vm15, 0, %v6036_v48  ;;  %v4225_v42 = vsel %vm4219_vm4, 0, %v5962_v31 }
 0x297   : > { %v4221_v29 = vsel %vm4218_vm6, 0, %v5880_v56  ;;  %v4224_v22 = vsel %vm4218_vm6, 0, %v5960_v61  ;;  %v4227_v30 = vsel %vm4218_vm6, 0, %v6034_v0  ;;  %v4228_v19 = vsel %vm4219_vm4, 0, %v6036_v48 }
 0x298   : > { %3684 = vrot.lane.b32.xlu1 %v3657_v20, %s4753_s28  ;;  %v4035_v20 = vsel %vm4026_vm8, 0, %v6036_v48  ;;  %vm6365_vm15 = vcmask 1043456   ;;  %vm3496_vm5 = vcmask 326656   ;;  %vm6377_vm6 = vcmask 916480  }
 0x299   : > { %3570 = vrot.lane.b32.xlu0 %v3454_v11, %s4751_s26  ;;  %v4636_v11 = vld [vmem:[%s6350_s3 + $0x28] sm:$0xff]  ;;  %vm6366_vm8 = vmmov %vm6365_vm15 }
 0x29a   : > { %vm6368_vm10 = vmmov %vm6366_vm8 }
 0x29b   : > { %v3471_v33 = vpop.permute.xlu0 %3470  ;;  %vm6369_vm11 = vmmov %vm6366_vm8 }
 0x29c   : > { %3792 = vrot.lane.b32.xlu1 %v3765_v43, %s4752_s27  ;;  %v3473_v40 = vpop.permute.xlu1 %3472  ;;  %v3486_v26 = vsel %vm283_vm14, %v5964_v52, %v3471_v33  ;;  %v3455_v52 = vsel %vm3446_vm13, 0, %v6036_v48  ;;  %vm6370_vm13 = vmmov %vm6366_vm8 }
 0x29d   : > { %4060 = vrot.lane.b32.xlu0 %v4034_v49, %s4748_s23  ;;  %v3487_v8 = vsel %vm283_vm14, %v3471_v33, %v3473_v40 }
 0x29e   : > { %3506 = vmatprep.subr.bf16.mxu1 %v3487_v8 }
 0x29f   : > { %3507 = vmatpush1.bf16.msra.mxu1 %v3486_v26  ;;  %v6069_v16 = vpop.permute.xlu0 %3672 }
 0x2a0   : > { %3952 = vrot.lane.b32.xlu1 %v3926_v63, %s4747_s22  ;;  %v6074_v13 = vsel %vm432_vm3, %v4695_v15, %v6069_v16  ;;  %v3559_v14 = vpop.permute.xlu1 %3558  ;;  %v4691_v63 = vunpack.i.h.bf16 %v6002_v57 }
 0x2a1   : > { %4137 = vrot.lane.b32.xlu0 %v4754_v21, %s4750_s25  ;;  %v3574_v34 = vsel %vm352_vm2, %v4690_v27, %v3559_v14 }
 0x2a3   : > { %v4049_v12 = vpop.permute.xlu0 %4048 }
 0x2a4   : > { %3572 = vrot.lane.b32.xlu1 %v3455_v52, %s4751_s26  ;;  %v6086_v24 = vpop.permute.xlu1 %3780 }
 0x2a5   : > { %v6094_v50 = vsel %vm512_vm7, %v4700_v9, %v6086_v24  ;;  %3686 = vrot.lane.b32.xlu0 %v3658_v2, %s4753_s28 }
 0x2a7   : > { %v3561_v5 = vpop.permute.xlu0 %3560 }
 0x2a8   : > { %4135 = vrot.lane.b32.xlu1 %v5884_v6, %s4750_s25  ;;  %v3941_v37 = vpop.permute.xlu1 %3940  ;;  %v3575_v18 = vsel %vm352_vm2, %v3559_v14, %v3561_v5 }
 0x2a9   : > { %4243 = vrot.lane.b32.xlu0 %v4222_v10, %s4746_s21  ;;  %3593 = vmatprep.subr.bf16.mxu0 %v3575_v18 }
 0x2aa   : > { %3594 = vmatpush1.bf16.msra.mxu0 %v3574_v34 }
 0x2ab   : > { %v6104_v3 = vpop.permute.xlu0 %3782 }
 0x2ac   : > { %4133 = vrot.lane.b32.xlu1 %v5880_v56, %s4750_s25  ;;  %v6109_v36 = vpop.permute.xlu1 %3674 }
 0x2ad   : > { %3794 = vrot.lane.b32.xlu0 %v3766_v4, %s4752_s27  ;;  %v3689_v34 = vsel %vm432_vm3, %v6069_v16, %v6109_v36 }
 0x2af   : > { %v4051_v41 = vpop.permute.xlu0 %4050 }
 0x2b0   : > { %4713 = vrot.lane.b32.xlu1 %v4745_v1, %s4746_s21  ;;  %v6120_v53 = vsel %vm410_vm9, %v4049_v12, %v4051_v41  ;;  %v3943_v28 = vpop.permute.xlu1 %3942  ;;  %v6126_v46 = vsel %vm410_vm9, %v4051_v41, %v4710_v7  ;;  %v4637_v7 = vld [vmem:[%s6349_s2 + $0x4] sm:$0xf]  ;;  %v4696_v41 = vunpack.i.h.bf16 %v5995_v58 }
 0x2b1   : > { %v6129_v47 = vsel %vm490_vm12, %v3941_v37, %v3943_v28  ;;  %4241 = vrot.lane.b32.xlu0 %v4221_v29, %s4746_s21  ;;  %v6133_v51 = vsel %vm490_vm12, %v3943_v28, %v4705_v39 }
 0x2b4   : > { %4141 = vrot.lane.b32.xlu1 %v5962_v31, %s4750_s25 }
 0x2b5   : > { %4143 = vrot.lane.b32.xlu0 %v4754_v21, %s4750_s25 }
 0x2b8   : > { %4139 = vrot.lane.b32.xlu1 %v5960_v61, %s4750_s25 }
 0x2b9   : > { %3954 = vrot.lane.b32.xlu0 %v3927_v32, %s4747_s22 }
 0x2bc   : > { %4247 = vrot.lane.b32.xlu1 %v4224_v22, %s4746_s21 }
 0x2bd   : > { %4249 = vrot.lane.b32.xlu0 %v4225_v42, %s4746_s21 }
 0x2c0   : > { %4062 = vrot.lane.b32.xlu1 %v4035_v20, %s4748_s23 }
 0x2c1   : > { %4145 = vrot.lane.b32.xlu0 %v6034_v0, %s4750_s25 }
 0x2c4   : > { %4147 = vrot.lane.b32.xlu1 %v6036_v48, %s4750_s25 }
 0x2c5   : > { %4149 = vrot.lane.b32.xlu0 %v4754_v21, %s4750_s25 }
 0x2c8   : > { %4253 = vrot.lane.b32.xlu1 %v4227_v30, %s4746_s21 }
 0x2c9   : > { %4255 = vrot.lane.b32.xlu0 %v4228_v19, %s4746_s21 }
 0x2cc   : > { %4257 = vrot.lane.b32.xlu1 %v4745_v1, %s4746_s21 }
 0x2cd   : > { %4323 = vperm.xlu0 %4685, %v4636_v11  }
 0x2e3   : > { %v3477_v21 = vpop.permute.xlu1 %3476 }
 0x2e4   : > { %v3479_v43 = vpop.permute.xlu0 %3478  ;;  %v3488_v33 = vsel %vm283_vm14, %v5985_v55, %v3477_v21 }
 0x2e5   : > { %v3489_v44 = vsel %vm283_vm14, %v3477_v21, %v3479_v43  ;;  %v4642_v21 = vld [vmem:[%s6349_s2 + $0x8] sm:$0xf] }
 0x2e6   : > { %3508 = vmatprep.subr.bf16.mxu1 %v3489_v44 }
 0x2e7   : > { %3509 = vmatpush1.bf16.msra.mxu1 %v3488_v33  ;;  %v3565_v40 = vpop.permute.xlu1 %3564 }
 0x2e8   : > { %v6177_v15 = vpop.permute.xlu0 %3786  ;;  %v3576_v54 = vsel %vm352_vm2, %v4691_v63, %v3565_v40 }
 0x2eb   : > { %v3679_v8 = vpop.permute.xlu1 %3678 }
 0x2ec   : > { %v6179_v49 = vpop.permute.xlu0 %3946  ;;  %v3690_v16 = vsel %vm432_vm3, %v4696_v41, %v3679_v8 }
 0x2ef   : > { %v3789_v52 = vpop.permute.xlu1 %3788 }
 0x2f0   : > { %v6181_v26 = vpop.permute.xlu0 %4054 }
 0x2f3   : > { %v6186_v55 = vpop.permute.xlu1 %3948 }
 0x2f4   : > { %v3567_v14 = vpop.permute.xlu0 %3566 }
 0x2f5   : > { %v3577_v9 = vsel %vm352_vm2, %v3565_v40, %v3567_v14  ;;  %v4711_v14 = vunpack.i.h.bf16 %v6032_v23  ;;  %v3960_v23 = vsel %vm490_vm12, %v6179_v49, %v6186_v55 }
 0x2f6   : > { %3595 = vmatprep.subr.bf16.mxu0 %v3577_v9 }
 0x2f7   : > { %3596 = vmatpush1.bf16.msra.mxu0 %v3576_v54  ;;  %v6188_v12 = vpop.permute.xlu1 %4056 }
 0x2f8   : > { %v3681_v2 = vpop.permute.xlu0 %3680 }
 0x2f9   : > { %v3691_v39 = vsel %vm432_vm3, %v3679_v8, %v3681_v2 }
 0x306   : > { %v3483_v27 = vpop.permute.xlu1 %3482 }
 0x307   : > { %v3490_v5 = vsel %vm283_vm14, %v5980_v35, %v3483_v27  ;;  %v3485_v37 = vpop.permute.xlu0 %3484 }
 0x308   : > { %v3501_v57 = vsel %vm6365_vm15, %v3490_v5, 0  ;;  %v3491_v10 = vsel %vm283_vm14, %v3483_v27, %v3485_v37  ;;  %vm6367_vm14 = vmmov %vm6366_vm8 }
 0x309   : > { %4638 = vmatprep.subr.msk.bf16.mxu1 %vm6366_vm8, %v3491_v10 }
 0x30a   : > { %v3685_v18 = vpop.permute.xlu1 %3684  ;;  %3511 = vmatpush1.bf16.msra.mxu1 %v3501_v57 }
 0x30b   : > { %3707 = vmatprep.subr.bf16.mxu1 %v3689_v34  ;;  %v3571_v35 = vpop.permute.xlu0 %3570 }
 0x30c   : > { %v3578_v32 = vsel %vm352_vm2, %v6017_v38, %v3571_v35  ;;  %v3797_v38 = vsel %vm512_vm7, %v6086_v24, %v6104_v3  ;;  %v3799_v24 = vsel %vm512_vm7, %v6177_v15, %v3789_v52  ;;  %v4701_v3 = vunpack.i.h.bf16 %v6026_v60 }
 0x30d   : > { %4639 = vmatmul.mubr.msk.bf16.vlgmr.msra.gmra.mrb[88].mxu1 %vm3496_vm5, %v4637_v7  ;;  %v3588_v20 = vsel %vm6367_vm14, %v3578_v32, 0  ;;  %vm6381_vm14 = vmmov %vm6377_vm6 }
 0x30e   : > { %v3793_v4 = vpop.permute.xlu1 %3792  ;;  %3708 = vmatpush1.bf16.msra.mxu1 %v6074_v13  ;;  %3739 = vmatprep.mubr.bf16.mxu1 %v4745_v1  ;;  %v3692_v13 = vsel %vm432_vm3, %v6012_v62, %v3685_v18  ;;  %v3456_v62 = vld [vmem:[%s6349_s2] sm:$0xf] }
 0x30f   : > { %v6206_v28 = vpop.permute.xlu0 %4060  ;;  %3709 = vmatprep.subr.bf16.mxu1 %v3691_v39  ;;  %v3702_v19 = vsel %vm6369_vm11, %v3692_v13, 0  ;;  %v3800_v40 = vsel %vm512_vm7, %v6024_v45, %v3793_v4  ;;  %v4645_v45 = vld [vmem:[%s6349_s2 + $0xc] sm:$0xf]  ;;  %vm6384_vm11 = vmmov %vm6377_vm6 }
 0x312   : > { %v6209_v36 = vpop.permute.xlu1 %3952  ;;  %3710 = vmatpush1.bf16.msra.mxu1 %v3690_v16 }
 0x313   : > { %v6211_v29 = vpop.permute.xlu0 %4137 }
 0x316   : > { %v3573_v22 = vpop.permute.xlu1 %3572 }
 0x317   : > { %v3579_v42 = vsel %vm352_vm2, %v3571_v35, %v3573_v22  ;;  %v3687_v58 = vpop.permute.xlu0 %3686  ;;  %vm6371_vm2 = vmmov %vm6366_vm8 }
 0x318   : > { %v3693_v30 = vsel %vm432_vm3, %v3685_v18, %v3687_v58  ;;  %4640 = vmatprep.subr.msk.bf16.mxu0 %vm6368_vm10, %v3579_v42  ;;  %vm6372_vm3 = vmmov %vm6371_vm2  ;;  %vm6382_vm10 = vcmask 908288   ;;  %v4657_v42 = vld [vmem:[%s6349_s2 + $0x1c] sm:$0xf] }
 0x319   : > { %3598 = vmatpush1.bf16.msra.mxu0 %v3588_v20  ;;  %4643 = vmatprep.subr.msk.bf16.mxu1 %vm6370_vm13, %v3693_v30  ;;  %vm6373_vm0 = vmmov %vm6371_vm2 }
 0x31a   : > { %v6229_v11 = vpop.permute.xlu1 %4135  ;;  %3712 = vmatpush1.bf16.msra.mxu1 %v3702_v19  ;;  %3815 = vmatprep.subr.bf16.mxu0 %v3797_v38  ;;  %vm6374_vm1 = vmmov %vm6373_vm0 }
 0x31b   : > { %v6234_v43 = vpop.permute.xlu0 %4243  ;;  %3869 = vmatprep.subr.bf16.mxu1 %v5884_v6  ;;  %v3798_v6 = vsel %vm512_vm7, %v4701_v3, %v6177_v15  ;;  %v3864_v15 = vsel %vm6374_vm1, %v6034_v0, 0  ;;  %vm6376_vm4 = vmmov %vm6373_vm0 }
 0x31c   : > { %4641 = vmatmul.mubr.msk.bf16.vlgmr.msra.gmra.mrb[92].mxu0 %vm3496_vm5, %v3456_v62  ;;  %vm6379_vm15 = vmmov %vm6373_vm0 }
 0x31d   : > { %3816 = vmatpush1.bf16.msra.mxu0 %v6094_v50  ;;  %4644 = vmatmul.mubr.msk.bf16.vlgmr.msra.gmra.mrb[92].mxu1 %vm3496_vm5, %v4642_v21  ;;  %vm6380_vm8 = vmmov %vm6373_vm0 }
 0x31e   : > { %v4134_v44 = vpop.permute.xlu1 %4133  ;;  %3817 = vmatprep.subr.bf16.mxu0 %v3799_v24  ;;  %3870 = vmatpush1.bf16.msra.mxu1 %v5880_v56  ;;  %vm6385_vm13 = vmmov %vm6377_vm6 }
 0x31f   : > { %v3795_v33 = vpop.permute.xlu0 %3794  ;;  %3871 = vmatprep.subr.bf16.mxu1 %v5962_v31  ;;  %3847 = vmatprep.mubr.bf16.mxu0 %v4745_v1  ;;  %v3810_v31 = vsel %vm6373_vm0, %v3800_v40, 0 }
 0x320   : > { %v3801_v50 = vsel %vm512_vm7, %v3793_v4, %v3795_v33  ;;  %3901 = vmatprep.mubr.bf16.mxu1 %v4745_v1  ;;  %vm6375_vm7 = vmmov %vm6373_vm0 }
 0x321   : > { %3818 = vmatpush1.bf16.msra.mxu0 %v3798_v6 }
 0x322   : > { %v6252_v60 = vpop.permute.xlu1 %4713  ;;  %4646 = vmatprep.subr.msk.bf16.mxu0 %vm6371_vm2, %v3801_v50  ;;  %3872 = vmatpush1.bf16.msra.mxu1 %v5960_v61  ;;  %v4648_v61 = vld [vmem:[%s6349_s2 + $0x10] sm:$0xf]  ;;  %vm6386_vm2 = vmmov %vm6377_vm6 }
 0x323   : > { %v4242_v56 = vpop.permute.xlu0 %4241  ;;  %4649 = vmatprep.subr.msk.bf16.mxu1 %vm6372_vm3, %v6036_v48  ;;  %v4706_v48 = vunpack.i.h.bf16 %v6030_v25  ;;  %v4069_v25 = vsel %vm410_vm9, %v6188_v12, %v4711_v14  ;;  %v4716_v7 = vunpack.i.h.bf16 %v6252_v60 }
 0x325   : > { %3820 = vmatpush1.bf16.msra.mxu0 %v3810_v31  ;;  %v3961_v0 = vsel %vm490_vm12, %v6186_v55, %v4706_v48  ;;  %v4715_v55 = vunpack.i.l.bf16 %v6252_v60 }
 0x326   : > { %v4142_v8 = vpop.permute.xlu1 %4141  ;;  %3874 = vmatpush1.bf16.msra.mxu1 %v3864_v15  ;;  %3977 = vmatprep.subr.bf16.mxu0 %v6133_v51 }
 0x327   : > { %v4144_v63 = vpop.permute.xlu0 %4143  ;;  %4085 = vmatprep.subr.bf16.mxu1 %v6126_v46  ;;  %v4260_v18 = vsel %vm6382_vm10, %v6234_v43, %v4715_v55 }
 0x328   : > { %4647 = vmatmul.mubr.msk.bf16.vlgmr.msra.gmra.mrb[96].mxu0 %vm3496_vm5, %v4645_v45  ;;  %v4154_v10 = vsel %vm6381_vm14, %v4142_v8, %v4144_v63 }
 0x329   : > { %3978 = vmatpush1.bf16.msra.mxu0 %v6129_v47  ;;  %4650 = vmatmul.mubr.msk.bf16.vlgmr.msra.gmra.mrb[96].mxu1 %vm3496_vm5, %v4648_v61 }
 0x32a   : > { %v4140_v51 = vpop.permute.xlu1 %4139  ;;  %3979 = vmatprep.subr.bf16.mxu0 %v3961_v0  ;;  %4086 = vmatpush1.bf16.msra.mxu1 %v6120_v53  ;;  %v4068_v53 = vsel %vm410_vm9, %v6181_v26, %v6188_v12  ;;  %v4651_v26 = vld [vmem:[%s6349_s2 + $0x14] sm:$0xf] }
 0x32b   : > { %v3955_v9 = vpop.permute.xlu0 %3954  ;;  %4087 = vmatprep.subr.bf16.mxu1 %v4069_v25  ;;  %4009 = vmatprep.mubr.bf16.mxu0 %v4745_v1  ;;  %v4153_v39 = vsel %vm6384_vm11, %v4140_v51, %v4142_v8 }
 0x32c   : > { %v3963_v46 = vsel %vm490_vm12, %v3955_v9, %v6044_v17  ;;  %4117 = vmatprep.mubr.bf16.mxu1 %v4745_v1  ;;  %v3962_v47 = vsel %vm490_vm12, %v6209_v36, %v3955_v9  ;;  %v4152_v17 = vsel %vm6377_vm6, %v6229_v11, %v6211_v29  ;;  %vm6378_vm12 = vmmov %vm6377_vm6 }
 0x32d   : > { %3980 = vmatpush1.bf16.msra.mxu0 %v3960_v23  ;;  %v3972_v49 = vsel %vm6376_vm4, %v3962_v47, 0  ;;  %v4151_v37 = vsel %vm6378_vm12, %v4134_v44, %v6229_v11  ;;  %vm6392_vm12 = vmmov %vm6373_vm0 }
 0x32e   : > { %v4248_v54 = vpop.permute.xlu1 %4247  ;;  %4652 = vmatprep.subr.msk.bf16.mxu0 %vm6375_vm7, %v3963_v46  ;;  %4088 = vmatpush1.bf16.msra.mxu1 %v4068_v53  ;;  %vm6389_vm7 = vmmov %vm6373_vm0 }
 0x32f   : > { %v4250_v52 = vpop.permute.xlu0 %4249 }
 0x331   : > { %3982 = vmatpush1.bf16.msra.mxu0 %v3972_v49 }
 0x332   : > { %v4063_v12 = vpop.permute.xlu1 %4062  ;;  %4170 = vmatprep.subr.bf16.mxu0 %v4152_v17 }
 0x333   : > { %v4070_v2 = vsel %vm410_vm9, %v6206_v28, %v4063_v12  ;;  %v4071_v27 = vsel %vm410_vm9, %v4063_v12, %v6042_v59  ;;  %v4146_v5 = vpop.permute.xlu0 %4145  ;;  %v4654_v59 = vld [vmem:[%s6349_s2 + $0x18] sm:$0xf]  ;;  %vm6383_vm9 = vmmov %vm6382_vm10 }
 0x334   : > { %v4080_v57 = vsel %vm6379_vm15, %v4070_v2, 0  ;;  %4653 = vmatmul.mubr.msk.bf16.vlgmr.msra.gmra.mrb[100].mxu0 %vm3496_vm5, %v4651_v26  ;;  %4655 = vmatprep.subr.msk.bf16.mxu1 %vm6380_vm8, %v4071_v27  ;;  %v4259_v4 = vsel %vm6383_vm9, %v4242_v56, %v6234_v43  ;;  %vm6387_vm3 = vmmov %vm6383_vm9 }
 0x335   : > { %4090 = vmatpush1.bf16.msra.mxu1 %v4080_v57  ;;  %4171 = vmatpush1.bf16.msra.mxu0 %v4151_v37  ;;  %v4262_v16 = vsel %vm6387_vm3, %v4250_v52, %v4716_v7  ;;  %vm6388_vm1 = vmmov %vm6387_vm3 }
 0x336   : > { %v4148_v34 = vpop.permute.xlu1 %4147  ;;  %4172 = vmatprep.subr.bf16.mxu0 %v4154_v10  ;;  %4278 = vmatprep.subr.bf16.mxu1 %v4260_v18  ;;  %v4261_v32 = vsel %vm6388_vm1, %v4248_v54, %v4250_v52  ;;  %vm6390_vm4 = vmmov %vm6388_vm1 }
 0x337   : > { %v4150_v35 = vpop.permute.xlu0 %4149  ;;  %4202 = vmatprep.mubr.bf16.mxu0 %v4745_v1  ;;  %v4155_v28 = vsel %vm6386_vm2, %v4146_v5, %v4148_v34  ;;  %vm6391_vm6 = vmmov %vm6388_vm1 }
 0x338   : > { %v4156_v41 = vsel %vm6385_vm13, %v4148_v34, %v4150_v35  ;;  %4656 = vmatmul.mubr.msk.bf16.vlgmr.msra.gmra.mrb[100].mxu1 %vm3496_vm5, %v4654_v59  ;;  %v4165_v13 = vsel %vm6389_vm7, %v4155_v28, 0  ;;  %vm6393_vm15 = vmmov %vm6373_vm0 }
 0x339   : > { %4173 = vmatpush1.bf16.msra.mxu0 %v4153_v39  ;;  %4279 = vmatpush1.bf16.msra.mxu1 %v4259_v4 }
 0x33a   : > { %v4254_v36 = vpop.permute.xlu1 %4253  ;;  %4658 = vmatprep.subr.msk.bf16.mxu0 %vm6373_vm0, %v4156_v41  ;;  %4280 = vmatprep.subr.bf16.mxu1 %v4262_v16 }
 0x33b   : > { %v4256_v29 = vpop.permute.xlu0 %4255  ;;  %4310 = vmatprep.mubr.bf16.mxu1 %v4745_v1  ;;  %v4660_v1 = vld [vmem:[%s6349_s2 + $0x20] sm:$0xf] }
 0x33c   : > { %v4263_v22 = vsel %vm6390_vm4, %v4254_v36, %v4256_v29 }
 0x33d   : > { %4175 = vmatpush1.bf16.msra.mxu0 %v4165_v13  ;;  %4281 = vmatpush1.bf16.msra.mxu1 %v4261_v32  ;;  %v4273_v30 = vsel %vm6392_vm12, %v4263_v22, 0 }
 0x33e   : > { %v4258_v58 = vpop.permute.xlu1 %4257 }
 0x33f   : > { %v4264_v20 = vsel %vm6391_vm6, %v4256_v29, %v4258_v58 }
 0x340   : > { %4659 = vmatmul.mubr.msk.bf16.vlgmr.msra.gmra.mrb[104].mxu0 %vm3496_vm5, %v4657_v42  ;;  %4661 = vmatprep.subr.msk.bf16.mxu1 %vm6393_vm15, %v4264_v20 }
 0x341   : > { %4283 = vmatpush1.bf16.msra.mxu1 %v4273_v30 }
 0x344   : > { %4662 = vmatmul.mubr.msk.bf16.vlgmr.msra.gmra.mrb[104].mxu1 %vm3496_vm5, %v4660_v1 }
 0x34c   : > { %v4324_v4 = vpop.permute.xlu0 %4323 }
 0x3e0   : > { %v3540_v19 = vpop.f32.mrb[88].mxu1 }
 0x3e1   : > { %v3542_v38 = vpop.f32.mrb[89].mxu1 }
 0x3e2   : > { %v3544_v62 = vpop.f32.mrb[90].mxu1 }
 0x3e3   : > { %v3545_v11 = vpop.f32.mrb[91].mxu1 }
 0x3ef   : > { %v3627_v21 = vpop.f32.mrb[92].mxu0 }
 0x3f0   : > { %v3628_v43 = vadd.f32 %v3627_v21, %v3540_v19  ;;  %v3629_v24 = vpop.f32.mrb[93].mxu0  ;;  %v3741_v3 = vpop.f32.mrb[92].mxu1 }
 0x3f1   : > { %v3630_v44 = vadd.f32 %v3629_v24, %v3542_v38  ;;  %v3743_v33 = vpop.f32.mrb[93].mxu1  ;;  %v3631_v6 = vpop.f32.mrb[94].mxu0 }
 0x3f2   : > { %v3748_v50 = vadd.f32 %v3741_v3, %v3628_v43  ;;  %v3632_v40 = vpop.f32.mrb[95].mxu0  ;;  %v3745_v60 = vpop.f32.mrb[94].mxu1 }
 0x3f3   : > { %v3749_v56 = vadd.f32 %v3743_v33, %v3630_v44  ;;  %v3746_v31 = vpop.f32.mrb[95].mxu1 }
 0x3fb   : > { %v3849_v15 = vpop.f32.mrb[96].mxu0 }
 0x3fc   : > { %v3856_v45 = vadd.f32 %v3849_v15, %v3748_v50  ;;  %v3851_v8 = vpop.f32.mrb[97].mxu0  ;;  %v3903_v61 = vpop.f32.mrb[96].mxu1 }
 0x3fd   : > { %v3857_v48 = vadd.f32 %v3851_v8, %v3749_v56  ;;  %v3905_v63 = vpop.f32.mrb[97].mxu1  ;;  %v3853_v14 = vpop.f32.mrb[98].mxu0 }
 0x3fe   : > { %v3910_v0 = vadd.f32 %v3903_v61, %v3856_v45  ;;  %v3854_v51 = vpop.f32.mrb[99].mxu0  ;;  %v3907_v25 = vpop.f32.mrb[98].mxu1 }
 0x3ff   : > { %v3911_v9 = vadd.f32 %v3905_v63, %v3857_v48  ;;  %v3908_v23 = vpop.f32.mrb[99].mxu1 }
 0x407   : > { %v4011_v46 = vpop.f32.mrb[100].mxu0 }
 0x408   : > { %v4018_v53 = vadd.f32 %v4011_v46, %v3910_v0  ;;  %v4013_v47 = vpop.f32.mrb[101].mxu0 }
 0x409   : > { %v4019_v54 = vadd.f32 %v4013_v47, %v3911_v9  ;;  %v4015_v52 = vpop.f32.mrb[102].mxu0 }
 0x40a   : > { %v4016_v49 = vpop.f32.mrb[103].mxu0 }
 0x40b   : > { %v4119_v55 = vpop.f32.mrb[100].mxu1 }
 0x40c   : > { %v4126_v17 = vadd.f32 %v4119_v55, %v4018_v53  ;;  %v4121_v26 = vpop.f32.mrb[101].mxu1 }
 0x40d   : > { %v4127_v12 = vadd.f32 %v4121_v26, %v4019_v54  ;;  %v4123_v2 = vpop.f32.mrb[102].mxu1 }
 0x40e   : > { %v4124_v27 = vpop.f32.mrb[103].mxu1 }
 0x413   : > { %v4204_v5 = vpop.f32.mrb[104].mxu0 }
 0x414   : > { %v4211_v37 = vadd.f32 %v4204_v5, %v4126_v17  ;;  %v4206_v57 = vpop.f32.mrb[105].mxu0 }
 0x415   : > { %v4212_v10 = vadd.f32 %v4206_v57, %v4127_v12  ;;  %v4208_v18 = vpop.f32.mrb[106].mxu0 }
 0x416   : > { %v4209_v59 = vpop.f32.mrb[107].mxu0 }
 0x417   : > { %v4312_v34 = vpop.f32.mrb[104].mxu1 }
 0x418   : > { %v4319_v7 = vadd.f32 %v4312_v34, %v4211_v37  ;;  %v4314_v35 = vpop.f32.mrb[105].mxu1 }
 0x419   : > { %v4320_v39 = vadd.f32 %v4314_v35, %v4212_v10  ;;  %v4316_v41 = vpop.f32.mrb[106].mxu1 }
 0x41a   : > { %v4326_v28 = vadd.f32 %v4324_v4, %v4319_v7  ;;  %v4317_v16 = vpop.f32.mrb[107].mxu1 }
 0x41b   : > { %v4327_v36 = vadd.f32 %v4324_v4, %v4320_v39 }
 0x41c   : > { %v4328_v29 = vmax.f32 %v4326_v28, 0.0 }
 0x41d   : > { %v4329_v32 = vmax.f32 %v4327_v36, 0.0 }
 0x41e   : > { %4330 = vst [vmem:[%s197_s6] sm:$0xff] %v4328_v29 }
 0x41f   : > { %4331 = vst [vmem:[%s197_s6 + $0x8] sm:$0xff] %v4329_v32 }
 0x420 PF: > { %s14_s15 = sadd.s32 1, %s4743_s15  }
 0x421   : > { %p11_p4 = scmp.ge.s32.totalorder %s14_s15, 4  }
 0x423   :  { %13 = sbr.rel (!%p11_p4) target bundleno = 1 (0x1), region = 127 }

</bundles_post_ra>
